<compile_context>
chip_gen: v7x
topology: tpu7x:2x2x1
jax: 0.10.0
libtpu: 0.0.40
codegen_flags: <defaults>
</compile_context>

<pallas_src>
import math
import functools

import jax
import jax.numpy as jnp
from jax import lax
from jax.experimental import pallas as pl
from jax.experimental.pallas import tpu as pltpu

# --- small shapes (original module uses 1000x1000; kept small per instructions)
HEIGHT = 128
WIDTH = 128
N_POINTS = 20
SUB_H = 32           # in-kernel sub-tile height; ~48 live vregs, under 64.
N_COLS = 8           # per-sphere packed scalars (1 pad column)

GAMMA = 0.1
MAX_DEPTH = 45.0
W_BG = 1.0           # background blend weight (background color = black)
OFFSCREEN = 1.0e6    # px offset for invalid spheres (folds `valid` into geometry)


# ----------------------------- rotation helpers (glue, plain JAX) ------------
def axis_angle_to_matrix(aa):
    angle = jnp.linalg.norm(aa)
    axis = aa / jnp.maximum(angle, 1e-12)
    x, y, z = axis[0], axis[1], axis[2]
    c = jnp.cos(angle)
    s = jnp.sin(angle)
    C = 1.0 - c
    return jnp.array(
        [
            [c + x * x * C, x * y * C - z * s, x * z * C + y * s],
            [y * x * C + z * s, c + y * y * C, y * z * C - x * s],
            [z * x * C - y * s, z * y * C + x * s, c + z * z * C],
        ],
        dtype=jnp.float32,
    )


def matrix_to_rotation_6d(R):
    # pytorch3d convention: first two rows, flattened.
    return R[:2, :].reshape(6)


def rotation_6d_to_matrix(d6):
    a1, a2 = d6[:3], d6[3:]
    b1 = a1 / jnp.linalg.norm(a1)
    b2 = a2 - jnp.dot(b1, a2) * b1
    b2 = b2 / jnp.linalg.norm(b2)
    b3 = jnp.cross(b1, b2)
    return jnp.stack([b1, b2, b3], axis=0)


# ----------------------------- Pallas kernel ---------------------------------
def render_kernel(sph_ref, out_ref, *, block_h, sub_h, width, n_points, w_bg):
    """Per-pixel soft sphere blending over an in-kernel row loop.

    sph_ref: SMEM (N_POINTS * N_COLS,) f32, per sphere:
             [px-0.5, py-0.5, inv_r_px, k=(1-z_norm)/gamma, r, g, b, pad]
             Invalid spheres have px pushed far off-screen (cover == 0).
    out_ref: VMEM (3, block_h, width) f32  (CHW block of the image)
    """
    # Global row of the first row of this block (0 unless split across cores).
    block_row0 = (pl.program_id(0) * block_h).astype(jnp.float32)

    # Loop-invariant pixel-coordinate planes, hoisted out of the row loop.
    # Pixel-center 0.5 offsets are folded into px/py on the host side, and the
    # sub-tile row offset is folded into py (scalar math) inside the loop.
    xs = lax.broadcasted_iota(jnp.int32, (sub_h, width), 1).astype(jnp.float32)
    ys = lax.broadcasted_iota(jnp.int32, (sub_h, width), 0).astype(jnp.float32)

    n_sub = block_h // sub_h

    @pl.loop(0, n_sub)
    def _(t):
        row_start = pl.multiple_of(t * sub_h, sub_h)
        row_f = block_row0 + (t * sub_h).astype(jnp.float32)

        w_sum = jnp.full((sub_h, width), jnp.float32(w_bg), dtype=jnp.float32)
        acc_r = jnp.zeros((sub_h, width), dtype=jnp.float32)
        acc_g = jnp.zeros((sub_h, width), dtype=jnp.float32)
        acc_b = jnp.zeros((sub_h, width), dtype=jnp.float32)

        # N_POINTS is small and static: fully unrolled sphere loop, scalar
        # params read from SMEM and broadcast over the pixel sub-tile
        # (VPU/EUP work only; scalar slot absorbs the SMEM reads).
        for s in range(n_points):
            base = s * N_COLS
            px = sph_ref[base + 0]              # px - 0.5 (pixel-center fold)
            py = sph_ref[base + 1] - row_f      # py - 0.5 - sub-tile row offset
            inv_rp = sph_ref[base + 2]
            k = sph_ref[base + 3]               # (1 - normalized depth) / gamma
            cr = sph_ref[base + 4]
            cg = sph_ref[base + 5]
            cb = sph_ref[base + 6]

            dx = xs - px
            dy = ys - py
            dist = jnp.sqrt(dx * dx + dy * dy)
            # dist >= 0 so 1 - dist*inv_rp <= 1 always: lower clamp only.
            cover = jnp.maximum(1.0 - dist * inv_rp, 0.0)
            w = cover * jnp.exp(cover * k)

            w_sum = w_sum + w
            acc_r = acc_r + w * cr
            acc_g = acc_g + w * cg
            acc_b = acc_b + w * cb

        # w_sum >= w_bg = 1.0, so the approximate reciprocal is safe.
        inv = pl.reciprocal(w_sum, approx=True)
        out_ref[0, pl.ds(row_start, sub_h), :] = acc_r * inv
        out_ref[1, pl.ds(row_start, sub_h), :] = acc_g * inv
        out_ref[2, pl.ds(row_start, sub_h), :] = acc_b * inv


def render_pallas(sphere_params):
    """sphere_params: (N_POINTS * N_COLS,) float32. Returns (HEIGHT, WIDTH, 3)."""
    # v7x has 2 TensorCores per chip: split the row axis across them via
    # CORE_PARALLEL (plain "parallel" does not change codegen). Other
    # generations (1 TC) use a single grid step to avoid per-step overhead.
    kind = jax.devices()[0].device_kind.lower()
    if ("v7" in kind) or ("tpu7" in kind):
        grid_rows = 2
        semantics = (pltpu.CORE_PARALLEL,)
    else:
        grid_rows = 1
        semantics = ("arbitrary",)
    block_h = HEIGHT // grid_rows

    kernel = functools.partial(
        render_kernel,
        block_h=block_h,
        sub_h=SUB_H,
        width=WIDTH,
        n_points=N_POINTS,
        w_bg=W_BG,
    )
    img_chw = pl.pallas_call(
        kernel,
        out_shape=jax.ShapeDtypeStruct((3, HEIGHT, WIDTH), jnp.float32),
        grid=(grid_rows,),
        in_specs=[pl.BlockSpec(memory_space=pltpu.MemorySpace.SMEM)],
        out_specs=pl.BlockSpec((3, block_h, WIDTH), lambda i: (0, i, 0)),
        compiler_params=pltpu.CompilerParams(dimension_semantics=semantics),
    )(sphere_params)
    # glue: CHW -> HWC (192 KiB, one fused XLA op) to match pulsar's (H, W, 3)
    # output. A CHW-consuming caller could skip this transpose entirely.
    return jnp.transpose(img_chw, (1, 2, 0))


# ----------------------------- SceneModel forward -----------------------------
def scene_model_forward(vert_pos, vert_col, vert_rad, cam_pos, cam_rot, cam_sensor):
    """Equivalent of SceneModel.forward(): renders the scene to (H, W, 3)."""
    # camera setup (glue)
    R = rotation_6d_to_matrix(cam_rot)          # camera->world rotation
    p_cam = (vert_pos - cam_pos[None, :]) @ R   # = R^T (p - t), shape (N, 3)
    depth = -p_cam[:, 2]                        # right_handed_system: camera looks along -z
    valid = (depth > 1e-6) & (depth < MAX_DEPTH)

    focal, sensor_w = cam_sensor[0], cam_sensor[1]
    pixel_size = sensor_w / WIDTH
    sensor_h = pixel_size * HEIGHT

    safe_depth = jnp.where(valid, depth, 1.0)
    x_img = focal * p_cam[:, 0] / safe_depth
    y_img = focal * p_cam[:, 1] / safe_depth
    px = (x_img / sensor_w + 0.5) * WIDTH
    py = (0.5 - y_img / sensor_h) * HEIGHT
    r_px = focal * vert_rad / safe_depth / pixel_size
    r_px = jnp.maximum(r_px, 1e-3)

    # Fold `valid` into geometry: invalid spheres go far off-screen, so their
    # coverage is exactly 0 in the kernel (dist*inv_r is huge -> max(...,0)=0).
    px = jnp.where(valid, px, -OFFSCREEN)

    # Hoisted per-sphere scalar math (kernel avoids divides / mask multiplies),
    # including the pixel-center 0.5 offsets.
    inv_r_px = 1.0 / r_px
    z_norm = jnp.clip(depth / MAX_DEPTH, 0.0, 1.0)
    k = (1.0 - z_norm) / GAMMA

    sphere_params = jnp.stack(
        [
            px - 0.5,
            py - 0.5,
            inv_r_px,
            k,
            vert_col[:, 0],
            vert_col[:, 1],
            vert_col[:, 2],
            jnp.zeros_like(px),  # pad column (keeps per-sphere stride = 8)
        ],
        axis=1,
    ).astype(jnp.float32).reshape(N_POINTS * N_COLS)  # 1D -> ~1 KiB padded SMEM

    return render_pallas(sphere_params)


def init_scene_params(key):
    """Deterministic parameter init mirroring SceneModel.__init__ shapes."""
    k1, k2, k3 = jax.random.split(key, 3)
    vert_pos = jax.random.uniform(k1, (N_POINTS, 3), dtype=jnp.float32) * 10.0
    vert_pos = vert_pos.at[:, 2].add(25.0)
    vert_pos = vert_pos.at[:, :2].add(-5.0)
    vert_col = jax.random.uniform(k2, (N_POINTS, 3), dtype=jnp.float32)
    vert_rad = jax.random.uniform(k3, (N_POINTS,), dtype=jnp.float32)
    cam_pos = jnp.array([0.1, 0.1, 0.0], dtype=jnp.float32)
    cam_rot = matrix_to_rotation_6d(
        axis_angle_to_matrix(
            jnp.array([0.02, math.pi + 0.02, 0.01], dtype=jnp.float32)
        )
    )
    cam_sensor = jnp.array([4.8, 1.8], dtype=jnp.float32)
    return vert_pos, vert_col, vert_rad, cam_pos, cam_rot, cam_sensor


if __name__ == "__main__":
    params = init_scene_params(jax.random.PRNGKey(0))
    fwd = jax.jit(scene_model_forward)
    img = fwd(*params)
    jax.block_until_ready(img)
    assert img.shape == (HEIGHT, WIDTH, 3) and img.dtype == jnp.float32
    assert bool(jnp.all(jnp.isfinite(img)))
    print("KERNEL_OK")
</pallas_src>

<mosaic_0001>
module attributes {stable_mosaic.version = 11 : i64} {
  func.func @render_kernel(%arg0: i32, %arg1: memref<160xf32, #tpu.memory_space<smem>>, %arg2: memref<3x128x128xf32, #tpu.memory_space<vmem>>) attributes {dimension_semantics = [#tpu.dimension_semantics<arbitrary>], iteration_bounds = array<i64: 1>, scalar_prefetch = 0 : i64, scratch_operands = 0 : i64, tpu.core_type = #tpu.core_type<tc>, window_params = [{transform_indices = @transform_0, window_bounds = array<i64: 160>}, {transform_indices = @transform_1, window_bounds = array<i64: 3, 128, 128>}]} {
    %c128_i32 = arith.constant 128 : i32
    %0 = arith.muli %arg0, %c128_i32 : i32
    %1 = arith.sitofp %0 : i32 to f32
    %2 = tpu.iota {dimensions = array<i32: 1>} : vector<32x128xi32>
    %3 = arith.sitofp %2 : vector<32x128xi32> to vector<32x128xf32>
    %4 = tpu.iota {dimensions = array<i32: 0>} : vector<32x128xi32>
    %5 = arith.sitofp %4 : vector<32x128xi32> to vector<32x128xf32>
    %c0_i32 = arith.constant 0 : i32
    %c4_i32 = arith.constant 4 : i32
    %6 = arith.addi %c0_i32, %c4_i32 : i32
    %c1_i32 = arith.constant 1 : i32
    scf.for %arg3 = %c0_i32 to %6 step %c1_i32  : i32 {
      %c1_i32_1 = arith.constant 1 : i32
      %7 = arith.muli %arg3, %c1_i32_1 : i32
      %c0_i32_2 = arith.constant 0 : i32
      %8 = arith.addi %c0_i32_2, %7 : i32
      %c32_i32 = arith.constant 32 : i32
      %9 = arith.muli %8, %c32_i32 : i32
      %10 = tpu.assume_multiple %9, 32 : i32
      %c32_i32_3 = arith.constant 32 : i32
      %11 = arith.muli %8, %c32_i32_3 : i32
      %12 = arith.sitofp %11 : i32 to f32
      %13 = arith.addf %1, %12 : f32
      %cst = arith.constant 1.000000e+00 : f32
      %14 = vector.broadcast %cst : f32 to vector<32x128xf32>
      %cst_4 = arith.constant 0.000000e+00 : f32
      %15 = vector.broadcast %cst_4 : f32 to vector<32x128xf32>
      %cst_5 = arith.constant 0.000000e+00 : f32
      %16 = vector.broadcast %cst_5 : f32 to vector<32x128xf32>
      %cst_6 = arith.constant 0.000000e+00 : f32
      %17 = vector.broadcast %cst_6 : f32 to vector<32x128xf32>
      %c0 = arith.constant 0 : index
      %18 = memref.load %arg1[%c0] : memref<160xf32, #tpu.memory_space<smem>>
      %c1 = arith.constant 1 : index
      %19 = memref.load %arg1[%c1] : memref<160xf32, #tpu.memory_space<smem>>
      %20 = arith.subf %19, %13 : f32
      %c2 = arith.constant 2 : index
      %21 = memref.load %arg1[%c2] : memref<160xf32, #tpu.memory_space<smem>>
      %c3 = arith.constant 3 : index
      %22 = memref.load %arg1[%c3] : memref<160xf32, #tpu.memory_space<smem>>
      %c4 = arith.constant 4 : index
      %23 = memref.load %arg1[%c4] : memref<160xf32, #tpu.memory_space<smem>>
      %c5 = arith.constant 5 : index
      %24 = memref.load %arg1[%c5] : memref<160xf32, #tpu.memory_space<smem>>
      %c6 = arith.constant 6 : index
      %25 = memref.load %arg1[%c6] : memref<160xf32, #tpu.memory_space<smem>>
      %26 = vector.broadcast %18 : f32 to vector<32x128xf32>
      %27 = arith.subf %3, %26 : vector<32x128xf32>
      %28 = vector.broadcast %20 : f32 to vector<32x128xf32>
      %29 = arith.subf %5, %28 : vector<32x128xf32>
      %30 = arith.mulf %27, %27 : vector<32x128xf32>
      %31 = arith.mulf %29, %29 : vector<32x128xf32>
      %32 = arith.addf %30, %31 : vector<32x128xf32>
      %33 = math.sqrt %32 : vector<32x128xf32>
      %34 = vector.broadcast %21 : f32 to vector<32x128xf32>
      %35 = arith.mulf %33, %34 : vector<32x128xf32>
      %cst_7 = arith.constant 1.000000e+00 : f32
      %36 = vector.broadcast %cst_7 : f32 to vector<32x128xf32>
      %37 = arith.subf %36, %35 : vector<32x128xf32>
      %cst_8 = arith.constant 0.000000e+00 : f32
      %38 = vector.broadcast %cst_8 : f32 to vector<32x128xf32>
      %39 = arith.maximumf %37, %38 : vector<32x128xf32>
      %40 = vector.broadcast %22 : f32 to vector<32x128xf32>
      %41 = arith.mulf %39, %40 : vector<32x128xf32>
      %42 = math.exp %41 : vector<32x128xf32>
      %43 = arith.mulf %39, %42 : vector<32x128xf32>
      %44 = arith.addf %14, %43 : vector<32x128xf32>
      %45 = vector.broadcast %23 : f32 to vector<32x128xf32>
      %46 = arith.mulf %43, %45 : vector<32x128xf32>
      %47 = arith.addf %15, %46 : vector<32x128xf32>
      %48 = vector.broadcast %24 : f32 to vector<32x128xf32>
      %49 = arith.mulf %43, %48 : vector<32x128xf32>
      %50 = arith.addf %16, %49 : vector<32x128xf32>
      %51 = vector.broadcast %25 : f32 to vector<32x128xf32>
      %52 = arith.mulf %43, %51 : vector<32x128xf32>
      %53 = arith.addf %17, %52 : vector<32x128xf32>
      %c8 = arith.constant 8 : index
      %54 = memref.load %arg1[%c8] : memref<160xf32, #tpu.memory_space<smem>>
      %c9 = arith.constant 9 : index
      %55 = memref.load %arg1[%c9] : memref<160xf32, #tpu.memory_space<smem>>
      %56 = arith.subf %55, %13 : f32
      %c10 = arith.constant 10 : index
      %57 = memref.load %arg1[%c10] : memref<160xf32, #tpu.memory_space<smem>>
      %c11 = arith.constant 11 : index
      %58 = memref.load %arg1[%c11] : memref<160xf32, #tpu.memory_space<smem>>
      %c12 = arith.constant 12 : index
      %59 = memref.load %arg1[%c12] : memref<160xf32, #tpu.memory_space<smem>>
      %c13 = arith.constant 13 : index
      %60 = memref.load %arg1[%c13] : memref<160xf32, #tpu.memory_space<smem>>
      %c14 = arith.constant 14 : index
      %61 = memref.load %arg1[%c14] : memref<160xf32, #tpu.memory_space<smem>>
      %62 = vector.broadcast %54 : f32 to vector<32x128xf32>
      %63 = arith.subf %3, %62 : vector<32x128xf32>
      %64 = vector.broadcast %56 : f32 to vector<32x128xf32>
      %65 = arith.subf %5, %64 : vector<32x128xf32>
      %66 = arith.mulf %63, %63 : vector<32x128xf32>
      %67 = arith.mulf %65, %65 : vector<32x128xf32>
      %68 = arith.addf %66, %67 : vector<32x128xf32>
      %69 = math.sqrt %68 : vector<32x128xf32>
      %70 = vector.broadcast %57 : f32 to vector<32x128xf32>
      %71 = arith.mulf %69, %70 : vector<32x128xf32>
      %cst_9 = arith.constant 1.000000e+00 : f32
      %72 = vector.broadcast %cst_9 : f32 to vector<32x128xf32>
      %73 = arith.subf %72, %71 : vector<32x128xf32>
      %cst_10 = arith.constant 0.000000e+00 : f32
      %74 = vector.broadcast %cst_10 : f32 to vector<32x128xf32>
      %75 = arith.maximumf %73, %74 : vector<32x128xf32>
      %76 = vector.broadcast %58 : f32 to vector<32x128xf32>
      %77 = arith.mulf %75, %76 : vector<32x128xf32>
      %78 = math.exp %77 : vector<32x128xf32>
      %79 = arith.mulf %75, %78 : vector<32x128xf32>
      %80 = arith.addf %44, %79 : vector<32x128xf32>
      %81 = vector.broadcast %59 : f32 to vector<32x128xf32>
      %82 = arith.mulf %79, %81 : vector<32x128xf32>
      %83 = arith.addf %47, %82 : vector<32x128xf32>
      %84 = vector.broadcast %60 : f32 to vector<32x128xf32>
      %85 = arith.mulf %79, %84 : vector<32x128xf32>
      %86 = arith.addf %50, %85 : vector<32x128xf32>
      %87 = vector.broadcast %61 : f32 to vector<32x128xf32>
      %88 = arith.mulf %79, %87 : vector<32x128xf32>
      %89 = arith.addf %53, %88 : vector<32x128xf32>
      %c16 = arith.constant 16 : index
      %90 = memref.load %arg1[%c16] : memref<160xf32, #tpu.memory_space<smem>>
      %c17 = arith.constant 17 : index
      %91 = memref.load %arg1[%c17] : memref<160xf32, #tpu.memory_space<smem>>
      %92 = arith.subf %91, %13 : f32
      %c18 = arith.constant 18 : index
      %93 = memref.load %arg1[%c18] : memref<160xf32, #tpu.memory_space<smem>>
      %c19 = arith.constant 19 : index
      %94 = memref.load %arg1[%c19] : memref<160xf32, #tpu.memory_space<smem>>
      %c20 = arith.constant 20 : index
      %95 = memref.load %arg1[%c20] : memref<160xf32, #tpu.memory_space<smem>>
      %c21 = arith.constant 21 : index
      %96 = memref.load %arg1[%c21] : memref<160xf32, #tpu.memory_space<smem>>
      %c22 = arith.constant 22 : index
      %97 = memref.load %arg1[%c22] : memref<160xf32, #tpu.memory_space<smem>>
      %98 = vector.broadcast %90 : f32 to vector<32x128xf32>
      %99 = arith.subf %3, %98 : vector<32x128xf32>
      %100 = vector.broadcast %92 : f32 to vector<32x128xf32>
      %101 = arith.subf %5, %100 : vector<32x128xf32>
      %102 = arith.mulf %99, %99 : vector<32x128xf32>
      %103 = arith.mulf %101, %101 : vector<32x128xf32>
      %104 = arith.addf %102, %103 : vector<32x128xf32>
      %105 = math.sqrt %104 : vector<32x128xf32>
      %106 = vector.broadcast %93 : f32 to vector<32x128xf32>
      %107 = arith.mulf %105, %106 : vector<32x128xf32>
      %cst_11 = arith.constant 1.000000e+00 : f32
      %108 = vector.broadcast %cst_11 : f32 to vector<32x128xf32>
      %109 = arith.subf %108, %107 : vector<32x128xf32>
      %cst_12 = arith.constant 0.000000e+00 : f32
      %110 = vector.broadcast %cst_12 : f32 to vector<32x128xf32>
      %111 = arith.maximumf %109, %110 : vector<32x128xf32>
      %112 = vector.broadcast %94 : f32 to vector<32x128xf32>
      %113 = arith.mulf %111, %112 : vector<32x128xf32>
      %114 = math.exp %113 : vector<32x128xf32>
      %115 = arith.mulf %111, %114 : vector<32x128xf32>
      %116 = arith.addf %80, %115 : vector<32x128xf32>
      %117 = vector.broadcast %95 : f32 to vector<32x128xf32>
      %118 = arith.mulf %115, %117 : vector<32x128xf32>
      %119 = arith.addf %83, %118 : vector<32x128xf32>
      %120 = vector.broadcast %96 : f32 to vector<32x128xf32>
      %121 = arith.mulf %115, %120 : vector<32x128xf32>
      %122 = arith.addf %86, %121 : vector<32x128xf32>
      %123 = vector.broadcast %97 : f32 to vector<32x128xf32>
      %124 = arith.mulf %115, %123 : vector<32x128xf32>
      %125 = arith.addf %89, %124 : vector<32x128xf32>
      %c24 = arith.constant 24 : index
      %126 = memref.load %arg1[%c24] : memref<160xf32, #tpu.memory_space<smem>>
      %c25 = arith.constant 25 : index
      %127 = memref.load %arg1[%c25] : memref<160xf32, #tpu.memory_space<smem>>
      %128 = arith.subf %127, %13 : f32
      %c26 = arith.constant 26 : index
      %129 = memref.load %arg1[%c26] : memref<160xf32, #tpu.memory_space<smem>>
      %c27 = arith.constant 27 : index
      %130 = memref.load %arg1[%c27] : memref<160xf32, #tpu.memory_space<smem>>
      %c28 = arith.constant 28 : index
      %131 = memref.load %arg1[%c28] : memref<160xf32, #tpu.memory_space<smem>>
      %c29 = arith.constant 29 : index
      %132 = memref.load %arg1[%c29] : memref<160xf32, #tpu.memory_space<smem>>
      %c30 = arith.constant 30 : index
      %133 = memref.load %arg1[%c30] : memref<160xf32, #tpu.memory_space<smem>>
      %134 = vector.broadcast %126 : f32 to vector<32x128xf32>
      %135 = arith.subf %3, %134 : vector<32x128xf32>
      %136 = vector.broadcast %128 : f32 to vector<32x128xf32>
      %137 = arith.subf %5, %136 : vector<32x128xf32>
      %138 = arith.mulf %135, %135 : vector<32x128xf32>
      %139 = arith.mulf %137, %137 : vector<32x128xf32>
      %140 = arith.addf %138, %139 : vector<32x128xf32>
      %141 = math.sqrt %140 : vector<32x128xf32>
      %142 = vector.broadcast %129 : f32 to vector<32x128xf32>
      %143 = arith.mulf %141, %142 : vector<32x128xf32>
      %cst_13 = arith.constant 1.000000e+00 : f32
      %144 = vector.broadcast %cst_13 : f32 to vector<32x128xf32>
      %145 = arith.subf %144, %143 : vector<32x128xf32>
      %cst_14 = arith.constant 0.000000e+00 : f32
      %146 = vector.broadcast %cst_14 : f32 to vector<32x128xf32>
      %147 = arith.maximumf %145, %146 : vector<32x128xf32>
      %148 = vector.broadcast %130 : f32 to vector<32x128xf32>
      %149 = arith.mulf %147, %148 : vector<32x128xf32>
      %150 = math.exp %149 : vector<32x128xf32>
      %151 = arith.mulf %147, %150 : vector<32x128xf32>
      %152 = arith.addf %116, %151 : vector<32x128xf32>
      %153 = vector.broadcast %131 : f32 to vector<32x128xf32>
      %154 = arith.mulf %151, %153 : vector<32x128xf32>
      %155 = arith.addf %119, %154 : vector<32x128xf32>
      %156 = vector.broadcast %132 : f32 to vector<32x128xf32>
      %157 = arith.mulf %151, %156 : vector<32x128xf32>
      %158 = arith.addf %122, %157 : vector<32x128xf32>
      %159 = vector.broadcast %133 : f32 to vector<32x128xf32>
      %160 = arith.mulf %151, %159 : vector<32x128xf32>
      %161 = arith.addf %125, %160 : vector<32x128xf32>
      %c32 = arith.constant 32 : index
      %162 = memref.load %arg1[%c32] : memref<160xf32, #tpu.memory_space<smem>>
      %c33 = arith.constant 33 : index
      %163 = memref.load %arg1[%c33] : memref<160xf32, #tpu.memory_space<smem>>
      %164 = arith.subf %163, %13 : f32
      %c34 = arith.constant 34 : index
      %165 = memref.load %arg1[%c34] : memref<160xf32, #tpu.memory_space<smem>>
      %c35 = arith.constant 35 : index
      %166 = memref.load %arg1[%c35] : memref<160xf32, #tpu.memory_space<smem>>
      %c36 = arith.constant 36 : index
      %167 = memref.load %arg1[%c36] : memref<160xf32, #tpu.memory_space<smem>>
      %c37 = arith.constant 37 : index
      %168 = memref.load %arg1[%c37] : memref<160xf32, #tpu.memory_space<smem>>
      %c38 = arith.constant 38 : index
      %169 = memref.load %arg1[%c38] : memref<160xf32, #tpu.memory_space<smem>>
      %170 = vector.broadcast %162 : f32 to vector<32x128xf32>
      %171 = arith.subf %3, %170 : vector<32x128xf32>
      %172 = vector.broadcast %164 : f32 to vector<32x128xf32>
      %173 = arith.subf %5, %172 : vector<32x128xf32>
      %174 = arith.mulf %171, %171 : vector<32x128xf32>
      %175 = arith.mulf %173, %173 : vector<32x128xf32>
      %176 = arith.addf %174, %175 : vector<32x128xf32>
      %177 = math.sqrt %176 : vector<32x128xf32>
      %178 = vector.broadcast %165 : f32 to vector<32x128xf32>
      %179 = arith.mulf %177, %178 : vector<32x128xf32>
      %cst_15 = arith.constant 1.000000e+00 : f32
      %180 = vector.broadcast %cst_15 : f32 to vector<32x128xf32>
      %181 = arith.subf %180, %179 : vector<32x128xf32>
      %cst_16 = arith.constant 0.000000e+00 : f32
      %182 = vector.broadcast %cst_16 : f32 to vector<32x128xf32>
      %183 = arith.maximumf %181, %182 : vector<32x128xf32>
      %184 = vector.broadcast %166 : f32 to vector<32x128xf32>
      %185 = arith.mulf %183, %184 : vector<32x128xf32>
      %186 = math.exp %185 : vector<32x128xf32>
      %187 = arith.mulf %183, %186 : vector<32x128xf32>
      %188 = arith.addf %152, %187 : vector<32x128xf32>
      %189 = vector.broadcast %167 : f32 to vector<32x128xf32>
      %190 = arith.mulf %187, %189 : vector<32x128xf32>
      %191 = arith.addf %155, %190 : vector<32x128xf32>
      %192 = vector.broadcast %168 : f32 to vector<32x128xf32>
      %193 = arith.mulf %187, %192 : vector<32x128xf32>
      %194 = arith.addf %158, %193 : vector<32x128xf32>
      %195 = vector.broadcast %169 : f32 to vector<32x128xf32>
      %196 = arith.mulf %187, %195 : vector<32x128xf32>
      %197 = arith.addf %161, %196 : vector<32x128xf32>
      %c40 = arith.constant 40 : index
      %198 = memref.load %arg1[%c40] : memref<160xf32, #tpu.memory_space<smem>>
      %c41 = arith.constant 41 : index
      %199 = memref.load %arg1[%c41] : memref<160xf32, #tpu.memory_space<smem>>
      %200 = arith.subf %199, %13 : f32
      %c42 = arith.constant 42 : index
      %201 = memref.load %arg1[%c42] : memref<160xf32, #tpu.memory_space<smem>>
      %c43 = arith.constant 43 : index
      %202 = memref.load %arg1[%c43] : memref<160xf32, #tpu.memory_space<smem>>
      %c44 = arith.constant 44 : index
      %203 = memref.load %arg1[%c44] : memref<160xf32, #tpu.memory_space<smem>>
      %c45 = arith.constant 45 : index
      %204 = memref.load %arg1[%c45] : memref<160xf32, #tpu.memory_space<smem>>
      %c46 = arith.constant 46 : index
      %205 = memref.load %arg1[%c46] : memref<160xf32, #tpu.memory_space<smem>>
      %206 = vector.broadcast %198 : f32 to vector<32x128xf32>
      %207 = arith.subf %3, %206 : vector<32x128xf32>
      %208 = vector.broadcast %200 : f32 to vector<32x128xf32>
      %209 = arith.subf %5, %208 : vector<32x128xf32>
      %210 = arith.mulf %207, %207 : vector<32x128xf32>
      %211 = arith.mulf %209, %209 : vector<32x128xf32>
      %212 = arith.addf %210, %211 : vector<32x128xf32>
      %213 = math.sqrt %212 : vector<32x128xf32>
      %214 = vector.broadcast %201 : f32 to vector<32x128xf32>
      %215 = arith.mulf %213, %214 : vector<32x128xf32>
      %cst_17 = arith.constant 1.000000e+00 : f32
      %216 = vector.broadcast %cst_17 : f32 to vector<32x128xf32>
      %217 = arith.subf %216, %215 : vector<32x128xf32>
      %cst_18 = arith.constant 0.000000e+00 : f32
      %218 = vector.broadcast %cst_18 : f32 to vector<32x128xf32>
      %219 = arith.maximumf %217, %218 : vector<32x128xf32>
      %220 = vector.broadcast %202 : f32 to vector<32x128xf32>
      %221 = arith.mulf %219, %220 : vector<32x128xf32>
      %222 = math.exp %221 : vector<32x128xf32>
      %223 = arith.mulf %219, %222 : vector<32x128xf32>
      %224 = arith.addf %188, %223 : vector<32x128xf32>
      %225 = vector.broadcast %203 : f32 to vector<32x128xf32>
      %226 = arith.mulf %223, %225 : vector<32x128xf32>
      %227 = arith.addf %191, %226 : vector<32x128xf32>
      %228 = vector.broadcast %204 : f32 to vector<32x128xf32>
      %229 = arith.mulf %223, %228 : vector<32x128xf32>
      %230 = arith.addf %194, %229 : vector<32x128xf32>
      %231 = vector.broadcast %205 : f32 to vector<32x128xf32>
      %232 = arith.mulf %223, %231 : vector<32x128xf32>
      %233 = arith.addf %197, %232 : vector<32x128xf32>
      %c48 = arith.constant 48 : index
      %234 = memref.load %arg1[%c48] : memref<160xf32, #tpu.memory_space<smem>>
      %c49 = arith.constant 49 : index
      %235 = memref.load %arg1[%c49] : memref<160xf32, #tpu.memory_space<smem>>
      %236 = arith.subf %235, %13 : f32
      %c50 = arith.constant 50 : index
      %237 = memref.load %arg1[%c50] : memref<160xf32, #tpu.memory_space<smem>>
      %c51 = arith.constant 51 : index
      %238 = memref.load %arg1[%c51] : memref<160xf32, #tpu.memory_space<smem>>
      %c52 = arith.constant 52 : index
      %239 = memref.load %arg1[%c52] : memref<160xf32, #tpu.memory_space<smem>>
      %c53 = arith.constant 53 : index
      %240 = memref.load %arg1[%c53] : memref<160xf32, #tpu.memory_space<smem>>
      %c54 = arith.constant 54 : index
      %241 = memref.load %arg1[%c54] : memref<160xf32, #tpu.memory_space<smem>>
      %242 = vector.broadcast %234 : f32 to vector<32x128xf32>
      %243 = arith.subf %3, %242 : vector<32x128xf32>
      %244 = vector.broadcast %236 : f32 to vector<32x128xf32>
      %245 = arith.subf %5, %244 : vector<32x128xf32>
      %246 = arith.mulf %243, %243 : vector<32x128xf32>
      %247 = arith.mulf %245, %245 : vector<32x128xf32>
      %248 = arith.addf %246, %247 : vector<32x128xf32>
      %249 = math.sqrt %248 : vector<32x128xf32>
      %250 = vector.broadcast %237 : f32 to vector<32x128xf32>
      %251 = arith.mulf %249, %250 : vector<32x128xf32>
      %cst_19 = arith.constant 1.000000e+00 : f32
      %252 = vector.broadcast %cst_19 : f32 to vector<32x128xf32>
      %253 = arith.subf %252, %251 : vector<32x128xf32>
      %cst_20 = arith.constant 0.000000e+00 : f32
      %254 = vector.broadcast %cst_20 : f32 to vector<32x128xf32>
      %255 = arith.maximumf %253, %254 : vector<32x128xf32>
      %256 = vector.broadcast %238 : f32 to vector<32x128xf32>
      %257 = arith.mulf %255, %256 : vector<32x128xf32>
      %258 = math.exp %257 : vector<32x128xf32>
      %259 = arith.mulf %255, %258 : vector<32x128xf32>
      %260 = arith.addf %224, %259 : vector<32x128xf32>
      %261 = vector.broadcast %239 : f32 to vector<32x128xf32>
      %262 = arith.mulf %259, %261 : vector<32x128xf32>
      %263 = arith.addf %227, %262 : vector<32x128xf32>
      %264 = vector.broadcast %240 : f32 to vector<32x128xf32>
      %265 = arith.mulf %259, %264 : vector<32x128xf32>
      %266 = arith.addf %230, %265 : vector<32x128xf32>
      %267 = vector.broadcast %241 : f32 to vector<32x128xf32>
      %268 = arith.mulf %259, %267 : vector<32x128xf32>
      %269 = arith.addf %233, %268 : vector<32x128xf32>
      %c56 = arith.constant 56 : index
      %270 = memref.load %arg1[%c56] : memref<160xf32, #tpu.memory_space<smem>>
      %c57 = arith.constant 57 : index
      %271 = memref.load %arg1[%c57] : memref<160xf32, #tpu.memory_space<smem>>
      %272 = arith.subf %271, %13 : f32
      %c58 = arith.constant 58 : index
      %273 = memref.load %arg1[%c58] : memref<160xf32, #tpu.memory_space<smem>>
      %c59 = arith.constant 59 : index
      %274 = memref.load %arg1[%c59] : memref<160xf32, #tpu.memory_space<smem>>
      %c60 = arith.constant 60 : index
      %275 = memref.load %arg1[%c60] : memref<160xf32, #tpu.memory_space<smem>>
      %c61 = arith.constant 61 : index
      %276 = memref.load %arg1[%c61] : memref<160xf32, #tpu.memory_space<smem>>
      %c62 = arith.constant 62 : index
      %277 = memref.load %arg1[%c62] : memref<160xf32, #tpu.memory_space<smem>>
      %278 = vector.broadcast %270 : f32 to vector<32x128xf32>
      %279 = arith.subf %3, %278 : vector<32x128xf32>
      %280 = vector.broadcast %272 : f32 to vector<32x128xf32>
      %281 = arith.subf %5, %280 : vector<32x128xf32>
      %282 = arith.mulf %279, %279 : vector<32x128xf32>
      %283 = arith.mulf %281, %281 : vector<32x128xf32>
      %284 = arith.addf %282, %283 : vector<32x128xf32>
      %285 = math.sqrt %284 : vector<32x128xf32>
      %286 = vector.broadcast %273 : f32 to vector<32x128xf32>
      %287 = arith.mulf %285, %286 : vector<32x128xf32>
      %cst_21 = arith.constant 1.000000e+00 : f32
      %288 = vector.broadcast %cst_21 : f32 to vector<32x128xf32>
      %289 = arith.subf %288, %287 : vector<32x128xf32>
      %cst_22 = arith.constant 0.000000e+00 : f32
      %290 = vector.broadcast %cst_22 : f32 to vector<32x128xf32>
      %291 = arith.maximumf %289, %290 : vector<32x128xf32>
      %292 = vector.broadcast %274 : f32 to vector<32x128xf32>
      %293 = arith.mulf %291, %292 : vector<32x128xf32>
      %294 = math.exp %293 : vector<32x128xf32>
      %295 = arith.mulf %291, %294 : vector<32x128xf32>
      %296 = arith.addf %260, %295 : vector<32x128xf32>
      %297 = vector.broadcast %275 : f32 to vector<32x128xf32>
      %298 = arith.mulf %295, %297 : vector<32x128xf32>
      %299 = arith.addf %263, %298 : vector<32x128xf32>
      %300 = vector.broadcast %276 : f32 to vector<32x128xf32>
      %301 = arith.mulf %295, %300 : vector<32x128xf32>
      %302 = arith.addf %266, %301 : vector<32x128xf32>
      %303 = vector.broadcast %277 : f32 to vector<32x128xf32>
      %304 = arith.mulf %295, %303 : vector<32x128xf32>
      %305 = arith.addf %269, %304 : vector<32x128xf32>
      %c64 = arith.constant 64 : index
      %306 = memref.load %arg1[%c64] : memref<160xf32, #tpu.memory_space<smem>>
      %c65 = arith.constant 65 : index
      %307 = memref.load %arg1[%c65] : memref<160xf32, #tpu.memory_space<smem>>
      %308 = arith.subf %307, %13 : f32
      %c66 = arith.constant 66 : index
      %309 = memref.load %arg1[%c66] : memref<160xf32, #tpu.memory_space<smem>>
      %c67 = arith.constant 67 : index
      %310 = memref.load %arg1[%c67] : memref<160xf32, #tpu.memory_space<smem>>
      %c68 = arith.constant 68 : index
      %311 = memref.load %arg1[%c68] : memref<160xf32, #tpu.memory_space<smem>>
      %c69 = arith.constant 69 : index
      %312 = memref.load %arg1[%c69] : memref<160xf32, #tpu.memory_space<smem>>
      %c70 = arith.constant 70 : index
      %313 = memref.load %arg1[%c70] : memref<160xf32, #tpu.memory_space<smem>>
      %314 = vector.broadcast %306 : f32 to vector<32x128xf32>
      %315 = arith.subf %3, %314 : vector<32x128xf32>
      %316 = vector.broadcast %308 : f32 to vector<32x128xf32>
      %317 = arith.subf %5, %316 : vector<32x128xf32>
      %318 = arith.mulf %315, %315 : vector<32x128xf32>
      %319 = arith.mulf %317, %317 : vector<32x128xf32>
      %320 = arith.addf %318, %319 : vector<32x128xf32>
      %321 = math.sqrt %320 : vector<32x128xf32>
      %322 = vector.broadcast %309 : f32 to vector<32x128xf32>
      %323 = arith.mulf %321, %322 : vector<32x128xf32>
      %cst_23 = arith.constant 1.000000e+00 : f32
      %324 = vector.broadcast %cst_23 : f32 to vector<32x128xf32>
      %325 = arith.subf %324, %323 : vector<32x128xf32>
      %cst_24 = arith.constant 0.000000e+00 : f32
      %326 = vector.broadcast %cst_24 : f32 to vector<32x128xf32>
      %327 = arith.maximumf %325, %326 : vector<32x128xf32>
      %328 = vector.broadcast %310 : f32 to vector<32x128xf32>
      %329 = arith.mulf %327, %328 : vector<32x128xf32>
      %330 = math.exp %329 : vector<32x128xf32>
      %331 = arith.mulf %327, %330 : vector<32x128xf32>
      %332 = arith.addf %296, %331 : vector<32x128xf32>
      %333 = vector.broadcast %311 : f32 to vector<32x128xf32>
      %334 = arith.mulf %331, %333 : vector<32x128xf32>
      %335 = arith.addf %299, %334 : vector<32x128xf32>
      %336 = vector.broadcast %312 : f32 to vector<32x128xf32>
      %337 = arith.mulf %331, %336 : vector<32x128xf32>
      %338 = arith.addf %302, %337 : vector<32x128xf32>
      %339 = vector.broadcast %313 : f32 to vector<32x128xf32>
      %340 = arith.mulf %331, %339 : vector<32x128xf32>
      %341 = arith.addf %305, %340 : vector<32x128xf32>
      %c72 = arith.constant 72 : index
      %342 = memref.load %arg1[%c72] : memref<160xf32, #tpu.memory_space<smem>>
      %c73 = arith.constant 73 : index
      %343 = memref.load %arg1[%c73] : memref<160xf32, #tpu.memory_space<smem>>
      %344 = arith.subf %343, %13 : f32
      %c74 = arith.constant 74 : index
      %345 = memref.load %arg1[%c74] : memref<160xf32, #tpu.memory_space<smem>>
      %c75 = arith.constant 75 : index
      %346 = memref.load %arg1[%c75] : memref<160xf32, #tpu.memory_space<smem>>
      %c76 = arith.constant 76 : index
      %347 = memref.load %arg1[%c76] : memref<160xf32, #tpu.memory_space<smem>>
      %c77 = arith.constant 77 : index
      %348 = memref.load %arg1[%c77] : memref<160xf32, #tpu.memory_space<smem>>
      %c78 = arith.constant 78 : index
      %349 = memref.load %arg1[%c78] : memref<160xf32, #tpu.memory_space<smem>>
      %350 = vector.broadcast %342 : f32 to vector<32x128xf32>
      %351 = arith.subf %3, %350 : vector<32x128xf32>
      %352 = vector.broadcast %344 : f32 to vector<32x128xf32>
      %353 = arith.subf %5, %352 : vector<32x128xf32>
      %354 = arith.mulf %351, %351 : vector<32x128xf32>
      %355 = arith.mulf %353, %353 : vector<32x128xf32>
      %356 = arith.addf %354, %355 : vector<32x128xf32>
      %357 = math.sqrt %356 : vector<32x128xf32>
      %358 = vector.broadcast %345 : f32 to vector<32x128xf32>
      %359 = arith.mulf %357, %358 : vector<32x128xf32>
      %cst_25 = arith.constant 1.000000e+00 : f32
      %360 = vector.broadcast %cst_25 : f32 to vector<32x128xf32>
      %361 = arith.subf %360, %359 : vector<32x128xf32>
      %cst_26 = arith.constant 0.000000e+00 : f32
      %362 = vector.broadcast %cst_26 : f32 to vector<32x128xf32>
      %363 = arith.maximumf %361, %362 : vector<32x128xf32>
      %364 = vector.broadcast %346 : f32 to vector<32x128xf32>
      %365 = arith.mulf %363, %364 : vector<32x128xf32>
      %366 = math.exp %365 : vector<32x128xf32>
      %367 = arith.mulf %363, %366 : vector<32x128xf32>
      %368 = arith.addf %332, %367 : vector<32x128xf32>
      %369 = vector.broadcast %347 : f32 to vector<32x128xf32>
      %370 = arith.mulf %367, %369 : vector<32x128xf32>
      %371 = arith.addf %335, %370 : vector<32x128xf32>
      %372 = vector.broadcast %348 : f32 to vector<32x128xf32>
      %373 = arith.mulf %367, %372 : vector<32x128xf32>
      %374 = arith.addf %338, %373 : vector<32x128xf32>
      %375 = vector.broadcast %349 : f32 to vector<32x128xf32>
      %376 = arith.mulf %367, %375 : vector<32x128xf32>
      %377 = arith.addf %341, %376 : vector<32x128xf32>
      %c80 = arith.constant 80 : index
      %378 = memref.load %arg1[%c80] : memref<160xf32, #tpu.memory_space<smem>>
      %c81 = arith.constant 81 : index
      %379 = memref.load %arg1[%c81] : memref<160xf32, #tpu.memory_space<smem>>
      %380 = arith.subf %379, %13 : f32
      %c82 = arith.constant 82 : index
      %381 = memref.load %arg1[%c82] : memref<160xf32, #tpu.memory_space<smem>>
      %c83 = arith.constant 83 : index
      %382 = memref.load %arg1[%c83] : memref<160xf32, #tpu.memory_space<smem>>
      %c84 = arith.constant 84 : index
      %383 = memref.load %arg1[%c84] : memref<160xf32, #tpu.memory_space<smem>>
      %c85 = arith.constant 85 : index
      %384 = memref.load %arg1[%c85] : memref<160xf32, #tpu.memory_space<smem>>
      %c86 = arith.constant 86 : index
      %385 = memref.load %arg1[%c86] : memref<160xf32, #tpu.memory_space<smem>>
      %386 = vector.broadcast %378 : f32 to vector<32x128xf32>
      %387 = arith.subf %3, %386 : vector<32x128xf32>
      %388 = vector.broadcast %380 : f32 to vector<32x128xf32>
      %389 = arith.subf %5, %388 : vector<32x128xf32>
      %390 = arith.mulf %387, %387 : vector<32x128xf32>
      %391 = arith.mulf %389, %389 : vector<32x128xf32>
      %392 = arith.addf %390, %391 : vector<32x128xf32>
      %393 = math.sqrt %392 : vector<32x128xf32>
      %394 = vector.broadcast %381 : f32 to vector<32x128xf32>
      %395 = arith.mulf %393, %394 : vector<32x128xf32>
      %cst_27 = arith.constant 1.000000e+00 : f32
      %396 = vector.broadcast %cst_27 : f32 to vector<32x128xf32>
      %397 = arith.subf %396, %395 : vector<32x128xf32>
      %cst_28 = arith.constant 0.000000e+00 : f32
      %398 = vector.broadcast %cst_28 : f32 to vector<32x128xf32>
      %399 = arith.maximumf %397, %398 : vector<32x128xf32>
      %400 = vector.broadcast %382 : f32 to vector<32x128xf32>
      %401 = arith.mulf %399, %400 : vector<32x128xf32>
      %402 = math.exp %401 : vector<32x128xf32>
      %403 = arith.mulf %399, %402 : vector<32x128xf32>
      %404 = arith.addf %368, %403 : vector<32x128xf32>
      %405 = vector.broadcast %383 : f32 to vector<32x128xf32>
      %406 = arith.mulf %403, %405 : vector<32x128xf32>
      %407 = arith.addf %371, %406 : vector<32x128xf32>
      %408 = vector.broadcast %384 : f32 to vector<32x128xf32>
      %409 = arith.mulf %403, %408 : vector<32x128xf32>
      %410 = arith.addf %374, %409 : vector<32x128xf32>
      %411 = vector.broadcast %385 : f32 to vector<32x128xf32>
      %412 = arith.mulf %403, %411 : vector<32x128xf32>
      %413 = arith.addf %377, %412 : vector<32x128xf32>
      %c88 = arith.constant 88 : index
      %414 = memref.load %arg1[%c88] : memref<160xf32, #tpu.memory_space<smem>>
      %c89 = arith.constant 89 : index
      %415 = memref.load %arg1[%c89] : memref<160xf32, #tpu.memory_space<smem>>
      %416 = arith.subf %415, %13 : f32
      %c90 = arith.constant 90 : index
      %417 = memref.load %arg1[%c90] : memref<160xf32, #tpu.memory_space<smem>>
      %c91 = arith.constant 91 : index
      %418 = memref.load %arg1[%c91] : memref<160xf32, #tpu.memory_space<smem>>
      %c92 = arith.constant 92 : index
      %419 = memref.load %arg1[%c92] : memref<160xf32, #tpu.memory_space<smem>>
      %c93 = arith.constant 93 : index
      %420 = memref.load %arg1[%c93] : memref<160xf32, #tpu.memory_space<smem>>
      %c94 = arith.constant 94 : index
      %421 = memref.load %arg1[%c94] : memref<160xf32, #tpu.memory_space<smem>>
      %422 = vector.broadcast %414 : f32 to vector<32x128xf32>
      %423 = arith.subf %3, %422 : vector<32x128xf32>
      %424 = vector.broadcast %416 : f32 to vector<32x128xf32>
      %425 = arith.subf %5, %424 : vector<32x128xf32>
      %426 = arith.mulf %423, %423 : vector<32x128xf32>
      %427 = arith.mulf %425, %425 : vector<32x128xf32>
      %428 = arith.addf %426, %427 : vector<32x128xf32>
      %429 = math.sqrt %428 : vector<32x128xf32>
      %430 = vector.broadcast %417 : f32 to vector<32x128xf32>
      %431 = arith.mulf %429, %430 : vector<32x128xf32>
      %cst_29 = arith.constant 1.000000e+00 : f32
      %432 = vector.broadcast %cst_29 : f32 to vector<32x128xf32>
      %433 = arith.subf %432, %431 : vector<32x128xf32>
      %cst_30 = arith.constant 0.000000e+00 : f32
      %434 = vector.broadcast %cst_30 : f32 to vector<32x128xf32>
      %435 = arith.maximumf %433, %434 : vector<32x128xf32>
      %436 = vector.broadcast %418 : f32 to vector<32x128xf32>
      %437 = arith.mulf %435, %436 : vector<32x128xf32>
      %438 = math.exp %437 : vector<32x128xf32>
      %439 = arith.mulf %435, %438 : vector<32x128xf32>
      %440 = arith.addf %404, %439 : vector<32x128xf32>
      %441 = vector.broadcast %419 : f32 to vector<32x128xf32>
      %442 = arith.mulf %439, %441 : vector<32x128xf32>
      %443 = arith.addf %407, %442 : vector<32x128xf32>
      %444 = vector.broadcast %420 : f32 to vector<32x128xf32>
      %445 = arith.mulf %439, %444 : vector<32x128xf32>
      %446 = arith.addf %410, %445 : vector<32x128xf32>
      %447 = vector.broadcast %421 : f32 to vector<32x128xf32>
      %448 = arith.mulf %439, %447 : vector<32x128xf32>
      %449 = arith.addf %413, %448 : vector<32x128xf32>
      %c96 = arith.constant 96 : index
      %450 = memref.load %arg1[%c96] : memref<160xf32, #tpu.memory_space<smem>>
      %c97 = arith.constant 97 : index
      %451 = memref.load %arg1[%c97] : memref<160xf32, #tpu.memory_space<smem>>
      %452 = arith.subf %451, %13 : f32
      %c98 = arith.constant 98 : index
      %453 = memref.load %arg1[%c98] : memref<160xf32, #tpu.memory_space<smem>>
      %c99 = arith.constant 99 : index
      %454 = memref.load %arg1[%c99] : memref<160xf32, #tpu.memory_space<smem>>
      %c100 = arith.constant 100 : index
      %455 = memref.load %arg1[%c100] : memref<160xf32, #tpu.memory_space<smem>>
      %c101 = arith.constant 101 : index
      %456 = memref.load %arg1[%c101] : memref<160xf32, #tpu.memory_space<smem>>
      %c102 = arith.constant 102 : index
      %457 = memref.load %arg1[%c102] : memref<160xf32, #tpu.memory_space<smem>>
      %458 = vector.broadcast %450 : f32 to vector<32x128xf32>
      %459 = arith.subf %3, %458 : vector<32x128xf32>
      %460 = vector.broadcast %452 : f32 to vector<32x128xf32>
      %461 = arith.subf %5, %460 : vector<32x128xf32>
      %462 = arith.mulf %459, %459 : vector<32x128xf32>
      %463 = arith.mulf %461, %461 : vector<32x128xf32>
      %464 = arith.addf %462, %463 : vector<32x128xf32>
      %465 = math.sqrt %464 : vector<32x128xf32>
      %466 = vector.broadcast %453 : f32 to vector<32x128xf32>
      %467 = arith.mulf %465, %466 : vector<32x128xf32>
      %cst_31 = arith.constant 1.000000e+00 : f32
      %468 = vector.broadcast %cst_31 : f32 to vector<32x128xf32>
      %469 = arith.subf %468, %467 : vector<32x128xf32>
      %cst_32 = arith.constant 0.000000e+00 : f32
      %470 = vector.broadcast %cst_32 : f32 to vector<32x128xf32>
      %471 = arith.maximumf %469, %470 : vector<32x128xf32>
      %472 = vector.broadcast %454 : f32 to vector<32x128xf32>
      %473 = arith.mulf %471, %472 : vector<32x128xf32>
      %474 = math.exp %473 : vector<32x128xf32>
      %475 = arith.mulf %471, %474 : vector<32x128xf32>
      %476 = arith.addf %440, %475 : vector<32x128xf32>
      %477 = vector.broadcast %455 : f32 to vector<32x128xf32>
      %478 = arith.mulf %475, %477 : vector<32x128xf32>
      %479 = arith.addf %443, %478 : vector<32x128xf32>
      %480 = vector.broadcast %456 : f32 to vector<32x128xf32>
      %481 = arith.mulf %475, %480 : vector<32x128xf32>
      %482 = arith.addf %446, %481 : vector<32x128xf32>
      %483 = vector.broadcast %457 : f32 to vector<32x128xf32>
      %484 = arith.mulf %475, %483 : vector<32x128xf32>
      %485 = arith.addf %449, %484 : vector<32x128xf32>
      %c104 = arith.constant 104 : index
      %486 = memref.load %arg1[%c104] : memref<160xf32, #tpu.memory_space<smem>>
      %c105 = arith.constant 105 : index
      %487 = memref.load %arg1[%c105] : memref<160xf32, #tpu.memory_space<smem>>
      %488 = arith.subf %487, %13 : f32
      %c106 = arith.constant 106 : index
      %489 = memref.load %arg1[%c106] : memref<160xf32, #tpu.memory_space<smem>>
      %c107 = arith.constant 107 : index
      %490 = memref.load %arg1[%c107] : memref<160xf32, #tpu.memory_space<smem>>
      %c108 = arith.constant 108 : index
      %491 = memref.load %arg1[%c108] : memref<160xf32, #tpu.memory_space<smem>>
      %c109 = arith.constant 109 : index
      %492 = memref.load %arg1[%c109] : memref<160xf32, #tpu.memory_space<smem>>
      %c110 = arith.constant 110 : index
      %493 = memref.load %arg1[%c110] : memref<160xf32, #tpu.memory_space<smem>>
      %494 = vector.broadcast %486 : f32 to vector<32x128xf32>
      %495 = arith.subf %3, %494 : vector<32x128xf32>
      %496 = vector.broadcast %488 : f32 to vector<32x128xf32>
      %497 = arith.subf %5, %496 : vector<32x128xf32>
      %498 = arith.mulf %495, %495 : vector<32x128xf32>
      %499 = arith.mulf %497, %497 : vector<32x128xf32>
      %500 = arith.addf %498, %499 : vector<32x128xf32>
      %501 = math.sqrt %500 : vector<32x128xf32>
      %502 = vector.broadcast %489 : f32 to vector<32x128xf32>
      %503 = arith.mulf %501, %502 : vector<32x128xf32>
      %cst_33 = arith.constant 1.000000e+00 : f32
      %504 = vector.broadcast %cst_33 : f32 to vector<32x128xf32>
      %505 = arith.subf %504, %503 : vector<32x128xf32>
      %cst_34 = arith.constant 0.000000e+00 : f32
      %506 = vector.broadcast %cst_34 : f32 to vector<32x128xf32>
      %507 = arith.maximumf %505, %506 : vector<32x128xf32>
      %508 = vector.broadcast %490 : f32 to vector<32x128xf32>
      %509 = arith.mulf %507, %508 : vector<32x128xf32>
      %510 = math.exp %509 : vector<32x128xf32>
      %511 = arith.mulf %507, %510 : vector<32x128xf32>
      %512 = arith.addf %476, %511 : vector<32x128xf32>
      %513 = vector.broadcast %491 : f32 to vector<32x128xf32>
      %514 = arith.mulf %511, %513 : vector<32x128xf32>
      %515 = arith.addf %479, %514 : vector<32x128xf32>
      %516 = vector.broadcast %492 : f32 to vector<32x128xf32>
      %517 = arith.mulf %511, %516 : vector<32x128xf32>
      %518 = arith.addf %482, %517 : vector<32x128xf32>
      %519 = vector.broadcast %493 : f32 to vector<32x128xf32>
      %520 = arith.mulf %511, %519 : vector<32x128xf32>
      %521 = arith.addf %485, %520 : vector<32x128xf32>
      %c112 = arith.constant 112 : index
      %522 = memref.load %arg1[%c112] : memref<160xf32, #tpu.memory_space<smem>>
      %c113 = arith.constant 113 : index
      %523 = memref.load %arg1[%c113] : memref<160xf32, #tpu.memory_space<smem>>
      %524 = arith.subf %523, %13 : f32
      %c114 = arith.constant 114 : index
      %525 = memref.load %arg1[%c114] : memref<160xf32, #tpu.memory_space<smem>>
      %c115 = arith.constant 115 : index
      %526 = memref.load %arg1[%c115] : memref<160xf32, #tpu.memory_space<smem>>
      %c116 = arith.constant 116 : index
      %527 = memref.load %arg1[%c116] : memref<160xf32, #tpu.memory_space<smem>>
      %c117 = arith.constant 117 : index
      %528 = memref.load %arg1[%c117] : memref<160xf32, #tpu.memory_space<smem>>
      %c118 = arith.constant 118 : index
      %529 = memref.load %arg1[%c118] : memref<160xf32, #tpu.memory_space<smem>>
      %530 = vector.broadcast %522 : f32 to vector<32x128xf32>
      %531 = arith.subf %3, %530 : vector<32x128xf32>
      %532 = vector.broadcast %524 : f32 to vector<32x128xf32>
      %533 = arith.subf %5, %532 : vector<32x128xf32>
      %534 = arith.mulf %531, %531 : vector<32x128xf32>
      %535 = arith.mulf %533, %533 : vector<32x128xf32>
      %536 = arith.addf %534, %535 : vector<32x128xf32>
      %537 = math.sqrt %536 : vector<32x128xf32>
      %538 = vector.broadcast %525 : f32 to vector<32x128xf32>
      %539 = arith.mulf %537, %538 : vector<32x128xf32>
      %cst_35 = arith.constant 1.000000e+00 : f32
      %540 = vector.broadcast %cst_35 : f32 to vector<32x128xf32>
      %541 = arith.subf %540, %539 : vector<32x128xf32>
      %cst_36 = arith.constant 0.000000e+00 : f32
      %542 = vector.broadcast %cst_36 : f32 to vector<32x128xf32>
      %543 = arith.maximumf %541, %542 : vector<32x128xf32>
      %544 = vector.broadcast %526 : f32 to vector<32x128xf32>
      %545 = arith.mulf %543, %544 : vector<32x128xf32>
      %546 = math.exp %545 : vector<32x128xf32>
      %547 = arith.mulf %543, %546 : vector<32x128xf32>
      %548 = arith.addf %512, %547 : vector<32x128xf32>
      %549 = vector.broadcast %527 : f32 to vector<32x128xf32>
      %550 = arith.mulf %547, %549 : vector<32x128xf32>
      %551 = arith.addf %515, %550 : vector<32x128xf32>
      %552 = vector.broadcast %528 : f32 to vector<32x128xf32>
      %553 = arith.mulf %547, %552 : vector<32x128xf32>
      %554 = arith.addf %518, %553 : vector<32x128xf32>
      %555 = vector.broadcast %529 : f32 to vector<32x128xf32>
      %556 = arith.mulf %547, %555 : vector<32x128xf32>
      %557 = arith.addf %521, %556 : vector<32x128xf32>
      %c120 = arith.constant 120 : index
      %558 = memref.load %arg1[%c120] : memref<160xf32, #tpu.memory_space<smem>>
      %c121 = arith.constant 121 : index
      %559 = memref.load %arg1[%c121] : memref<160xf32, #tpu.memory_space<smem>>
      %560 = arith.subf %559, %13 : f32
      %c122 = arith.constant 122 : index
      %561 = memref.load %arg1[%c122] : memref<160xf32, #tpu.memory_space<smem>>
      %c123 = arith.constant 123 : index
      %562 = memref.load %arg1[%c123] : memref<160xf32, #tpu.memory_space<smem>>
      %c124 = arith.constant 124 : index
      %563 = memref.load %arg1[%c124] : memref<160xf32, #tpu.memory_space<smem>>
      %c125 = arith.constant 125 : index
      %564 = memref.load %arg1[%c125] : memref<160xf32, #tpu.memory_space<smem>>
      %c126 = arith.constant 126 : index
      %565 = memref.load %arg1[%c126] : memref<160xf32, #tpu.memory_space<smem>>
      %566 = vector.broadcast %558 : f32 to vector<32x128xf32>
      %567 = arith.subf %3, %566 : vector<32x128xf32>
      %568 = vector.broadcast %560 : f32 to vector<32x128xf32>
      %569 = arith.subf %5, %568 : vector<32x128xf32>
      %570 = arith.mulf %567, %567 : vector<32x128xf32>
      %571 = arith.mulf %569, %569 : vector<32x128xf32>
      %572 = arith.addf %570, %571 : vector<32x128xf32>
      %573 = math.sqrt %572 : vector<32x128xf32>
      %574 = vector.broadcast %561 : f32 to vector<32x128xf32>
      %575 = arith.mulf %573, %574 : vector<32x128xf32>
      %cst_37 = arith.constant 1.000000e+00 : f32
      %576 = vector.broadcast %cst_37 : f32 to vector<32x128xf32>
      %577 = arith.subf %576, %575 : vector<32x128xf32>
      %cst_38 = arith.constant 0.000000e+00 : f32
      %578 = vector.broadcast %cst_38 : f32 to vector<32x128xf32>
      %579 = arith.maximumf %577, %578 : vector<32x128xf32>
      %580 = vector.broadcast %562 : f32 to vector<32x128xf32>
      %581 = arith.mulf %579, %580 : vector<32x128xf32>
      %582 = math.exp %581 : vector<32x128xf32>
      %583 = arith.mulf %579, %582 : vector<32x128xf32>
      %584 = arith.addf %548, %583 : vector<32x128xf32>
      %585 = vector.broadcast %563 : f32 to vector<32x128xf32>
      %586 = arith.mulf %583, %585 : vector<32x128xf32>
      %587 = arith.addf %551, %586 : vector<32x128xf32>
      %588 = vector.broadcast %564 : f32 to vector<32x128xf32>
      %589 = arith.mulf %583, %588 : vector<32x128xf32>
      %590 = arith.addf %554, %589 : vector<32x128xf32>
      %591 = vector.broadcast %565 : f32 to vector<32x128xf32>
      %592 = arith.mulf %583, %591 : vector<32x128xf32>
      %593 = arith.addf %557, %592 : vector<32x128xf32>
      %c128 = arith.constant 128 : index
      %594 = memref.load %arg1[%c128] : memref<160xf32, #tpu.memory_space<smem>>
      %c129 = arith.constant 129 : index
      %595 = memref.load %arg1[%c129] : memref<160xf32, #tpu.memory_space<smem>>
      %596 = arith.subf %595, %13 : f32
      %c130 = arith.constant 130 : index
      %597 = memref.load %arg1[%c130] : memref<160xf32, #tpu.memory_space<smem>>
      %c131 = arith.constant 131 : index
      %598 = memref.load %arg1[%c131] : memref<160xf32, #tpu.memory_space<smem>>
      %c132 = arith.constant 132 : index
      %599 = memref.load %arg1[%c132] : memref<160xf32, #tpu.memory_space<smem>>
      %c133 = arith.constant 133 : index
      %600 = memref.load %arg1[%c133] : memref<160xf32, #tpu.memory_space<smem>>
      %c134 = arith.constant 134 : index
      %601 = memref.load %arg1[%c134] : memref<160xf32, #tpu.memory_space<smem>>
      %602 = vector.broadcast %594 : f32 to vector<32x128xf32>
      %603 = arith.subf %3, %602 : vector<32x128xf32>
      %604 = vector.broadcast %596 : f32 to vector<32x128xf32>
      %605 = arith.subf %5, %604 : vector<32x128xf32>
      %606 = arith.mulf %603, %603 : vector<32x128xf32>
      %607 = arith.mulf %605, %605 : vector<32x128xf32>
      %608 = arith.addf %606, %607 : vector<32x128xf32>
      %609 = math.sqrt %608 : vector<32x128xf32>
      %610 = vector.broadcast %597 : f32 to vector<32x128xf32>
      %611 = arith.mulf %609, %610 : vector<32x128xf32>
      %cst_39 = arith.constant 1.000000e+00 : f32
      %612 = vector.broadcast %cst_39 : f32 to vector<32x128xf32>
      %613 = arith.subf %612, %611 : vector<32x128xf32>
      %cst_40 = arith.constant 0.000000e+00 : f32
      %614 = vector.broadcast %cst_40 : f32 to vector<32x128xf32>
      %615 = arith.maximumf %613, %614 : vector<32x128xf32>
      %616 = vector.broadcast %598 : f32 to vector<32x128xf32>
      %617 = arith.mulf %615, %616 : vector<32x128xf32>
      %618 = math.exp %617 : vector<32x128xf32>
      %619 = arith.mulf %615, %618 : vector<32x128xf32>
      %620 = arith.addf %584, %619 : vector<32x128xf32>
      %621 = vector.broadcast %599 : f32 to vector<32x128xf32>
      %622 = arith.mulf %619, %621 : vector<32x128xf32>
      %623 = arith.addf %587, %622 : vector<32x128xf32>
      %624 = vector.broadcast %600 : f32 to vector<32x128xf32>
      %625 = arith.mulf %619, %624 : vector<32x128xf32>
      %626 = arith.addf %590, %625 : vector<32x128xf32>
      %627 = vector.broadcast %601 : f32 to vector<32x128xf32>
      %628 = arith.mulf %619, %627 : vector<32x128xf32>
      %629 = arith.addf %593, %628 : vector<32x128xf32>
      %c136 = arith.constant 136 : index
      %630 = memref.load %arg1[%c136] : memref<160xf32, #tpu.memory_space<smem>>
      %c137 = arith.constant 137 : index
      %631 = memref.load %arg1[%c137] : memref<160xf32, #tpu.memory_space<smem>>
      %632 = arith.subf %631, %13 : f32
      %c138 = arith.constant 138 : index
      %633 = memref.load %arg1[%c138] : memref<160xf32, #tpu.memory_space<smem>>
      %c139 = arith.constant 139 : index
      %634 = memref.load %arg1[%c139] : memref<160xf32, #tpu.memory_space<smem>>
      %c140 = arith.constant 140 : index
      %635 = memref.load %arg1[%c140] : memref<160xf32, #tpu.memory_space<smem>>
      %c141 = arith.constant 141 : index
      %636 = memref.load %arg1[%c141] : memref<160xf32, #tpu.memory_space<smem>>
      %c142 = arith.constant 142 : index
      %637 = memref.load %arg1[%c142] : memref<160xf32, #tpu.memory_space<smem>>
      %638 = vector.broadcast %630 : f32 to vector<32x128xf32>
      %639 = arith.subf %3, %638 : vector<32x128xf32>
      %640 = vector.broadcast %632 : f32 to vector<32x128xf32>
      %641 = arith.subf %5, %640 : vector<32x128xf32>
      %642 = arith.mulf %639, %639 : vector<32x128xf32>
      %643 = arith.mulf %641, %641 : vector<32x128xf32>
      %644 = arith.addf %642, %643 : vector<32x128xf32>
      %645 = math.sqrt %644 : vector<32x128xf32>
      %646 = vector.broadcast %633 : f32 to vector<32x128xf32>
      %647 = arith.mulf %645, %646 : vector<32x128xf32>
      %cst_41 = arith.constant 1.000000e+00 : f32
      %648 = vector.broadcast %cst_41 : f32 to vector<32x128xf32>
      %649 = arith.subf %648, %647 : vector<32x128xf32>
      %cst_42 = arith.constant 0.000000e+00 : f32
      %650 = vector.broadcast %cst_42 : f32 to vector<32x128xf32>
      %651 = arith.maximumf %649, %650 : vector<32x128xf32>
      %652 = vector.broadcast %634 : f32 to vector<32x128xf32>
      %653 = arith.mulf %651, %652 : vector<32x128xf32>
      %654 = math.exp %653 : vector<32x128xf32>
      %655 = arith.mulf %651, %654 : vector<32x128xf32>
      %656 = arith.addf %620, %655 : vector<32x128xf32>
      %657 = vector.broadcast %635 : f32 to vector<32x128xf32>
      %658 = arith.mulf %655, %657 : vector<32x128xf32>
      %659 = arith.addf %623, %658 : vector<32x128xf32>
      %660 = vector.broadcast %636 : f32 to vector<32x128xf32>
      %661 = arith.mulf %655, %660 : vector<32x128xf32>
      %662 = arith.addf %626, %661 : vector<32x128xf32>
      %663 = vector.broadcast %637 : f32 to vector<32x128xf32>
      %664 = arith.mulf %655, %663 : vector<32x128xf32>
      %665 = arith.addf %629, %664 : vector<32x128xf32>
      %c144 = arith.constant 144 : index
      %666 = memref.load %arg1[%c144] : memref<160xf32, #tpu.memory_space<smem>>
      %c145 = arith.constant 145 : index
      %667 = memref.load %arg1[%c145] : memref<160xf32, #tpu.memory_space<smem>>
      %668 = arith.subf %667, %13 : f32
      %c146 = arith.constant 146 : index
      %669 = memref.load %arg1[%c146] : memref<160xf32, #tpu.memory_space<smem>>
      %c147 = arith.constant 147 : index
      %670 = memref.load %arg1[%c147] : memref<160xf32, #tpu.memory_space<smem>>
      %c148 = arith.constant 148 : index
      %671 = memref.load %arg1[%c148] : memref<160xf32, #tpu.memory_space<smem>>
      %c149 = arith.constant 149 : index
      %672 = memref.load %arg1[%c149] : memref<160xf32, #tpu.memory_space<smem>>
      %c150 = arith.constant 150 : index
      %673 = memref.load %arg1[%c150] : memref<160xf32, #tpu.memory_space<smem>>
      %674 = vector.broadcast %666 : f32 to vector<32x128xf32>
      %675 = arith.subf %3, %674 : vector<32x128xf32>
      %676 = vector.broadcast %668 : f32 to vector<32x128xf32>
      %677 = arith.subf %5, %676 : vector<32x128xf32>
      %678 = arith.mulf %675, %675 : vector<32x128xf32>
      %679 = arith.mulf %677, %677 : vector<32x128xf32>
      %680 = arith.addf %678, %679 : vector<32x128xf32>
      %681 = math.sqrt %680 : vector<32x128xf32>
      %682 = vector.broadcast %669 : f32 to vector<32x128xf32>
      %683 = arith.mulf %681, %682 : vector<32x128xf32>
      %cst_43 = arith.constant 1.000000e+00 : f32
      %684 = vector.broadcast %cst_43 : f32 to vector<32x128xf32>
      %685 = arith.subf %684, %683 : vector<32x128xf32>
      %cst_44 = arith.constant 0.000000e+00 : f32
      %686 = vector.broadcast %cst_44 : f32 to vector<32x128xf32>
      %687 = arith.maximumf %685, %686 : vector<32x128xf32>
      %688 = vector.broadcast %670 : f32 to vector<32x128xf32>
      %689 = arith.mulf %687, %688 : vector<32x128xf32>
      %690 = math.exp %689 : vector<32x128xf32>
      %691 = arith.mulf %687, %690 : vector<32x128xf32>
      %692 = arith.addf %656, %691 : vector<32x128xf32>
      %693 = vector.broadcast %671 : f32 to vector<32x128xf32>
      %694 = arith.mulf %691, %693 : vector<32x128xf32>
      %695 = arith.addf %659, %694 : vector<32x128xf32>
      %696 = vector.broadcast %672 : f32 to vector<32x128xf32>
      %697 = arith.mulf %691, %696 : vector<32x128xf32>
      %698 = arith.addf %662, %697 : vector<32x128xf32>
      %699 = vector.broadcast %673 : f32 to vector<32x128xf32>
      %700 = arith.mulf %691, %699 : vector<32x128xf32>
      %701 = arith.addf %665, %700 : vector<32x128xf32>
      %c152 = arith.constant 152 : index
      %702 = memref.load %arg1[%c152] : memref<160xf32, #tpu.memory_space<smem>>
      %c153 = arith.constant 153 : index
      %703 = memref.load %arg1[%c153] : memref<160xf32, #tpu.memory_space<smem>>
      %704 = arith.subf %703, %13 : f32
      %c154 = arith.constant 154 : index
      %705 = memref.load %arg1[%c154] : memref<160xf32, #tpu.memory_space<smem>>
      %c155 = arith.constant 155 : index
      %706 = memref.load %arg1[%c155] : memref<160xf32, #tpu.memory_space<smem>>
      %c156 = arith.constant 156 : index
      %707 = memref.load %arg1[%c156] : memref<160xf32, #tpu.memory_space<smem>>
      %c157 = arith.constant 157 : index
      %708 = memref.load %arg1[%c157] : memref<160xf32, #tpu.memory_space<smem>>
      %c158 = arith.constant 158 : index
      %709 = memref.load %arg1[%c158] : memref<160xf32, #tpu.memory_space<smem>>
      %710 = vector.broadcast %702 : f32 to vector<32x128xf32>
      %711 = arith.subf %3, %710 : vector<32x128xf32>
      %712 = vector.broadcast %704 : f32 to vector<32x128xf32>
      %713 = arith.subf %5, %712 : vector<32x128xf32>
      %714 = arith.mulf %711, %711 : vector<32x128xf32>
      %715 = arith.mulf %713, %713 : vector<32x128xf32>
      %716 = arith.addf %714, %715 : vector<32x128xf32>
      %717 = math.sqrt %716 : vector<32x128xf32>
      %718 = vector.broadcast %705 : f32 to vector<32x128xf32>
      %719 = arith.mulf %717, %718 : vector<32x128xf32>
      %cst_45 = arith.constant 1.000000e+00 : f32
      %720 = vector.broadcast %cst_45 : f32 to vector<32x128xf32>
      %721 = arith.subf %720, %719 : vector<32x128xf32>
      %cst_46 = arith.constant 0.000000e+00 : f32
      %722 = vector.broadcast %cst_46 : f32 to vector<32x128xf32>
      %723 = arith.maximumf %721, %722 : vector<32x128xf32>
      %724 = vector.broadcast %706 : f32 to vector<32x128xf32>
      %725 = arith.mulf %723, %724 : vector<32x128xf32>
      %726 = math.exp %725 : vector<32x128xf32>
      %727 = arith.mulf %723, %726 : vector<32x128xf32>
      %728 = arith.addf %692, %727 : vector<32x128xf32>
      %729 = vector.broadcast %707 : f32 to vector<32x128xf32>
      %730 = arith.mulf %727, %729 : vector<32x128xf32>
      %731 = arith.addf %695, %730 : vector<32x128xf32>
      %732 = vector.broadcast %708 : f32 to vector<32x128xf32>
      %733 = arith.mulf %727, %732 : vector<32x128xf32>
      %734 = arith.addf %698, %733 : vector<32x128xf32>
      %735 = vector.broadcast %709 : f32 to vector<32x128xf32>
      %736 = arith.mulf %727, %735 : vector<32x128xf32>
      %737 = arith.addf %701, %736 : vector<32x128xf32>
      %738 = tpu.reciprocal %728 {approx = true} : vector<32x128xf32> -> vector<32x128xf32>
      %739 = arith.mulf %731, %738 : vector<32x128xf32>
      %c0_47 = arith.constant 0 : index
      %740 = arith.index_cast %10 : i32 to index
      %c0_48 = arith.constant 0 : index
      %741 = vector.load %arg2[%c0_47, %740, %c0_48] : memref<3x128x128xf32, #tpu.memory_space<vmem>>, vector<1x32x128xf32>
      %742 = vector.shape_cast %741 : vector<1x32x128xf32> to vector<32x128xf32>
      %743 = vector.shape_cast %739 : vector<32x128xf32> to vector<1x32x128xf32>
      tpu.vector_store %arg2[%c0_47, %740, %c0_48], %743 {strides = array<i32>} : memref<3x128x128xf32, #tpu.memory_space<vmem>>, vector<1x32x128xf32>,
      %744 = arith.mulf %734, %738 : vector<32x128xf32>
      %c1_49 = arith.constant 1 : index
      %745 = arith.index_cast %10 : i32 to index
      %c0_50 = arith.constant 0 : index
      %746 = vector.load %arg2[%c1_49, %745, %c0_50] : memref<3x128x128xf32, #tpu.memory_space<vmem>>, vector<1x32x128xf32>
      %747 = vector.shape_cast %746 : vector<1x32x128xf32> to vector<32x128xf32>
      %748 = vector.shape_cast %744 : vector<32x128xf32> to vector<1x32x128xf32>
      tpu.vector_store %arg2[%c1_49, %745, %c0_50], %748 {strides = array<i32>} : memref<3x128x128xf32, #tpu.memory_space<vmem>>, vector<1x32x128xf32>,
      %749 = arith.mulf %737, %738 : vector<32x128xf32>
      %c2_51 = arith.constant 2 : index
      %750 = arith.index_cast %10 : i32 to index
      %c0_52 = arith.constant 0 : index
      %751 = vector.load %arg2[%c2_51, %750, %c0_52] : memref<3x128x128xf32, #tpu.memory_space<vmem>>, vector<1x32x128xf32>
      %752 = vector.shape_cast %751 : vector<1x32x128xf32> to vector<32x128xf32>
      %753 = vector.shape_cast %749 : vector<32x128xf32> to vector<1x32x128xf32>
      tpu.vector_store %arg2[%c2_51, %750, %c0_52], %753 {strides = array<i32>} : memref<3x128x128xf32, #tpu.memory_space<vmem>>, vector<1x32x128xf32>,
    }
    %c4_i32_0 = arith.constant 4 : i32
    return
  }
  func.func @transform_0(%arg0: i32) -> i32 {
    %c0_i32 = arith.constant 0 : i32
    %c0_i32_0 = arith.constant 0 : i32
    return %c0_i32 : i32
  }
  func.func @transform_1(%arg0: i32) -> (i32, i32, i32) {
    %c0_i32 = arith.constant 0 : i32
    %c0_i32_0 = arith.constant 0 : i32
    %c0_i32_1 = arith.constant 0 : i32
    return %c0_i32, %arg0, %c0_i32_0 : i32, i32, i32
  }
}

</mosaic_0001>

<bundles_post_ra>
// kernel: scene_model_forward.1
= control target key start
LH: loop header
LB: loop body
LE: loop exit
PB: predicated region body
PF: predicated region fallthrough
CT: control target
= control target key end

     0   :  { %6 = vsyncpa [#allocation4], 0  ;;  %s6184_s0 = inlined_call_operand.vmem [shape: f32[160], index: 0, kind: input, shape index: {}]   ;;  %s6185_s1 = inlined_call_operand.hbm [shape: f32[3,128,128], index: 1, kind: output, shape index: {}]  }
   0x1   :  { %7 = vsyncpa [#allocation3], 0  ;;  %s14_s8 = sshll.u32 %s6184_s0, 4  ;;  %s15_s8 = int_to_ptr.vmem [resolvable:$true] %s14_s8 }
   0x2   :  { %s2858_s9 = scalar_lea.vmem %s15_s8, 32  ;;  %p2863_p1 = scmp.lt.s32.totalorder %s15_s8, %s15_s8 }
   0x3   :  { %p2859_p0 = scmp.ne.s32.totalorder %s15_s8, %s2858_s9  ;;  %p2864_p2 = scmp.lt.s32.totalorder %s2858_s9, %s2858_s9 }
   0x5   :  { %p2865_p3 = por %p2864_p2, %p2863_p1 }
   0x7   :  { %p2866_p4 = pnand %p2865_p3, %p2859_p0 }
   0x9   :  { %2869 = shalt.err (!%p2866_p4)
}
   0xa   :  { %s2904_s10 = smov [#allocation2]  }
   0xb   :  { %17 = dma.vmem_to_smem %s15_s8, 32, %s2904_s10, [#allocation4]  }
   0xc   :  { %2896 = dma.done.wait [#allocation4], 32  }
   0xd   :  { %2897 = vsyncadd [#allocation4], 4294967264 }
   0xe   :  { %21 = sfence }
   0xf   :  { %v24_v0 = vlaneseq  ;;  %s2931_s0 = smov 0  }
  0x11   :  { %v25_v1 = vand.u32 127, %v24_v0  ;;  %v28_v2 = vshrl.u32 %v24_v0, 7 }
  0x13   :  { %v2921_v3 = vcvt.s32.f32 %v25_v1  ;;  %v29_v4 = vadd.s32 8, %v28_v2  ;;  %v30_v5 = vadd.s32 16, %v28_v2  ;;  %v31_v6 = vadd.s32 24, %v28_v2 }
  0x14   :  { %v2923_v7 = vcvt.s32.f32 %v28_v2 }
  0x15   :  { %6208 = vst [vmem:[#allocation8_spill] sm:$0xff] %v2921_v3  ;;  %v2925_v8 = vcvt.s32.f32 %v29_v4  ;;  %v2927_v9 = vcvt.s32.f32 %v30_v5  ;;  %v2929_v10 = vcvt.s32.f32 %v31_v6 }
  0x16   :  { %6209 = vst [vmem:[#allocation9_spill] sm:$0xff] %v2923_v7 }
  0x17   :  { %6210 = vst [vmem:[#allocation10_spill] sm:$0xff] %v2925_v8  ;;  %6211 = vst [vmem:[#allocation11_spill] sm:$0xff] %v2927_v9 }
  0x18 LB: > { %s45_s11 = sld [smem:[#allocation2]]  ;;  %s2369_s12 = sld [smem:[#allocation2 + $0x1]]  ;;  %s2902_s0 = sphi %s2931_s0, %s41_s0  }
  0x19   : > { %s2368_s13 = sshll.u32 %s2902_s0, 5  ;;  %s2376_s16 = sld [smem:[#allocation2 + $0x9]] }
  0x1a   : > { %s2939_s14 = scvt.s32.f32 %s2368_s13  ;;  %s2375_s17 = sld [smem:[#allocation2 + $0x8]] }
  0x1b   : > { %s2383_s19 = sld [smem:[#allocation2 + $0x11]]  ;;  %s2961_s20 = sld [smem:[#allocation2 + $0x10]] }
  0x1c   : > { %v6212_v3 = vld [vmem:[#allocation8_spill] sm:$0xff]  ;;  %s2370_s21 = sld [smem:[#allocation2 + $0x2]]  ;;  %s2993_s24 = sld [smem:[#allocation2 + $0x3]] }
  0x1d   : > { %v6213_v7 = vld [vmem:[#allocation9_spill] sm:$0xff]  ;;  %s2377_s23 = sld [smem:[#allocation2 + $0xa]]  ;;  %s3033_s25 = sld [smem:[#allocation2 + $0x4]] }
  0x1e   : > { %v6214_v8 = vld [vmem:[#allocation10_spill] sm:$0xff]  ;;  %v6215_v9 = vld [vmem:[#allocation11_spill] sm:$0xff]  ;;  %s47_s15 = ssub.f32 %s2369_s12, %s2939_s14  ;;  %v53_v11 = vstv %s45_s11  ;;  %s2378_s26 = sld [smem:[#allocation2 + $0xb]] }
  0x1f   : > { %v54_v13 = vsub.f32 %v6212_v3, %v53_v11  ;;  %s160_s18 = ssub.f32 %s2376_s16, %s2939_s14  ;;  %s3046_s27 = sld [smem:[#allocation2 + $0x5]] }
  0x20   : > { %v55_v12 = vstv %s47_s15  ;;  %v166_v24 = vstv %s2375_s17  ;;  %s3051_s28 = sld [smem:[#allocation2 + $0x6]]  ;;  %s3053_s29 = sld [smem:[#allocation2 + $0xc]] }
  0x21   : > { %v56_v14 = vsub.f32 %v6213_v7, %v55_v12  ;;  %v57_v15 = vsub.f32 %v6214_v8, %v55_v12  ;;  %v58_v16 = vsub.f32 %v6215_v9, %v55_v12  ;;  %v60_v17 = vmul.f32 %v54_v13, %v54_v13  ;;  %s273_s22 = ssub.f32 %s2383_s19, %s2939_s14  ;;  %s3057_s30 = sld [smem:[#allocation2 + $0xd]] }
  0x22   : > { %v59_v19 = vsub.f32 %v2929_v10, %v55_v12  ;;  %v168_v25 = vstv %s160_s18  ;;  %v167_v28 = vsub.f32 %v6212_v3, %v166_v24  ;;  %v279_v50 = vstv %s2961_s20  ;;  %s3061_s2 = sld [smem:[#allocation2 + $0x12]]  ;;  %s3063_s3 = sld [smem:[#allocation2 + $0x19]] }
  0x23   : > { %v61_v18 = vmul.f32 %v56_v14, %v56_v14  ;;  %v62_v20 = vmul.f32 %v57_v15, %v57_v15  ;;  %v63_v21 = vmul.f32 %v58_v16, %v58_v16  ;;  %v169_v29 = vsub.f32 %v6213_v7, %v168_v25  ;;  %s3072_s4 = sld [smem:[#allocation2 + $0x18]]  ;;  %s3100_s6 = sld [smem:[#allocation2 + $0xe]] }
  0x24   : > { %v64_v23 = vmul.f32 %v59_v19, %v59_v19  ;;  %v170_v31 = vsub.f32 %v6214_v8, %v168_v25  ;;  %v171_v32 = vsub.f32 %v6215_v9, %v168_v25  ;;  %v173_v33 = vmul.f32 %v167_v28, %v167_v28  ;;  %s3119_s7 = sld [smem:[#allocation2 + $0x13]]  ;;  %s3147_s8 = sld [smem:[#allocation2 + $0x14]] }
  0x25   : > { %v65_v22 = vadd.f32 %v61_v18, %v60_v17  ;;  %v66_v26 = vadd.f32 %v62_v20, %v60_v17  ;;  %v2948_v27 = vadd.f32 %v63_v21, %v60_v17  ;;  %v174_v34 = vmul.f32 %v169_v29, %v169_v29  ;;  %s3149_s9 = sld [smem:[#allocation2 + $0x15]]  ;;  %s3160_s10 = sld [smem:[#allocation2 + $0x16]] }
  0x26   : > { %v2952_v30 = vadd.f32 %v64_v23, %v60_v17  ;;  %v172_v35 = vsub.f32 %v2929_v10, %v168_v25  ;;  %v175_v36 = vmul.f32 %v170_v31, %v170_v31  ;;  %v176_v37 = vmul.f32 %v171_v32, %v171_v32  ;;  %s3174_s11 = sld [smem:[#allocation2 + $0x21]]  ;;  %s3204_s12 = sld [smem:[#allocation2 + $0x20]] }
  0x27   : > { %2530 = vrsqrt.f32 %v65_v22  ;;  %v2959_v38 = vadd.f32 %v174_v34, %v173_v33  ;;  %vm71_vm0 = vcmp.eq.f32.partialorder %v65_v22, inf  ;;  %v74_v49 = vand.u32 2147483648, %v65_v22  ;;  %s3265_s16 = sld [smem:[#allocation2 + $0x1a]]  ;;  %s3281_s17 = sld [smem:[#allocation2 + $0x29]] }
  0x28   : > { %2532 = vrsqrt.f32 %v66_v26  ;;  %v177_v39 = vmul.f32 %v172_v35, %v172_v35  ;;  %v2963_v41 = vadd.f32 %v175_v36, %v173_v33  ;;  %v2965_v42 = vadd.f32 %v176_v37, %v173_v33  ;;  %s386_s5 = ssub.f32 %s3063_s3, %s2939_s14  ;;  %s3297_s18 = sld [smem:[#allocation2 + $0x28]] }
  0x29   : > { %2534 = vrsqrt.f32 %v2948_v27  ;;  %vm78_vm1 = vcmp.eq.f32.partialorder %v66_v26, inf  ;;  %v281_v51 = vstv %s273_s22  ;;  %vm73_vm2 = vcmp.eq.f32.partialorder %v65_v22, 0.0  ;;  %s3308_s19 = sld [smem:[#allocation2 + $0x1b]]  ;;  %s3313_s20 = sld [smem:[#allocation2 + $0x1c]] }
  0x2a   : > { %2536 = vrsqrt.f32 %v2952_v30  ;;  %v2969_v45 = vadd.f32 %v177_v39, %v173_v33  ;;  %vm80_vm3 = vcmp.eq.f32.partialorder %v66_v26, 0.0  ;;  %v81_v54 = vand.u32 2147483648, %v66_v26  ;;  %s3331_s22 = sld [smem:[#allocation2 + $0x1d]]  ;;  %s3480_s3 = sld [smem:[#allocation2 + $0x30]] }
  0x2b   : > { %2538 = vrsqrt.f32 %v2959_v38  ;;  %vm85_vm4 = vcmp.eq.f32.partialorder %v2948_v27, inf  ;;  %vm92_vm5 = vcmp.eq.f32.partialorder %v2952_v30, inf  ;;  %v280_v57 = vsub.f32 %v6212_v3, %v279_v50  ;;  %s41_s0 = sadd.s32 1, %s2902_s0  }
  0x2c   : > { %2540 = vrsqrt.f32 %v2963_v41  ;;  %v282_v58 = vsub.f32 %v6213_v7, %v281_v51  ;;  %v88_v60 = vand.u32 2147483648, %v2948_v27  ;;  %v97_v61 = vstv %s2370_s21  ;;  %s499_s15 = ssub.f32 %s3174_s11, %s2939_s14  ;;  %s3678_s11 = sld [smem:[#allocation2 + $0x34]] }
  0x2d   : > { %2542 = vrsqrt.f32 %v2965_v42  ;;  %v283_v62 = vsub.f32 %v6214_v8, %v281_v51  ;;  %vm87_vm6 = vcmp.eq.f32.partialorder %v2948_v27, 0.0  ;;  %v95_v0 = vand.u32 2147483648, %v2952_v30  ;;  %s612_s21 = ssub.f32 %s3281_s17, %s2939_s14  ;;  %s3867_s17 = sld [smem:[#allocation2 + $0x41]] }
  0x2e   : > { %2544 = vrsqrt.f32 %v2969_v45  ;;  %vm94_vm7 = vcmp.eq.f32.partialorder %v2952_v30, 0.0  ;;  %v2989_v6 = vstv %s2377_s23  ;;  %v286_v11 = vmul.f32 %v280_v57, %v280_v57  ;;  %s3333_s23 = sld [smem:[#allocation2 + $0x1e]]  ;;  %p38_p5 = scmp.ge.s32.totalorder %s41_s0, 4  }
  0x2f   : > { %v287_v12 = vmul.f32 %v282_v58, %v282_v58  ;;  %v284_v15 = vsub.f32 %v6215_v9, %v281_v51  ;;  %v285_v16 = vsub.f32 %v2929_v10, %v281_v51  ;;  %v288_v17 = vmul.f32 %v283_v62, %v283_v62 }
  0x30   : > { %vm184_vm8 = vcmp.eq.f32.partialorder %v2959_v38, inf  ;;  %vm186_vm9 = vcmp.eq.f32.partialorder %v2959_v38, 0.0  ;;  %vm191_vm10 = vcmp.eq.f32.partialorder %v2963_v41, inf  ;;  %vm193_vm11 = vcmp.eq.f32.partialorder %v2963_v41, 0.0 }
  0x31   : > { %v2531_v40 = vpop.eup %2530  ;;  %v194_v29 = vand.u32 2147483648, %v2963_v41  ;;  %vm198_vm12 = vcmp.eq.f32.partialorder %v2965_v42, inf  ;;  %vm200_vm13 = vcmp.eq.f32.partialorder %v2965_v42, 0.0  ;;  %v289_v33 = vmul.f32 %v284_v15, %v284_v15 }
  0x32   : > { %v2533_v43 = vpop.eup %2532  ;;  %v70_v44 = vmul.f32 %v2531_v40, %v65_v22  ;;  %v201_v34 = vand.u32 2147483648, %v2965_v42  ;;  %vm205_vm14 = vcmp.eq.f32.partialorder %v2969_v45, inf  ;;  %v290_v36 = vmul.f32 %v285_v16, %v285_v16 }
  0x33   : > { %v2535_v46 = vpop.eup %2534  ;;  %v77_v48 = vmul.f32 %v2533_v43, %v66_v26  ;;  %v208_v50 = vand.u32 2147483648, %v2969_v45  ;;  %v3027_v51 = vadd.f32 %v289_v33, %v286_v11  ;;  %vm207_vm15 = vcmp.eq.f32.partialorder %v2969_v45, 0.0 }
  0x34   : > { %v2537_v47 = vpop.eup %2536  ;;  %v72_v52 = vsel %vm71_vm0, %v65_v22, %v70_v44  ;;  %v84_v53 = vmul.f32 %v2535_v46, %v2948_v27  ;;  %v187_v22 = vand.u32 2147483648, %v2959_v38 }
  0x35   : > { %v91_v55 = vmul.f32 %v2537_v47, %v2952_v30  ;;  %v79_v56 = vsel %vm78_vm1, %v66_v26, %v77_v48  ;;  %v75_v59 = vsel %vm73_vm2, %v74_v49, %v72_v52  ;;  %v2539_v1 = vpop.eup %2538  ;;  %v3021_v47 = vadd.f32 %v288_v17, %v286_v11 }
  0x36   : > { %v86_v63 = vsel %vm85_vm4, %v2948_v27, %v84_v53  ;;  %v82_v2 = vsel %vm80_vm3, %v81_v54, %v79_v56  ;;  %v98_v5 = vmul.f32 %v97_v61, %v75_v59  ;;  %v2541_v13 = vpop.eup %2540  ;;  %v183_v21 = vmul.f32 %v2539_v1, %v2959_v38 }
  0x37   : > { %v93_v4 = vsel %vm92_vm5, %v2952_v30, %v91_v55  ;;  %v89_v14 = vsel %vm87_vm6, %v88_v60, %v86_v63  ;;  %v2543_v18 = vpop.eup %2542  ;;  %v99_v20 = vmul.f32 %v97_v61, %v82_v2  ;;  %v190_v26 = vmul.f32 %v2541_v13, %v2963_v41 }
  0x38   : > { %v96_v19 = vsel %vm94_vm7, %v95_v0, %v93_v4  ;;  %v2545_v23 = vpop.eup %2544  ;;  %v100_v24 = vmul.f32 %v97_v61, %v89_v14  ;;  %v102_v25 = vsub.f32 1.0, %v98_v5  ;;  %v3002_v27 = vadd.f32 %v287_v12, %v286_v11 }
  0x39   : > { %v101_v28 = vmul.f32 %v97_v61, %v96_v19  ;;  %v197_v30 = vmul.f32 %v2543_v18, %v2965_v42  ;;  %v103_v31 = vsub.f32 1.0, %v99_v20  ;;  %v185_v32 = vsel %vm184_vm8, %v2959_v38, %v183_v21 }
  0x3a   : > { %v204_v35 = vmul.f32 %v2545_v23, %v2969_v45  ;;  %v104_v37 = vsub.f32 1.0, %v100_v24  ;;  %v3012_v39 = vmax.f32 %v102_v25, 0.0  ;;  %v192_v40 = vsel %vm191_vm10, %v2963_v41, %v190_v26 }
  0x3b   : > { %2546 = vrsqrt.f32 %v3002_v27  ;;  %v105_v43 = vsub.f32 1.0, %v101_v28  ;;  %v188_v44 = vsel %vm186_vm9, %v187_v22, %v185_v32  ;;  %v199_v46 = vsel %vm198_vm12, %v2965_v42, %v197_v30 }
  0x3c   : > { %v3023_v48 = vmax.f32 %v103_v31, 0.0  ;;  %v110_v49 = vstv %s2993_s24  ;;  %v195_v52 = vsel %vm193_vm11, %v194_v29, %v192_v40  ;;  %v206_v53 = vsel %vm205_vm14, %v2969_v45, %v204_v35  ;;  %s3342_s24 = sld [smem:[#allocation2 + $0x22]] }
  0x3d   : > { %v3035_v38 = vmax.f32 %v104_v37, 0.0  ;;  %v202_v54 = vsel %vm200_vm13, %v201_v34, %v199_v46  ;;  %v211_v55 = vmul.f32 %v2989_v6, %v188_v44  ;;  %v3040_v56 = vadd.f32 %v290_v36, %v286_v11 }
  0x3e   : > { %v3042_v57 = vmax.f32 %v105_v43, 0.0  ;;  %v111_v41 = vmul.f32 %v110_v49, %v3012_v39  ;;  %2548 = vrsqrt.f32 %v3021_v47  ;;  %v112_v45 = vmul.f32 %v110_v49, %v3023_v48 }
  0x3f   : > { %v209_v58 = vsel %vm207_vm15, %v208_v50, %v206_v53  ;;  %v212_v59 = vmul.f32 %v2989_v6, %v195_v52  ;;  %2550 = vrsqrt.f32 %v3027_v51  ;;  %v213_v42 = vmul.f32 %v2989_v6, %v202_v54 }
  0x40   : > { %v113_v60 = vmul.f32 %v110_v49, %v3035_v38  ;;  %v215_v61 = vsub.f32 1.0, %v211_v55  ;;  %2552 = vrsqrt.f32 %v3040_v56  ;;  %v115_v62 = vmul.f32 1.442695, %v111_v41 }
  0x41   : > { %v214_v63 = vmul.f32 %v2989_v6, %v209_v58  ;;  %v114_v1 = vmul.f32 %v110_v49, %v3042_v57  ;;  %v117_v2 = vmul.f32 1.442695, %v112_v45  ;;  %v216_v4 = vsub.f32 1.0, %v212_v59 }
  0x42   : > { %v217_v5 = vsub.f32 1.0, %v213_v42  ;;  %v119_v11 = vmul.f32 1.442695, %v113_v60  ;;  %v3067_v12 = vstv %s3033_s25  ;;  %v3069_v13 = vmax.f32 %v215_v61, 0.0  ;;  %s3344_s25 = sld [smem:[#allocation2 + $0x23]] }
  0x43   : > { %2554 = vpow2.f32 %v115_v62  ;;  %v218_v6 = vsub.f32 1.0, %v214_v63  ;;  %v223_v14 = vstv %s2378_s26  ;;  %v121_v16 = vmul.f32 1.442695, %v114_v1  ;;  %s3354_s26 = sld [smem:[#allocation2 + $0x24]] }
  0x44   : > { %2556 = vpow2.f32 %v117_v2  ;;  %v3074_v17 = vmax.f32 %v216_v4, 0.0  ;;  %vm297_vm0 = vcmp.eq.f32.partialorder %v3002_v27, inf  ;;  %v3078_v19 = vstv %s3046_s27  ;;  %s3461_s27 = sld [smem:[#allocation2 + $0x31]] }
  0x45   : > { %v2547_v0 = vpop.eup %2546  ;;  %v3081_v20 = vstv %s3051_s28  ;;  %v3083_v21 = vmax.f32 %v217_v5, 0.0  ;;  %v3086_v22 = vstv %s3053_s29  ;;  %2558 = vpow2.f32 %v119_v11  ;;  %s3463_s28 = sld [smem:[#allocation2 + $0x25]]  ;;  %s3467_s29 = sld [smem:[#allocation2 + $0x26]] }
  0x46   : > { %v296_v15 = vmul.f32 %v2547_v0, %v3002_v27  ;;  %v224_v24 = vmul.f32 %v223_v14, %v3069_v13  ;;  %v3090_v25 = vstv %s3057_s30  ;;  %v300_v26 = vand.u32 2147483648, %v3002_v27  ;;  %s3472_s30 = sld [smem:[#allocation2 + $0x2a]] }
  0x47   : > { %v3093_v28 = vmax.f32 %v218_v6, 0.0  ;;  %vm299_vm1 = vcmp.eq.f32.partialorder %v3002_v27, 0.0  ;;  %v323_v30 = vstv %s3061_s2  ;;  %2560 = vpow2.f32 %v121_v16  ;;  %s3477_s2 = sld [smem:[#allocation2 + $0x2b]] }
  0x48   : > { %v2549_v18 = vpop.eup %2548  ;;  %v298_v29 = vsel %vm297_vm0, %v3002_v27, %v296_v15  ;;  %v225_v32 = vmul.f32 %v223_v14, %v3074_v17  ;;  %vm304_vm2 = vcmp.eq.f32.partialorder %v3021_v47, inf  ;;  %v226_v34 = vmul.f32 %v223_v14, %v3083_v21 }
  0x49   : > { %v2551_v23 = vpop.eup %2550  ;;  %v303_v33 = vmul.f32 %v2549_v18, %v3021_v47  ;;  %vm306_vm3 = vcmp.eq.f32.partialorder %v3021_v47, 0.0  ;;  %v307_v35 = vand.u32 2147483648, %v3021_v47  ;;  %v228_v36 = vmul.f32 1.442695, %v224_v24 }
  0x4a   : > { %v2553_v31 = vpop.eup %2552  ;;  %v310_v27 = vmul.f32 %v2551_v23, %v3027_v51  ;;  %v301_v37 = vsel %vm299_vm1, %v300_v26, %v298_v29  ;;  %vm311_vm4 = vcmp.eq.f32.partialorder %v3027_v51, inf  ;;  %vm313_vm5 = vcmp.eq.f32.partialorder %v3027_v51, 0.0 }
  0x4b   : > { %v227_v40 = vmul.f32 %v223_v14, %v3093_v28  ;;  %v317_v43 = vmul.f32 %v2553_v31, %v3040_v56  ;;  %v392_v44 = vstv %s3072_s4  ;;  %v394_v46 = vstv %s386_s5  ;;  %s3486_s4 = sld [smem:[#allocation2 + $0x2c]]  ;;  %s3499_s5 = sld [smem:[#allocation2 + $0x2d]] }
  0x4c   : > { %v230_v49 = vmul.f32 1.442695, %v225_v32  ;;  %v305_v50 = vsel %vm304_vm2, %v3021_v47, %v303_v33  ;;  %v314_v52 = vand.u32 2147483648, %v3027_v51  ;;  %vm318_vm6 = vcmp.eq.f32.partialorder %v3040_v56, inf }
  0x4d   : > { %v2555_v53 = vpop.eup %2554  ;;  %v232_v54 = vmul.f32 1.442695, %v226_v34  ;;  %v312_v55 = vsel %vm311_vm4, %v3027_v51, %v310_v27  ;;  %vm320_vm7 = vcmp.eq.f32.partialorder %v3040_v56, 0.0  ;;  %v324_v41 = vmul.f32 %v323_v30, %v301_v37 }
  0x4e   : > { %v2557_v45 = vpop.eup %2556  ;;  %2562 = vpow2.f32 %v228_v36  ;;  %v321_v58 = vand.u32 2147483648, %v3040_v56  ;;  %v393_v59 = vsub.f32 %v6212_v3, %v392_v44  ;;  %v395_v42 = vsub.f32 %v6213_v7, %v394_v46 }
  0x4f   : > { %v234_v60 = vmul.f32 1.442695, %v227_v40  ;;  %v308_v61 = vsel %vm306_vm3, %v307_v35, %v305_v50  ;;  %v319_v62 = vsel %vm318_vm6, %v3040_v56, %v317_v43  ;;  %v396_v63 = vsub.f32 %v6214_v8, %v394_v46  ;;  %v2559_v0 = vpop.eup %2558 }
  0x50   : > { %v123_v1 = vmul.f32 %v2555_v53, %v3012_v39  ;;  %2564 = vpow2.f32 %v230_v49  ;;  %v3130_v2 = vstv %s3100_s6  ;;  %v315_v4 = vsel %vm313_vm5, %v314_v52, %v312_v55  ;;  %s725_s6 = ssub.f32 %s3461_s27, %s2939_s14  ;;  %s4037_s27 = sld [smem:[#allocation2 + $0x49]] }
  0x51   : > { %v124_v5 = vmul.f32 %v2557_v45, %v3023_v48  ;;  %2566 = vpow2.f32 %v232_v54  ;;  %v328_v11 = vsub.f32 1.0, %v324_v41  ;;  %v397_v47 = vsub.f32 %v6215_v9, %v394_v46  ;;  %v2561_v6 = vpop.eup %2560 }
  0x52   : > { %v322_v14 = vsel %vm320_vm7, %v321_v58, %v319_v62  ;;  %v325_v15 = vmul.f32 %v323_v30, %v308_v61  ;;  %v399_v16 = vmul.f32 %v393_v59, %v393_v59  ;;  %v400_v18 = vmul.f32 %v395_v42, %v395_v42 }
  0x53   : > { %v125_v39 = vmul.f32 %v2559_v0, %v3035_v38  ;;  %2568 = vpow2.f32 %v234_v60  ;;  %v326_v23 = vmul.f32 %v323_v30, %v315_v4  ;;  %v401_v51 = vmul.f32 %v396_v63, %v396_v63 }
  0x54   : > { %v127_v24 = vadd.f32 1.0, %v123_v1  ;;  %v132_v48 = vmul.f32 %v3067_v12, %v123_v1  ;;  %v3141_v26 = vmul.f32 %v3078_v19, %v123_v1  ;;  %v398_v29 = vsub.f32 %v2929_v10, %v394_v46 }
  0x55   : > { %v126_v56 = vmul.f32 %v2561_v6, %v3042_v57  ;;  %v327_v31 = vmul.f32 %v323_v30, %v322_v14  ;;  %v3145_v32 = vmax.f32 %v328_v11, 0.0  ;;  %v402_v33 = vmul.f32 %v397_v47, %v397_v47 }
  0x56   : > { %v128_v34 = vadd.f32 1.0, %v124_v5  ;;  %v329_v38 = vsub.f32 1.0, %v325_v15  ;;  %v336_v35 = vstv %s3119_s7  ;;  %v3152_v27 = vadd.f32 %v400_v18, %v399_v16  ;;  %s3658_s7 = sld [smem:[#allocation2 + $0x32]] }
  0x57   : > { %v3155_v36 = vmul.f32 %v3067_v12, %v124_v5  ;;  %v3158_v37 = vmul.f32 %v3078_v19, %v124_v5  ;;  %v330_v57 = vsub.f32 1.0, %v326_v23  ;;  %v3162_v30 = vadd.f32 %v401_v51, %v399_v16 }
  0x58   : > { %v2563_v40 = vpop.eup %2562  ;;  %v129_v43 = vadd.f32 1.0, %v125_v39  ;;  %v3165_v44 = vmul.f32 %v3067_v12, %v125_v39  ;;  %v3168_v46 = vmul.f32 %v3078_v19, %v125_v39  ;;  %v403_v49 = vmul.f32 %v398_v29, %v398_v29 }
  0x59   : > { %v150_v50 = vmul.f32 %v3081_v20, %v123_v1  ;;  %v331_v52 = vsub.f32 1.0, %v327_v31  ;;  %v337_v53 = vmul.f32 %v336_v35, %v3145_v32  ;;  %v3172_v54 = vadd.f32 %v402_v33, %v399_v16 }
  0x5a   : > { %v2565_v55 = vpop.eup %2564  ;;  %v130_v41 = vadd.f32 1.0, %v126_v56  ;;  %v3177_v45 = vmul.f32 %v3067_v12, %v126_v56  ;;  %v3179_v58 = vmax.f32 %v329_v38, 0.0  ;;  %2570 = vrsqrt.f32 %v3152_v27 }
  0x5b   : > { %v2567_v59 = vpop.eup %2566  ;;  %v3183_v42 = vmul.f32 %v3078_v19, %v126_v56  ;;  %v236_v60 = vmul.f32 %v2563_v40, %v3069_v13  ;;  %v3186_v61 = vmax.f32 %v330_v57, 0.0  ;;  %2572 = vrsqrt.f32 %v3162_v30 }
  0x5c   : > { %v3190_v62 = vmul.f32 %v3081_v20, %v124_v5  ;;  %v3193_v12 = vmul.f32 %v3081_v20, %v125_v39  ;;  %v3196_v63 = vmul.f32 %v3081_v20, %v126_v56  ;;  %v3198_v19 = vadd.f32 %v403_v49, %v399_v16 }
  0x5d   : > { %v2569_v0 = vpop.eup %2568  ;;  %v245_v13 = vmul.f32 %v3086_v22, %v236_v60  ;;  %v3201_v1 = vmax.f32 %v331_v52, 0.0  ;;  %v341_v4 = vmul.f32 1.442695, %v337_v53  ;;  %2574 = vrsqrt.f32 %v3172_v54 }
  0x5e   : > { %v254_v5 = vmul.f32 %v3090_v25, %v236_v60  ;;  %v338_v11 = vmul.f32 %v336_v35, %v3179_v58  ;;  %v3209_v20 = vstv %s3147_s8  ;;  %v3212_v47 = vstv %s3149_s9  ;;  %s3660_s8 = sld [smem:[#allocation2 + $0x39]]  ;;  %s3667_s9 = sld [smem:[#allocation2 + $0x2e]] }
  0x5f   : > { %v237_v6 = vmul.f32 %v2565_v55, %v3074_v17  ;;  %v263_v14 = vmul.f32 %v3130_v2, %v236_v60  ;;  %v339_v15 = vmul.f32 %v336_v35, %v3186_v61  ;;  %v3218_v16 = vstv %s3160_s10  ;;  %s3672_s10 = sld [smem:[#allocation2 + $0x33]] }
  0x60   : > { %v238_v18 = vmul.f32 %v2567_v59, %v3083_v21  ;;  %v3222_v39 = vmul.f32 %v2569_v0, %v3093_v28  ;;  %v3224_v23 = vadd.f32 %v236_v60, %v127_v24  ;;  %2576 = vrsqrt.f32 %v3198_v19 }
  0x61   : > { %v246_v51 = vmul.f32 %v3086_v22, %v237_v6  ;;  %v3228_v29 = vadd.f32 %v245_v13, %v132_v48  ;;  %v340_v17 = vmul.f32 %v336_v35, %v3201_v1  ;;  %2578 = vpow2.f32 %v341_v4 }
  0x62   : > { %v247_v56 = vmul.f32 %v3086_v22, %v238_v18  ;;  %v255_v21 = vmul.f32 %v3090_v25, %v237_v6  ;;  %v3236_v28 = vadd.f32 %v254_v5, %v3141_v26  ;;  %v343_v24 = vmul.f32 1.442695, %v338_v11 }
  0x63   : > { %v3238_v31 = vadd.f32 %v237_v6, %v128_v34  ;;  %v256_v33 = vmul.f32 %v3090_v25, %v238_v18  ;;  %v3241_v38 = vadd.f32 %v263_v14, %v150_v50  ;;  %v345_v48 = vmul.f32 1.442695, %v339_v15 }
  0x64   : > { %v2571_v57 = vpop.eup %2570  ;;  %v3243_v35 = vadd.f32 %v238_v18, %v129_v43  ;;  %v3246_v40 = vadd.f32 %v3222_v39, %v130_v41  ;;  %v248_v49 = vmul.f32 %v3086_v22, %v3222_v39  ;;  %v3251_v26 = vmul.f32 %v3130_v2, %v237_v6 }
  0x65   : > { %v2573_v52 = vpop.eup %2572  ;;  %v3254_v34 = vadd.f32 %v246_v51, %v3155_v36  ;;  %v347_v53 = vmul.f32 1.442695, %v340_v17  ;;  %v505_v50 = vstv %s3204_s12  ;;  %v507_v55 = vstv %s499_s15  ;;  %s3680_s12 = sld [smem:[#allocation2 + $0x35]]  ;;  %s3695_s15 = sld [smem:[#allocation2 + $0x38]] }
  0x66   : > { %v3258_v59 = vadd.f32 %v247_v56, %v3165_v44  ;;  %v257_v43 = vmul.f32 %v3090_v25, %v3222_v39  ;;  %v3263_v41 = vadd.f32 %v255_v21, %v3158_v37  ;;  %2580 = vpow2.f32 %v343_v24 }
  0x67   : > { %v2575_v22 = vpop.eup %2574  ;;  %v3268_v60 = vadd.f32 %v256_v33, %v3168_v46  ;;  %v265_v36 = vmul.f32 %v3130_v2, %v238_v18  ;;  %2582 = vpow2.f32 %v345_v48  ;;  %v409_v0 = vmul.f32 %v2571_v57, %v3152_v27 }
  0x68   : > { %vm410_vm8 = vcmp.eq.f32.partialorder %v3152_v27, inf  ;;  %v416_v44 = vmul.f32 %v2573_v52, %v3162_v30  ;;  %v506_v25 = vsub.f32 %v6212_v3, %v505_v50  ;;  %v508_v37 = vsub.f32 %v6213_v7, %v507_v55 }
  0x69   : > { %v3277_v13 = vadd.f32 %v248_v49, %v3177_v45  ;;  %2584 = vpow2.f32 %v347_v53  ;;  %vm412_vm9 = vcmp.eq.f32.partialorder %v3152_v27, 0.0  ;;  %vm417_vm10 = vcmp.eq.f32.partialorder %v3162_v30, inf }
  0x6a   : > { %v2577_v46 = vpop.eup %2576  ;;  %v413_v4 = vand.u32 2147483648, %v3152_v27  ;;  %vm419_vm11 = vcmp.eq.f32.partialorder %v3162_v30, 0.0  ;;  %v423_v5 = vmul.f32 %v2575_v22, %v3172_v54  ;;  %v509_v11 = vsub.f32 %v6214_v8, %v507_v55 }
  0x6b   : > { %v2579_v6 = vpop.eup %2578  ;;  %v411_v45 = vsel %vm410_vm8, %v3152_v27, %v409_v0  ;;  %v420_v14 = vand.u32 2147483648, %v3162_v30  ;;  %vm424_vm12 = vcmp.eq.f32.partialorder %v3172_v54, inf  ;;  %v510_v15 = vsub.f32 %v6215_v9, %v507_v55 }
  0x6c   : > { %v418_v18 = vsel %vm417_vm10, %v3162_v30, %v416_v44  ;;  %vm426_vm13 = vcmp.eq.f32.partialorder %v3172_v54, 0.0  ;;  %v512_v51 = vmul.f32 %v506_v25, %v506_v25  ;;  %v513_v17 = vmul.f32 %v508_v37, %v508_v37 }
  0x6d   : > { %v427_v56 = vand.u32 2147483648, %v3172_v54  ;;  %v430_v21 = vmul.f32 %v2577_v46, %v3198_v19  ;;  %vm431_vm14 = vcmp.eq.f32.partialorder %v3198_v19, inf  ;;  %v511_v24 = vsub.f32 %v2929_v10, %v507_v55 }
  0x6e   : > { %v414_v33 = vsel %vm412_vm9, %v413_v4, %v411_v45  ;;  %v425_v48 = vsel %vm424_vm12, %v3172_v54, %v423_v5  ;;  %v436_v57 = vstv %s3265_s16  ;;  %v514_v49 = vmul.f32 %v509_v11, %v509_v11  ;;  %s838_s16 = ssub.f32 %s3660_s8, %s2939_s14  ;;  %s4210_s8 = sld [smem:[#allocation2 + $0x50]] }
  0x6f   : > { %v3304_v52 = vadd.f32 %v257_v43, %v3183_v42  ;;  %v266_v53 = vmul.f32 %v3130_v2, %v3222_v39  ;;  %v421_v50 = vsel %vm419_vm11, %v420_v14, %v418_v18  ;;  %v515_v55 = vmul.f32 %v510_v15, %v510_v15 }
  0x70   : > { %v2581_v27 = vpop.eup %2580  ;;  %v349_v22 = vmul.f32 %v2579_v6, %v3145_v32  ;;  %vm433_vm15 = vcmp.eq.f32.partialorder %v3198_v19, 0.0  ;;  %v434_v42 = vand.u32 2147483648, %v3198_v19  ;;  %v3317_v43 = vadd.f32 %v513_v17, %v512_v51 }
  0x71   : > { %v2583_v0 = vpop.eup %2582  ;;  %v428_v2 = vsel %vm426_vm13, %v427_v56, %v425_v48  ;;  %v432_v30 = vsel %vm431_vm14, %v3198_v19, %v430_v21  ;;  %v437_v39 = vmul.f32 %v436_v57, %v414_v33  ;;  %v516_v44 = vmul.f32 %v511_v24, %v511_v24 }
  0x72   : > { %v3328_v32 = vadd.f32 %v3251_v26, %v3190_v62  ;;  %v358_v25 = vmul.f32 %v3209_v20, %v349_v22  ;;  %v438_v37 = vmul.f32 %v436_v57, %v421_v50  ;;  %v3335_v54 = vadd.f32 %v514_v49, %v512_v51 }
  0x73   : > { %v2585_v46 = vpop.eup %2584  ;;  %v3338_v4 = vadd.f32 %v265_v36, %v3193_v12  ;;  %v367_v5 = vmul.f32 %v3212_v47, %v349_v22  ;;  %v376_v11 = vmul.f32 %v3218_v16, %v349_v22  ;;  %v3346_v62 = vadd.f32 %v515_v55, %v512_v51 }
  0x74   : > { %v3349_v26 = vadd.f32 %v266_v53, %v3196_v63  ;;  %v435_v6 = vsel %vm433_vm15, %v434_v42, %v432_v30  ;;  %v439_v45 = vmul.f32 %v436_v57, %v428_v2  ;;  %2586 = vrsqrt.f32 %v3317_v43 }
  0x75   : > { %v441_v12 = vsub.f32 1.0, %v437_v39  ;;  %v3356_v36 = vadd.f32 %v516_v44, %v512_v51  ;;  %v618_v14 = vstv %s3297_s18  ;;  %v3359_v15 = vstv %s612_s21  ;;  %s3874_s18 = sld [smem:[#allocation2 + $0x36]]  ;;  %s3935_s21 = sld [smem:[#allocation2 + $0x3a]] }
  0x76   : > { %v3362_v18 = vadd.f32 %v349_v22, %v3224_v23  ;;  %v3365_v63 = vadd.f32 %v358_v25, %v3228_v29  ;;  %v442_v19 = vsub.f32 1.0, %v438_v37  ;;  %2588 = vrsqrt.f32 %v3335_v54 }
  0x77   : > { %v3369_v17 = vadd.f32 %v367_v5, %v3236_v28  ;;  %v3372_v51 = vadd.f32 %v376_v11, %v3241_v38  ;;  %v449_v56 = vstv %s3308_s19  ;;  %2590 = vrsqrt.f32 %v3346_v62  ;;  %s3890_s19 = sld [smem:[#allocation2 + $0x40]] }
  0x78   : > { %v440_v23 = vmul.f32 %v436_v57, %v435_v6  ;;  %v3377_v21 = vstv %s3313_s20  ;;  %v619_v29 = vsub.f32 %v6212_v3, %v618_v14  ;;  %v621_v24 = vsub.f32 %v6213_v7, %v3359_v15  ;;  %s951_s20 = ssub.f32 %s3867_s17, %s2939_s14  ;;  %s4347_s17 = sld [smem:[#allocation2 + $0x58]] }
  0x79   : > { %v350_v33 = vmul.f32 %v2581_v27, %v3179_v58  ;;  %v443_v28 = vsub.f32 1.0, %v439_v45  ;;  %v3383_v48 = vmax.f32 %v441_v12, 0.0  ;;  %2592 = vrsqrt.f32 %v3356_v36 }
  0x7a   : > { %v351_v38 = vmul.f32 %v2583_v0, %v3186_v61  ;;  %v3387_v49 = vmax.f32 %v442_v19, 0.0  ;;  %v3390_v57 = vstv %s3331_s22  ;;  %v3393_v53 = vstv %s3333_s23  ;;  %s3991_s22 = sld [smem:[#allocation2 + $0x3b]]  ;;  %s4014_s23 = sld [smem:[#allocation2 + $0x3c]] }
  0x7b   : > { %v3396_v50 = vmul.f32 %v2585_v46, %v3201_v1  ;;  %v3399_v55 = vstv %s3342_s24  ;;  %v3402_v58 = vstv %s3344_s25  ;;  %v622_v27 = vsub.f32 %v6214_v8, %v3359_v15  ;;  %s4017_s24 = sld [smem:[#allocation2 + $0x42]]  ;;  %s4028_s25 = sld [smem:[#allocation2 + $0x3d]] }
  0x7c   : > { %v359_v22 = vmul.f32 %v3209_v20, %v350_v33  ;;  %v444_v42 = vsub.f32 1.0, %v440_v23  ;;  %v3407_v61 = vmul.f32 %v619_v29, %v619_v29  ;;  %v626_v0 = vmul.f32 %v621_v24, %v621_v24 }
  0x7d   : > { %v3410_v2 = vadd.f32 %v350_v33, %v3238_v31  ;;  %v3412_v30 = vmax.f32 %v443_v28, 0.0  ;;  %v450_v1 = vmul.f32 %v449_v56, %v3383_v48  ;;  %v3416_v39 = vstv %s3354_s26  ;;  %s4030_s26 = sld [smem:[#allocation2 + $0x3e]] }
  0x7e   : > { %v2587_v44 = vpop.eup %2586  ;;  %v3419_v25 = vadd.f32 %v351_v38, %v3243_v35  ;;  %v360_v37 = vmul.f32 %v3209_v20, %v351_v38  ;;  %v368_v46 = vmul.f32 %v3212_v47, %v350_v33  ;;  %v451_v5 = vmul.f32 %v449_v56, %v3387_v49 }
  0x7f   : > { %v3426_v31 = vadd.f32 %v3396_v50, %v3246_v40  ;;  %v369_v11 = vmul.f32 %v3212_v47, %v351_v38  ;;  %v3430_v6 = vmul.f32 %v3218_v16, %v350_v33  ;;  %v627_v45 = vmul.f32 %v622_v27, %v622_v27 }
  0x80   : > { %v2589_v12 = vpop.eup %2588  ;;  %v361_v35 = vmul.f32 %v3209_v20, %v3396_v50  ;;  %v3435_v14 = vadd.f32 %v359_v22, %v3254_v34  ;;  %v3437_v19 = vmax.f32 %v444_v42, 0.0  ;;  %v3440_v23 = vadd.f32 %v626_v0, %v3407_v61 }
  0x81   : > { %v2591_v40 = vpop.eup %2590  ;;  %v370_v29 = vmul.f32 %v3212_v47, %v3396_v50  ;;  %v452_v24 = vmul.f32 %v449_v56, %v3412_v30  ;;  %v454_v33 = vmul.f32 1.442695, %v450_v1  ;;  %v522_v28 = vmul.f32 %v2587_v44, %v3317_v43 }
  0x82   : > { %v3447_v27 = vadd.f32 %v360_v37, %v3258_v59  ;;  %v378_v20 = vmul.f32 %v3218_v16, %v351_v38  ;;  %v456_v34 = vmul.f32 1.442695, %v451_v5  ;;  %vm523_vm0 = vcmp.eq.f32.partialorder %v3317_v43, inf }
  0x83   : > { %v2593_v22 = vpop.eup %2592  ;;  %vm525_vm1 = vcmp.eq.f32.partialorder %v3317_v43, 0.0  ;;  %v526_v42 = vand.u32 2147483648, %v3317_v43  ;;  %v529_v47 = vmul.f32 %v2589_v12, %v3335_v54  ;;  %v3455_v0 = vadd.f32 %v627_v45, %v3407_v61 }
  0x84   : > { %v453_v1 = vmul.f32 %v449_v56, %v3437_v19  ;;  %vm530_vm2 = vcmp.eq.f32.partialorder %v3335_v54, inf  ;;  %v536_v59 = vmul.f32 %v2591_v40, %v3346_v62  ;;  %2594 = vrsqrt.f32 %v3440_v23 }
  0x85   : > { %2596 = vpow2.f32 %v454_v33  ;;  %v458_v38 = vmul.f32 1.442695, %v452_v24  ;;  %v524_v44 = vsel %vm523_vm0, %v3317_v43, %v522_v28  ;;  %vm537_vm3 = vcmp.eq.f32.partialorder %v3346_v62, inf }
  0x86   : > { %2598 = vpow2.f32 %v456_v34  ;;  %vm532_vm4 = vcmp.eq.f32.partialorder %v3335_v54, 0.0  ;;  %v533_v56 = vand.u32 2147483648, %v3335_v54  ;;  %v543_v37 = vmul.f32 %v2593_v22, %v3356_v36 }
  0x87   : > { %v531_v5 = vsel %vm530_vm2, %v3335_v54, %v529_v47  ;;  %v540_v45 = vand.u32 2147483648, %v3346_v62  ;;  %vm544_vm5 = vcmp.eq.f32.partialorder %v3356_v36, inf  ;;  %2600 = vrsqrt.f32 %v3455_v0 }
  0x88   : > { %v460_v12 = vmul.f32 1.442695, %v453_v1  ;;  %v527_v40 = vsel %vm525_vm1, %v526_v42, %v524_v44  ;;  %v538_v24 = vsel %vm537_vm3, %v3346_v62, %v536_v59  ;;  %vm539_vm6 = vcmp.eq.f32.partialorder %v3346_v62, 0.0 }
  0x89   : > { %2602 = vpow2.f32 %v458_v38  ;;  %v547_v33 = vand.u32 2147483648, %v3356_v36  ;;  %v623_v28 = vsub.f32 %v6215_v9, %v3359_v15  ;;  %v624_v34 = vsub.f32 %v2929_v10, %v3359_v15 }
  0x8a   : > { %v379_v43 = vmul.f32 %v3218_v16, %v3396_v50  ;;  %v534_v22 = vsel %vm532_vm4, %v533_v56, %v531_v5  ;;  %v545_v62 = vsel %vm544_vm5, %v3356_v36, %v543_v37  ;;  %vm546_vm7 = vcmp.eq.f32.partialorder %v3356_v36, 0.0 }
  0x8b   : > { %v3502_v42 = vadd.f32 %v368_v46, %v3263_v41  ;;  %v3505_v47 = vadd.f32 %v369_v11, %v3268_v60  ;;  %v541_v15 = vsel %vm539_vm6, %v540_v45, %v538_v24  ;;  %v550_v1 = vmul.f32 %v3399_v55, %v527_v40 }
  0x8c   : > { %v3509_v16 = vadd.f32 %v361_v35, %v3277_v13  ;;  %v3512_v54 = vadd.f32 %v370_v29, %v3304_v52  ;;  %v3516_v36 = vadd.f32 %v3430_v6, %v3328_v32  ;;  %2604 = vpow2.f32 %v460_v12 }
  0x8d   : > { %v548_v41 = vsel %vm546_vm7, %v547_v33, %v545_v62  ;;  %v551_v60 = vmul.f32 %v3399_v55, %v534_v22  ;;  %v628_v50 = vmul.f32 %v623_v28, %v623_v28  ;;  %v629_v13 = vmul.f32 %v624_v34, %v624_v34 }
  0x8e   : > { %v2595_v46 = vpop.eup %2594  ;;  %v3522_v11 = vadd.f32 %v378_v20, %v3338_v4  ;;  %v3525_v52 = vadd.f32 %v379_v43, %v3349_v26  ;;  %v552_v32 = vmul.f32 %v3399_v55, %v541_v15  ;;  %v3529_v6 = vstv %s3463_s28  ;;  %s4071_s28 = sld [smem:[#allocation2 + $0x48]] }
  0x8f   : > { %v2597_v35 = vpop.eup %2596  ;;  %v554_v29 = vsub.f32 1.0, %v550_v1  ;;  %v3532_v59 = vstv %s3467_s29  ;;  %v3535_v38 = vstv %s3472_s30  ;;  %v3538_v44 = vstv %s3477_s2  ;;  %s1064_s29 = ssub.f32 %s4037_s27, %s2939_s14  ;;  %s4152_s30 = sld [smem:[#allocation2 + $0x43]] }
  0x90   : > { %6216 = vst [vmem:[#allocation12_spill] sm:$0xff] %v3532_v59  ;;  %v2599_v56 = vpop.eup %2598  ;;  %v553_v4 = vmul.f32 %v3399_v55, %v548_v41  ;;  %v3542_v20 = vstv %s3486_s4  ;;  %v731_v26 = vstv %s3480_s3  ;;  %v3545_v37 = vstv %s725_s6  ;;  %s4160_s2 = sld [smem:[#allocation2 + $0x44]]  ;;  %s4162_s3 = sld [smem:[#allocation2 + $0x45]] }
  0x91   : > { %6217 = vst [vmem:[#allocation13_spill] sm:$0xff] %v3542_v20  ;;  %v2601_v5 = vpop.eup %2600  ;;  %v555_v45 = vsub.f32 1.0, %v551_v60  ;;  %v3548_v12 = vadd.f32 %v628_v50, %v3407_v61  ;;  %v3551_v40 = vadd.f32 %v629_v13, %v3407_v61  ;;  %v635_v24 = vmul.f32 %v2595_v46, %v3440_v23  ;;  %s4165_s4 = sld [smem:[#allocation2 + $0x46]]  ;;  %s4183_s6 = sld [smem:[#allocation2 + $0x4b]] }
  0x92   : > { %v3555_v33 = vmul.f32 %v2597_v35, %v3383_v48  ;;  %v556_v28 = vsub.f32 1.0, %v552_v32  ;;  %vm636_vm8 = vcmp.eq.f32.partialorder %v3440_v23, inf  ;;  %v3559_v55 = vstv %s3499_s5  ;;  %s4178_s5 = sld [smem:[#allocation2 + $0x4a]] }
  0x93   : > { %6218 = vst [vmem:[#allocation14_spill] sm:$0xff] %v3559_v55  ;;  %v2603_v34 = vpop.eup %2602  ;;  %v3561_v43 = vmax.f32 %v554_v29, 0.0  ;;  %vm638_vm9 = vcmp.eq.f32.partialorder %v3440_v23, 0.0  ;;  %v732_v22 = vsub.f32 %v6212_v3, %v731_v26  ;;  %v734_v61 = vsub.f32 %v6213_v7, %v3545_v37 }
  0x94   : > { %v3568_v62 = vmul.f32 %v2599_v56, %v3387_v49  ;;  %v557_v48 = vsub.f32 1.0, %v553_v4  ;;  %v639_v15 = vand.u32 2147483648, %v3440_v23  ;;  %v642_v1 = vmul.f32 %v2601_v5, %v3455_v0 }
  0x95   : > { %v3572_v41 = vmax.f32 %v555_v45, 0.0  ;;  %v637_v60 = vsel %vm636_vm8, %v3440_v23, %v635_v24  ;;  %vm643_vm10 = vcmp.eq.f32.partialorder %v3455_v0, inf  ;;  %2606 = vrsqrt.f32 %v3548_v12 }
  0x96   : > { %v2605_v50 = vpop.eup %2604  ;;  %v3578_v13 = vmul.f32 %v2603_v34, %v3412_v30  ;;  %v3582_v49 = vadd.f32 %v3555_v33, %v3362_v18  ;;  %v471_v46 = vmul.f32 %v3377_v21, %v3555_v33  ;;  %v3586_v32 = vmax.f32 %v556_v28, 0.0 }
  0x97   : > { %v563_v35 = vmul.f32 %v3402_v58, %v3561_v43  ;;  %v646_v29 = vand.u32 2147483648, %v3455_v0  ;;  %v3591_v56 = vmul.f32 %v732_v22, %v732_v22  ;;  %v739_v4 = vmul.f32 %v734_v61, %v734_v61 }
  0x98   : > { %v3593_v26 = vmax.f32 %v557_v48, 0.0  ;;  %v640_v30 = vsel %vm638_vm9, %v639_v15, %v637_v60  ;;  %v644_v18 = vsel %vm643_vm10, %v3455_v0, %v642_v1  ;;  %vm645_vm11 = vcmp.eq.f32.partialorder %v3455_v0, 0.0 }
  0x99   : > { %v465_v5 = vmul.f32 %v2605_v50, %v3437_v19  ;;  %v480_v45 = vmul.f32 %v3390_v57, %v3555_v33  ;;  %v564_v24 = vmul.f32 %v3402_v58, %v3572_v41  ;;  %2608 = vrsqrt.f32 %v3551_v40 }
  0x9a   : > { %v3607_v28 = vadd.f32 %v3568_v62, %v3410_v2  ;;  %v472_v23 = vmul.f32 %v3377_v21, %v3568_v62  ;;  %v481_v0 = vmul.f32 %v3390_v57, %v3568_v62  ;;  %v565_v19 = vmul.f32 %v3402_v58, %v3586_v32 }
  0x9b   : > { %v3617_v34 = vadd.f32 %v3578_v13, %v3419_v25  ;;  %v647_v22 = vsel %vm645_vm11, %v646_v29, %v644_v18  ;;  %v663_v61 = vmul.f32 %v3535_v38, %v640_v30  ;;  %v3621_v48 = vadd.f32 %v739_v4, %v3591_v56 }
  0x9c   : > { %v473_v2 = vmul.f32 %v3377_v21, %v3578_v13  ;;  %v566_v15 = vmul.f32 %v3402_v58, %v3593_v26  ;;  %v567_v1 = vmul.f32 1.442695, %v563_v35  ;;  %v735_v60 = vsub.f32 %v6214_v8, %v3545_v37 }
  0x9d   : > { %v3630_v50 = vadd.f32 %v471_v46, %v3365_v63  ;;  %v482_v25 = vmul.f32 %v3390_v57, %v3578_v13  ;;  %v569_v29 = vmul.f32 1.442695, %v564_v24  ;;  %v736_v4 = vsub.f32 %v6215_v9, %v3545_v37 }
  0x9e   : > { %v3637_v30 = vadd.f32 %v465_v5, %v3426_v31  ;;  %v474_v18 = vmul.f32 %v3377_v21, %v465_v5  ;;  %v571_v58 = vmul.f32 1.442695, %v565_v19  ;;  %v664_v35 = vmul.f32 %v3535_v38, %v647_v22 }
  0x9f   : > { %v2607_v55 = vpop.eup %2606  ;;  %v3642_v20 = vadd.f32 %v472_v23, %v3435_v14  ;;  %v483_v63 = vmul.f32 %v3390_v57, %v465_v5  ;;  %v667_v46 = vsub.f32 1.0, %v663_v61  ;;  %2610 = vrsqrt.f32 %v3621_v48 }
  0xa0   : > { %v3647_v24 = vadd.f32 %v473_v2, %v3447_v27  ;;  %2612 = vpow2.f32 %v567_v1  ;;  %v573_v31 = vmul.f32 1.442695, %v566_v15  ;;  %v740_v59 = vmul.f32 %v735_v60, %v735_v60 }
  0xa1   : > { %v3650_v21 = vadd.f32 %v480_v45, %v3369_v17  ;;  %2614 = vpow2.f32 %v569_v29  ;;  %v737_v19 = vsub.f32 %v2929_v10, %v3545_v37  ;;  %v741_v14 = vmul.f32 %v736_v4, %v736_v4 }
  0xa2   : > { %v3655_v23 = vadd.f32 %v481_v0, %v3502_v42  ;;  %2616 = vpow2.f32 %v571_v58  ;;  %v649_v57 = vmul.f32 %v2607_v55, %v3548_v12  ;;  %v668_v22 = vsub.f32 1.0, %v664_v35 }
  0xa3   : > { %v2609_v27 = vpop.eup %2608  ;;  %v3663_v17 = vadd.f32 %v482_v25, %v3505_v47  ;;  %v489_v45 = vmul.f32 %v3393_v53, %v3555_v33  ;;  %vm650_vm12 = vcmp.eq.f32.partialorder %v3548_v12, inf  ;;  %v3670_v42 = vmax.f32 %v667_v46, 0.0 }
  0xa4   : > { %v490_v37 = vmul.f32 %v3393_v53, %v3568_v62  ;;  %v491_v55 = vmul.f32 %v3393_v53, %v3578_v13  ;;  %2618 = vpow2.f32 %v573_v31  ;;  %v3683_v47 = vadd.f32 %v740_v59, %v3591_v56 }
  0xa5   : > { %v492_v33 = vmul.f32 %v3393_v53, %v465_v5  ;;  %v653_v0 = vand.u32 2147483648, %v3548_v12  ;;  %v742_v61 = vmul.f32 %v737_v19, %v737_v19  ;;  %v3688_v2 = vadd.f32 %v741_v14, %v3591_v56 }
  0xa6   : > { %v651_v62 = vsel %vm650_vm12, %v3548_v12, %v649_v57  ;;  %vm652_vm13 = vcmp.eq.f32.partialorder %v3548_v12, 0.0  ;;  %v656_v13 = vmul.f32 %v2609_v27, %v3551_v40  ;;  %v3693_v15 = vmax.f32 %v668_v22, 0.0 }
  0xa7   : > { %v3698_v59 = vadd.f32 %v474_v18, %v3509_v16  ;;  %v3701_v53 = vadd.f32 %v483_v63, %v3512_v54  ;;  %vm657_vm14 = vcmp.eq.f32.partialorder %v3551_v40, inf  ;;  %v676_v5 = vmul.f32 %v3538_v44, %v3670_v42 }
  0xa8   : > { %v3707_v12 = vadd.f32 %v489_v45, %v3372_v51  ;;  %v3710_v1 = vadd.f32 %v490_v37, %v3516_v36  ;;  %v3713_v16 = vadd.f32 %v491_v55, %v3522_v11  ;;  %2620 = vrsqrt.f32 %v3683_v47 }
  0xa9   : > { %v2611_v54 = vpop.eup %2610  ;;  %v654_v60 = vsel %vm652_vm13, %v653_v0, %v651_v62  ;;  %v660_v25 = vand.u32 2147483648, %v3551_v40  ;;  %v3718_v29 = vadd.f32 %v742_v61, %v3591_v56  ;;  %2622 = vrsqrt.f32 %v3688_v2 }
  0xaa   : > { %v2613_v51 = vpop.eup %2612  ;;  %v3722_v36 = vadd.f32 %v492_v33, %v3525_v52  ;;  %v658_v11 = vsel %vm657_vm14, %v3551_v40, %v656_v13  ;;  %vm659_vm15 = vcmp.eq.f32.partialorder %v3551_v40, 0.0  ;;  %v677_v4 = vmul.f32 %v3538_v44, %v3693_v15 }
  0xab   : > { %v2615_v18 = vpop.eup %2614  ;;  %v680_v58 = vmul.f32 1.442695, %v676_v5  ;;  %v3731_v56 = vstv %s3667_s9  ;;  %v3734_v35 = vstv %s3658_s7  ;;  %v3737_v63 = vstv %s3672_s10  ;;  %s4187_s7 = sld [smem:[#allocation2 + $0x51]] }
  0xac   : > { %v2617_v46 = vpop.eup %2616  ;;  %v665_v52 = vmul.f32 %v3535_v38, %v654_v60  ;;  %v748_v31 = vmul.f32 %v2611_v54, %v3621_v48  ;;  %v3742_v19 = vstv %s3678_s11  ;;  %v3745_v40 = vstv %s3680_s12  ;;  %s4318_s10 = sld [smem:[#allocation2 + $0x59]]  ;;  %s4323_s11 = sld [smem:[#allocation2 + $0x4c]] }
  0xad   : > { %6219 = vst [vmem:[#allocation15_spill] sm:$0xff] %v3742_v19  ;;  %6220 = vst [vmem:[#allocation16_spill] sm:$0xff] %v3745_v40  ;;  %v3748_v14 = vmul.f32 %v2613_v51, %v3561_v43  ;;  %v661_v57 = vsel %vm659_vm15, %v660_v25, %v658_v11  ;;  %vm749_vm0 = vcmp.eq.f32.partialorder %v3621_v48, inf  ;;  %2624 = vrsqrt.f32 %v3718_v29  ;;  %s4328_s12 = sld [smem:[#allocation2 + $0x52]] }
  0xae   : > { %v2619_v22 = vpop.eup %2618  ;;  %v3753_v27 = vmul.f32 %v2615_v18, %v3572_v41  ;;  %v682_v45 = vmul.f32 1.442695, %v677_v4  ;;  %v844_v37 = vstv %s3695_s15  ;;  %v3756_v55 = vstv %s838_s16  ;;  %s4332_s15 = sld [smem:[#allocation2 + $0x4d]]  ;;  %s4334_s16 = sld [smem:[#allocation2 + $0x4e]] }
  0xaf   : > { %v3759_v33 = vmul.f32 %v2617_v46, %v3586_v32  ;;  %2626 = vpow2.f32 %v680_v58  ;;  %vm751_vm1 = vcmp.eq.f32.partialorder %v3621_v48, 0.0  ;;  %v752_v43 = vand.u32 2147483648, %v3621_v48 }
  0xb0   : > { %v584_v0 = vmul.f32 %v3416_v39, %v3748_v14  ;;  %v666_v61 = vmul.f32 %v3535_v38, %v661_v57  ;;  %v669_v62 = vsub.f32 1.0, %v665_v52  ;;  %v750_v41 = vsel %vm749_vm0, %v3621_v48, %v748_v31 }
  0xb1   : > { %v3768_v13 = vmul.f32 %v2619_v22, %v3593_v26  ;;  %v3772_v32 = vadd.f32 %v3748_v14, %v3582_v49  ;;  %v845_v5 = vsub.f32 %v6212_v3, %v844_v37  ;;  %v847_v54 = vsub.f32 %v6213_v7, %v3756_v55  ;;  %s1177_s9 = ssub.f32 %s4187_s7, %s2939_s14  ;;  %s4854_s7 = sld [smem:[#allocation2 + $0x63]] }
  0xb2   : > { %v2621_v60 = vpop.eup %2620  ;;  %v3779_v25 = vadd.f32 %v3753_v27, %v3607_v28  ;;  %v585_v38 = vmul.f32 %v3416_v39, %v3753_v27  ;;  %v593_v26 = vmul.f32 %v3529_v6, %v3748_v14  ;;  %v848_v49 = vsub.f32 %v6214_v8, %v3756_v55 }
  0xb3   : > { %v2623_v51 = vpop.eup %2622  ;;  %v3789_v11 = vadd.f32 %v3759_v33, %v3617_v34  ;;  %v586_v4 = vmul.f32 %v3416_v39, %v3759_v33  ;;  %v594_v28 = vmul.f32 %v3529_v6, %v3753_v27  ;;  %v753_v18 = vsel %vm751_vm1, %v752_v43, %v750_v41 }
  0xb4   : > { %v3798_v58 = vadd.f32 %v584_v0, %v3630_v50  ;;  %v595_v46 = vmul.f32 %v3529_v6, %v3759_v33  ;;  %v670_v52 = vsub.f32 1.0, %v666_v61  ;;  %v3802_v31 = vmax.f32 %v669_v62, 0.0 }
  0xb5   : > { %v3806_v34 = vadd.f32 %v3768_v13, %v3637_v30  ;;  %v755_v57 = vmul.f32 %v2621_v60, %v3683_v47  ;;  %v3809_v22 = vmul.f32 %v845_v5, %v845_v5  ;;  %v852_v37 = vmul.f32 %v847_v54, %v847_v54 }
  0xb6   : > { %vm756_vm2 = vcmp.eq.f32.partialorder %v3683_v47, inf  ;;  %v762_v48 = vmul.f32 %v2623_v51, %v3688_v2  ;;  %v776_v50 = vmul.f32 %v3734_v35, %v753_v18  ;;  %v853_v43 = vmul.f32 %v848_v49, %v848_v49 }
  0xb7   : > { %v2625_v0 = vpop.eup %2624  ;;  %v587_v61 = vmul.f32 %v3416_v39, %v3768_v13  ;;  %2628 = vpow2.f32 %v682_v45  ;;  %vm758_vm3 = vcmp.eq.f32.partialorder %v3683_v47, 0.0  ;;  %vm763_vm4 = vcmp.eq.f32.partialorder %v3688_v2, inf }
  0xb8   : > { %v3818_v30 = vmax.f32 %v670_v52, 0.0  ;;  %v678_v62 = vmul.f32 %v3538_v44, %v3802_v31  ;;  %v759_v41 = vand.u32 2147483648, %v3683_v47  ;;  %vm765_vm5 = vcmp.eq.f32.partialorder %v3688_v2, 0.0 }
  0xb9   : > { %v2627_v5 = vpop.eup %2626  ;;  %v757_v54 = vsel %vm756_vm2, %v3683_v47, %v755_v57  ;;  %v766_v60 = vand.u32 2147483648, %v3688_v2  ;;  %v849_v39 = vsub.f32 %v6215_v9, %v3756_v55  ;;  %v3829_v45 = vadd.f32 %v852_v37, %v3809_v22 }
  0xba   : > { %v764_v49 = vsel %vm763_vm4, %v3688_v2, %v762_v48  ;;  %v769_v51 = vmul.f32 %v2625_v0, %v3718_v29  ;;  %v780_v18 = vsub.f32 1.0, %v776_v50  ;;  %v3834_v52 = vadd.f32 %v853_v43, %v3809_v22  ;;  %v6221_v2 = vld [vmem:[#allocation12_spill] sm:$0xff] }
  0xbb   : > { %v3837_v40 = vadd.f32 %v585_v38, %v3642_v20  ;;  %v3840_v57 = vadd.f32 %v586_v4, %v3647_v24  ;;  %v596_v19 = vmul.f32 %v3529_v6, %v3768_v13  ;;  %vm770_vm6 = vcmp.eq.f32.partialorder %v3718_v29, inf }
  0xbc   : > { %v679_v37 = vmul.f32 %v3538_v44, %v3818_v30  ;;  %v684_v48 = vmul.f32 1.442695, %v678_v62  ;;  %v760_v50 = vsel %vm758_vm3, %v759_v41, %v757_v54  ;;  %v773_v43 = vand.u32 2147483648, %v3718_v29 }
  0xbd   : > { %v767_v20 = vsel %vm765_vm5, %v766_v60, %v764_v49  ;;  %v850_v24 = vsub.f32 %v2929_v10, %v3756_v55  ;;  %v854_v38 = vmul.f32 %v849_v39, %v849_v39  ;;  %2630 = vrsqrt.f32 %v3829_v45  ;;  %v6223_v49 = vld [vmem:[#allocation14_spill] sm:$0xff] }
  0xbe   : > { %v771_v6 = vsel %vm770_vm6, %v3718_v29, %v769_v51  ;;  %vm772_vm7 = vcmp.eq.f32.partialorder %v3718_v29, 0.0  ;;  %v3857_v44 = vmax.f32 %v780_v18, 0.0  ;;  %2632 = vrsqrt.f32 %v3834_v52 }
  0xbf   : > { %v597_v47 = vadd.f32 %v593_v26, %v3650_v21  ;;  %v3862_v4 = vadd.f32 %v594_v28, %v3655_v23  ;;  %v602_v0 = vmul.f32 %v6221_v2, %v3748_v14  ;;  %v777_v55 = vmul.f32 %v3734_v35, %v760_v50 }
  0xc0   : > { %v3870_v62 = vadd.f32 %v595_v46, %v3663_v17  ;;  %2634 = vpow2.f32 %v684_v48  ;;  %v686_v29 = vmul.f32 1.442695, %v679_v37  ;;  %v778_v41 = vmul.f32 %v3734_v35, %v767_v20 }
  0xc1   : > { %v2629_v54 = vpop.eup %2628  ;;  %v688_v21 = vmul.f32 %v2627_v5, %v3670_v42  ;;  %v774_v23 = vsel %vm772_vm7, %v773_v43, %v771_v6  ;;  %v855_v26 = vmul.f32 %v850_v24, %v850_v24  ;;  %v3877_v14 = vadd.f32 %v854_v38, %v3809_v22  ;;  %v6222_v5 = vld [vmem:[#allocation13_spill] sm:$0xff] }
  0xc2   : > { %v603_v28 = vmul.f32 %v6221_v2, %v3753_v27  ;;  %v604_v17 = vmul.f32 %v6221_v2, %v3759_v33  ;;  %v605_v46 = vmul.f32 %v6221_v2, %v3768_v13  ;;  %v789_v60 = vmul.f32 %v3737_v63, %v3857_v44 }
  0xc3   : > { %v606_v42 = vadd.f32 %v602_v0, %v3707_v12  ;;  %v697_v39 = vmul.f32 %v6222_v5, %v688_v21  ;;  %v706_v51 = vmul.f32 %v6223_v49, %v688_v21  ;;  %v781_v18 = vsub.f32 1.0, %v777_v55 }
  0xc4   : > { %2636 = vpow2.f32 %v686_v29  ;;  %v715_v27 = vmul.f32 %v3731_v56, %v688_v21  ;;  %v779_v33 = vmul.f32 %v3734_v35, %v774_v23  ;;  %v782_v13 = vsub.f32 1.0, %v778_v41 }
  0xc5   : > { %v3895_v37 = vadd.f32 %v587_v61, %v3698_v59  ;;  %v689_v12 = vmul.f32 %v2629_v54, %v3693_v15  ;;  %v3899_v48 = vadd.f32 %v855_v26, %v3809_v22  ;;  %2638 = vrsqrt.f32 %v3877_v14 }
  0xc6   : > { %v3903_v50 = vadd.f32 %v596_v19, %v3701_v53  ;;  %v607_v43 = vadd.f32 %v603_v28, %v3710_v1  ;;  %v3907_v20 = vadd.f32 %v604_v17, %v3713_v16  ;;  %v793_v35 = vmul.f32 1.442695, %v789_v60 }
  0xc7   : > { %v2631_v24 = vpop.eup %2630  ;;  %v3910_v59 = vadd.f32 %v605_v46, %v3722_v36  ;;  %v3913_v15 = vadd.f32 %v688_v21, %v3772_v32  ;;  %v3916_v22 = vadd.f32 %v697_v39, %v3798_v58  ;;  %v3918_v61 = vmax.f32 %v781_v18, 0.0 }
  0xc8   : > { %v2633_v53 = vpop.eup %2632  ;;  %v3922_v1 = vadd.f32 %v706_v51, %v597_v47  ;;  %v3924_v16 = vadd.f32 %v715_v27, %v606_v42  ;;  %v783_v19 = vsub.f32 1.0, %v779_v33  ;;  %v3926_v38 = vmax.f32 %v782_v13, 0.0 }
  0xc9   : > { %v3929_v36 = vadd.f32 %v689_v12, %v3779_v25  ;;  %v698_v32 = vmul.f32 %v6222_v5, %v689_v12  ;;  %v3933_v6 = vstv %s3874_s18  ;;  %2640 = vrsqrt.f32 %v3899_v48  ;;  %s4352_s18 = sld [smem:[#allocation2 + $0x53]] }
  0xca   : > { %v2635_v58 = vpop.eup %2634  ;;  %v707_v47 = vmul.f32 %v6223_v49, %v689_v12  ;;  %2642 = vpow2.f32 %v793_v35  ;;  %v861_v2 = vmul.f32 %v2631_v24, %v3829_v45  ;;  %vm862_vm8 = vcmp.eq.f32.partialorder %v3829_v45, inf }
  0xcb   : > { %v790_v25 = vmul.f32 %v3737_v63, %v3918_v61  ;;  %v868_v0 = vmul.f32 %v2633_v53, %v3834_v52  ;;  %v957_v55 = vstv %s3890_s19  ;;  %v959_v29 = vstv %s951_s20  ;;  %s4354_s19 = sld [smem:[#allocation2 + $0x54]]  ;;  %s4364_s20 = sld [smem:[#allocation2 + $0x55]] }
  0xcc   : > { %v716_v41 = vmul.f32 %v3731_v56, %v689_v12  ;;  %v3946_v54 = vmax.f32 %v783_v19, 0.0  ;;  %v791_v21 = vmul.f32 %v3737_v63, %v3926_v38  ;;  %vm869_vm9 = vcmp.eq.f32.partialorder %v3834_v52, inf }
  0xcd   : > { %v690_v23 = vmul.f32 %v2635_v58, %v3802_v31  ;;  %v3953_v26 = vadd.f32 %v698_v32, %v3837_v40  ;;  %vm864_vm10 = vcmp.eq.f32.partialorder %v3829_v45, 0.0  ;;  %v865_v28 = vand.u32 2147483648, %v3829_v45 }
  0xce   : > { %v2637_v17 = vpop.eup %2636  ;;  %v863_v46 = vsel %vm862_vm8, %v3829_v45, %v861_v2  ;;  %v872_v60 = vand.u32 2147483648, %v3834_v52  ;;  %v958_v42 = vsub.f32 %v6212_v3, %v957_v55  ;;  %v960_v39 = vsub.f32 %v6213_v7, %v959_v29 }
  0xcf   : > { %v2639_v51 = vpop.eup %2638  ;;  %v3962_v31 = vadd.f32 %v707_v47, %v3862_v4  ;;  %v795_v40 = vmul.f32 1.442695, %v790_v25  ;;  %v870_v18 = vsel %vm869_vm9, %v3834_v52, %v868_v0  ;;  %vm871_vm11 = vcmp.eq.f32.partialorder %v3834_v52, 0.0 }
  0xd0   : > { %v3966_v27 = vadd.f32 %v716_v41, %v607_v43  ;;  %v792_v33 = vmul.f32 %v3737_v63, %v3946_v54  ;;  %v797_v13 = vmul.f32 1.442695, %v791_v21  ;;  %v961_v12 = vsub.f32 %v6214_v8, %v959_v29 }
  0xd1   : > { %v691_v35 = vmul.f32 %v2637_v17, %v3818_v30  ;;  %v3973_v24 = vadd.f32 %v690_v23, %v3789_v11  ;;  %v866_v4 = vsel %vm864_vm10, %v865_v28, %v863_v46  ;;  %v3978_v53 = vstv %s3935_s21  ;;  %s4366_s21 = sld [smem:[#allocation2 + $0x56]] }
  0xd2   : > { %v873_v19 = vsel %vm871_vm11, %v872_v60, %v870_v18  ;;  %v875_v52 = vmul.f32 %v2639_v51, %v3877_v14  ;;  %v3981_v43 = vmul.f32 %v958_v42, %v958_v42  ;;  %v965_v32 = vmul.f32 %v960_v39, %v960_v39 }
  0xd3   : > { %v2641_v63 = vpop.eup %2640  ;;  %v699_v58 = vmul.f32 %v6222_v5, %v690_v23  ;;  %v708_v47 = vmul.f32 %v6223_v49, %v690_v23  ;;  %2644 = vpow2.f32 %v795_v40  ;;  %vm876_vm12 = vcmp.eq.f32.partialorder %v3877_v14, inf }
  0xd4   : > { %v2643_v11 = vpop.eup %2642  ;;  %v717_v30 = vmul.f32 %v3731_v56, %v690_v23  ;;  %2646 = vpow2.f32 %v797_v13  ;;  %v799_v45 = vmul.f32 1.442695, %v792_v33  ;;  %v966_v2 = vmul.f32 %v961_v12, %v961_v12  ;;  %v6224_v13 = vld [vmem:[#allocation15_spill] sm:$0xff] }
  0xd5   : > { %vm878_vm13 = vcmp.eq.f32.partialorder %v3877_v14, 0.0  ;;  %v879_v25 = vand.u32 2147483648, %v3877_v14  ;;  %v889_v0 = vmul.f32 %v3978_v53, %v866_v4  ;;  %v890_v55 = vmul.f32 %v3978_v53, %v873_v19 }
  0xd6   : > { %v877_v41 = vsel %vm876_vm12, %v3877_v14, %v875_v52  ;;  %v882_v21 = vmul.f32 %v2641_v63, %v3899_v48  ;;  %v962_v28 = vsub.f32 %v6215_v9, %v959_v29  ;;  %v3997_v23 = vadd.f32 %v965_v32, %v3981_v43 }
  0xd7   : > { %v4000_v17 = vadd.f32 %v691_v35, %v3806_v34  ;;  %v700_v46 = vmul.f32 %v6222_v5, %v691_v35  ;;  %v709_v60 = vmul.f32 %v6223_v49, %v691_v35  ;;  %vm883_vm14 = vcmp.eq.f32.partialorder %v3899_v48, inf }
  0xd8   : > { %2648 = vpow2.f32 %v799_v45  ;;  %v801_v42 = vmul.f32 %v2643_v11, %v3857_v44  ;;  %v963_v39 = vsub.f32 %v2929_v10, %v959_v29  ;;  %v4008_v51 = vadd.f32 %v966_v2, %v3981_v43 }
  0xd9   : > { %v880_v40 = vsel %vm878_vm13, %v879_v25, %v877_v41  ;;  %vm885_vm15 = vcmp.eq.f32.partialorder %v3899_v48, 0.0  ;;  %v886_v34 = vand.u32 2147483648, %v3899_v48  ;;  %v893_v5 = vsub.f32 1.0, %v889_v0 }
  0xda   : > { %v884_v49 = vsel %vm883_vm14, %v3899_v48, %v882_v21  ;;  %v894_v18 = vsub.f32 1.0, %v890_v55  ;;  %v967_v44 = vmul.f32 %v962_v28, %v962_v28  ;;  %2650 = vrsqrt.f32 %v3997_v23 }
  0xdb   : > { %v4021_v29 = vadd.f32 %v699_v58, %v3840_v57  ;;  %v4024_v14 = vadd.f32 %v708_v47, %v3870_v62  ;;  %v718_v33 = vmul.f32 %v3731_v56, %v691_v35  ;;  %v810_v12 = vmul.f32 %v6224_v13, %v801_v42  ;;  %v6225_v62 = vld [vmem:[#allocation16_spill] sm:$0xff] }
  0xdc   : > { %v4033_v4 = vadd.f32 %v717_v30, %v3907_v20  ;;  %v891_v19 = vmul.f32 %v3978_v53, %v880_v40  ;;  %v968_v52 = vmul.f32 %v963_v39, %v963_v39  ;;  %2652 = vrsqrt.f32 %v4008_v51 }
  0xdd   : > { %v2645_v57 = vpop.eup %2644  ;;  %v819_v56 = vmul.f32 %v6225_v62, %v801_v42  ;;  %v828_v35 = vmul.f32 %v3933_v6, %v801_v42  ;;  %v887_v32 = vsel %vm885_vm15, %v886_v34, %v884_v49  ;;  %v4043_v63 = vmax.f32 %v893_v5, 0.0 }
  0xde   : > { %v2647_v58 = vpop.eup %2646  ;;  %v4046_v20 = vadd.f32 %v700_v46, %v3895_v37  ;;  %v4048_v47 = vmax.f32 %v894_v18, 0.0  ;;  %v901_v11 = vstv %s3991_s22  ;;  %v4052_v30 = vadd.f32 %v967_v44, %v3981_v43  ;;  %s1290_s22 = ssub.f32 %s4318_s10, %s2939_s14  ;;  %s4873_s10 = sld [smem:[#allocation2 + $0x6a]] }
  0xdf   : > { %v4055_v45 = vadd.f32 %v709_v60, %v3903_v50  ;;  %v4058_v2 = vadd.f32 %v718_v33, %v3910_v59  ;;  %v4061_v48 = vadd.f32 %v801_v42, %v3913_v15  ;;  %v4064_v25 = vadd.f32 %v810_v12, %v3916_v22 }
  0xe0   : > { %v802_v37 = vmul.f32 %v2645_v57, %v3918_v61  ;;  %v892_v0 = vmul.f32 %v3978_v53, %v887_v32  ;;  %v895_v55 = vsub.f32 1.0, %v891_v19  ;;  %v4069_v50 = vadd.f32 %v968_v52, %v3981_v43 }
  0xe1   : > { %v803_v59 = vmul.f32 %v2647_v58, %v3926_v38  ;;  %v4075_v15 = vadd.f32 %v819_v56, %v3922_v1  ;;  %v4078_v22 = vadd.f32 %v828_v35, %v3924_v16  ;;  %v902_v61 = vmul.f32 %v901_v11, %v4043_v63 }
  0xe2   : > { %v2649_v53 = vpop.eup %2648  ;;  %v811_v41 = vmul.f32 %v6224_v13, %v802_v37  ;;  %v903_v43 = vmul.f32 %v901_v11, %v4048_v47  ;;  %v4084_v21 = vstv %s4014_s23  ;;  %2654 = vrsqrt.f32 %v4052_v30  ;;  %s4535_s23 = sld [smem:[#allocation2 + $0x5a]] }
  0xe3   : > { %v820_v38 = vmul.f32 %v6225_v62, %v802_v37  ;;  %v4089_v1 = vstv %s4028_s25  ;;  %v4092_v28 = vstv %s4030_s26  ;;  %v4095_v16 = vstv %s4017_s24  ;;  %s4537_s24 = sld [smem:[#allocation2 + $0x5b]]  ;;  %s4564_s25 = sld [smem:[#allocation2 + $0x61]] }
  0xe4   : > { %v2651_v46 = vpop.eup %2650  ;;  %v4098_v60 = vadd.f32 %v802_v37, %v3929_v36  ;;  %v896_v42 = vsub.f32 1.0, %v892_v0  ;;  %v4100_v39 = vmax.f32 %v895_v55, 0.0  ;;  %2656 = vrsqrt.f32 %v4069_v50  ;;  %s4604_s26 = sld [smem:[#allocation2 + $0x60]] }
  0xe5   : > { %v804_v40 = vmul.f32 %v2649_v53, %v3946_v54  ;;  %v4107_v34 = vadd.f32 %v803_v59, %v3973_v24  ;;  %v829_v5 = vmul.f32 %v3933_v6, %v802_v37  ;;  %v906_v49 = vmul.f32 1.442695, %v902_v61 }
  0xe6   : > { %v2653_v18 = vpop.eup %2652  ;;  %v812_v44 = vmul.f32 %v6224_v13, %v803_v59  ;;  %v4112_v36 = vadd.f32 %v811_v41, %v3953_v26  ;;  %v821_v33 = vmul.f32 %v6225_v62, %v803_v59  ;;  %v908_v12 = vmul.f32 1.442695, %v903_v43 }
  0xe7   : > { %v4116_v19 = vadd.f32 %v820_v38, %v3962_v31  ;;  %v830_v54 = vmul.f32 %v3933_v6, %v803_v59  ;;  %v974_v24 = vmul.f32 %v2651_v46, %v3997_v23  ;;  %vm975_vm0 = vcmp.eq.f32.partialorder %v3997_v23, inf }
  0xe8   : > { %v4121_v52 = vmax.f32 %v896_v42, 0.0  ;;  %v904_v57 = vmul.f32 %v901_v11, %v4100_v39  ;;  %v1070_v56 = vstv %s4071_s28  ;;  %v1072_v35 = vstv %s1064_s29  ;;  %s4696_s28 = sld [smem:[#allocation2 + $0x5c]]  ;;  %s4698_s29 = sld [smem:[#allocation2 + $0x5d]] }
  0xe9   : > { %v4126_v26 = vadd.f32 %v804_v40, %v4000_v17  ;;  %v4129_v32 = vadd.f32 %v829_v5, %v3966_v27  ;;  %2658 = vpow2.f32 %v906_v49  ;;  %v981_v31 = vmul.f32 %v2653_v18, %v4008_v51  ;;  %s1403_s27 = ssub.f32 %s4564_s25, %s2939_s14  ;;  %s5082_s25 = sld [smem:[#allocation2 + $0x78]] }
  0xea   : > { %v813_v58 = vmul.f32 %v6224_v13, %v804_v40  ;;  %2660 = vpow2.f32 %v908_v12  ;;  %v978_v37 = vand.u32 2147483648, %v3997_v23  ;;  %vm982_vm1 = vcmp.eq.f32.partialorder %v4008_v51, inf }
  0xeb   : > { %v976_v0 = vsel %vm975_vm0, %v3997_v23, %v974_v24  ;;  %vm977_vm2 = vcmp.eq.f32.partialorder %v3997_v23, 0.0  ;;  %v1071_v17 = vsub.f32 %v6212_v3, %v1070_v56  ;;  %v1073_v55 = vsub.f32 %v6213_v7, %v1072_v35 }
  0xec   : > { %v2655_v27 = vpop.eup %2654  ;;  %v4140_v59 = vadd.f32 %v812_v44, %v4021_v29  ;;  %v905_v61 = vmul.f32 %v901_v11, %v4121_v52  ;;  %v910_v13 = vmul.f32 1.442695, %v904_v57  ;;  %v985_v53 = vand.u32 2147483648, %v4008_v51 }
  0xed   : > { %v822_v41 = vmul.f32 %v6225_v62, %v804_v40  ;;  %v983_v43 = vsel %vm982_vm1, %v4008_v51, %v981_v31  ;;  %vm984_vm3 = vcmp.eq.f32.partialorder %v4008_v51, 0.0  ;;  %v1074_v38 = vsub.f32 %v6214_v8, %v1072_v35 }
  0xee   : > { %v2657_v46 = vpop.eup %2656  ;;  %v4149_v42 = vadd.f32 %v821_v33, %v4024_v14  ;;  %v831_v29 = vmul.f32 %v3933_v6, %v804_v40  ;;  %v979_v11 = vsel %vm977_vm2, %v978_v37, %v976_v0  ;;  %v1075_v5 = vsub.f32 %v6215_v9, %v1072_v35 }
  0xef   : > { %v4158_v62 = vadd.f32 %v830_v54, %v4033_v4  ;;  %v988_v49 = vmul.f32 %v2655_v27, %v4052_v30  ;;  %v1077_v14 = vmul.f32 %v1071_v17, %v1071_v17  ;;  %v1078_v18 = vmul.f32 %v1073_v55, %v1073_v55 }
  0xf0   : > { %2662 = vpow2.f32 %v910_v13  ;;  %v912_v6 = vmul.f32 1.442695, %v905_v61  ;;  %v986_v23 = vsel %vm984_vm3, %v985_v53, %v983_v43  ;;  %vm989_vm4 = vcmp.eq.f32.partialorder %v4052_v30, inf }
  0xf1   : > { %v995_v4 = vmul.f32 %v2657_v46, %v4069_v50  ;;  %v1002_v40 = vmul.f32 %v4095_v16, %v979_v11  ;;  %v1076_v44 = vsub.f32 %v2929_v10, %v1072_v35  ;;  %v1079_v33 = vmul.f32 %v1074_v38, %v1074_v38 }
  0xf2   : > { %v4174_v12 = vadd.f32 %v813_v58, %v4046_v20  ;;  %v992_v54 = vand.u32 2147483648, %v4052_v30  ;;  %vm996_vm5 = vcmp.eq.f32.partialorder %v4069_v50, inf  ;;  %v1080_v51 = vmul.f32 %v1075_v5, %v1075_v5 }
  0xf3   : > { %v2659_v24 = vpop.eup %2658  ;;  %v990_v57 = vsel %vm989_vm4, %v4052_v30, %v988_v49  ;;  %vm991_vm6 = vcmp.eq.f32.partialorder %v4052_v30, 0.0  ;;  %v1003_v56 = vmul.f32 %v4095_v16, %v986_v23  ;;  %v4185_v35 = vadd.f32 %v1078_v18, %v1077_v14 }
  0xf4   : > { %v2661_v20 = vpop.eup %2660  ;;  %v4190_v31 = vadd.f32 %v822_v41, %v4055_v45  ;;  %2664 = vpow2.f32 %v912_v6  ;;  %vm998_vm7 = vcmp.eq.f32.partialorder %v4069_v50, 0.0  ;;  %v999_v58 = vand.u32 2147483648, %v4069_v50 }
  0xf5   : > { %v997_v30 = vsel %vm996_vm5, %v4069_v50, %v995_v4  ;;  %v1006_v37 = vsub.f32 1.0, %v1002_v40  ;;  %v1081_v0 = vmul.f32 %v1076_v44, %v1076_v44  ;;  %v4195_v17 = vadd.f32 %v1079_v33, %v1077_v14 }
  0xf6   : > { %v4198_v55 = vadd.f32 %v831_v29, %v4058_v2  ;;  %v993_v27 = vsel %vm991_vm6, %v992_v54, %v990_v57  ;;  %v4201_v61 = vstv %s4152_s30  ;;  %v4203_v45 = vadd.f32 %v1080_v51, %v1077_v14  ;;  %s4705_s30 = sld [smem:[#allocation2 + $0x5e]] }
  0xf7   : > { %v914_v13 = vmul.f32 %v2659_v24, %v4043_v63  ;;  %v1007_v53 = vsub.f32 1.0, %v1003_v56  ;;  %v4207_v41 = vstv %s4160_s2  ;;  %2666 = vrsqrt.f32 %v4185_v35  ;;  %s4707_s2 = sld [smem:[#allocation2 + $0x62]] }
  0xf8   : > { %v915_v43 = vmul.f32 %v2661_v20, %v4048_v47  ;;  %v1000_v2 = vsel %vm998_vm7, %v999_v58, %v997_v30  ;;  %v4216_v38 = vstv %s4162_s3  ;;  %v4219_v46 = vstv %s4165_s4  ;;  %s4716_s3 = sld [smem:[#allocation2 + $0x69]]  ;;  %s4752_s4 = sld [smem:[#allocation2 + $0x68]] }
  0xf9   : > { %v1004_v63 = vmul.f32 %v4095_v16, %v993_v27  ;;  %v4222_v29 = vmax.f32 %v1006_v37, 0.0  ;;  %v4224_v11 = vadd.f32 %v1081_v0, %v1077_v14  ;;  %2668 = vrsqrt.f32 %v4195_v17 }
  0xfa   : > { %v2663_v5 = vpop.eup %2662  ;;  %v923_v47 = vmul.f32 %v4084_v21, %v914_v13  ;;  %v932_v50 = vmul.f32 %v4089_v1, %v914_v13  ;;  %v941_v49 = vmul.f32 %v4092_v28, %v914_v13  ;;  %2670 = vrsqrt.f32 %v4203_v45 }
  0xfb   : > { %v4232_v18 = vadd.f32 %v914_v13, %v4061_v48  ;;  %v4234_v6 = vmax.f32 %v1007_v53, 0.0  ;;  %v4237_v23 = vstv %s4178_s5  ;;  %v4240_v14 = vstv %s4183_s6  ;;  %s4849_s6 = sld [smem:[#allocation2 + $0x71]] }
  0xfc   : > { %v924_v4 = vmul.f32 %v4084_v21, %v915_v43  ;;  %v933_v40 = vmul.f32 %v4089_v1, %v915_v43  ;;  %v942_v44 = vmul.f32 %v4092_v28, %v915_v43  ;;  %v1005_v33 = vmul.f32 %v4095_v16, %v1000_v2 }
  0xfd   : > { %v916_v54 = vmul.f32 %v2663_v5, %v4100_v39  ;;  %v1008_v48 = vsub.f32 1.0, %v1004_v63  ;;  %v1015_v51 = vmul.f32 %v4201_v61, %v4222_v29  ;;  %2672 = vrsqrt.f32 %v4224_v11 }
  0xfe   : > { %v2665_v24 = vpop.eup %2664  ;;  %v4253_v57 = vadd.f32 %v915_v43, %v4098_v60  ;;  %v4256_v56 = vadd.f32 %v923_v47, %v4064_v25  ;;  %v4259_v20 = vadd.f32 %v932_v50, %v4075_v15  ;;  %v4262_v16 = vadd.f32 %v941_v49, %v4078_v22  ;;  %s1516_s5 = ssub.f32 %s4716_s3, %s2939_s14  ;;  %s5392_s3 = sld [smem:[#allocation2 + $0x7b]] }
  0xff   : > { %v925_v39 = vmul.f32 %v4084_v21, %v916_v54  ;;  %v1016_v58 = vmul.f32 %v4201_v61, %v4234_v6  ;;  %v1183_v30 = vstv %s4210_s8  ;;  %v1185_v37 = vstv %s1177_s9  ;;  %s4856_s8 = sld [smem:[#allocation2 + $0x64]]  ;;  %s4862_s9 = sld [smem:[#allocation2 + $0x65]] }
 0x100   : > { %v4269_v0 = vadd.f32 %v924_v4, %v4112_v36  ;;  %v4272_v60 = vadd.f32 %v933_v40, %v4116_v19  ;;  %v4275_v25 = vadd.f32 %v942_v44, %v4129_v32  ;;  %v1009_v15 = vsub.f32 1.0, %v1005_v33 }
 0x101   : > { %v2667_v27 = vpop.eup %2666  ;;  %v4278_v22 = vmul.f32 %v2665_v24, %v4121_v52  ;;  %v4281_v13 = vadd.f32 %v916_v54, %v4107_v34  ;;  %v4283_v53 = vmax.f32 %v1008_v48, 0.0  ;;  %v1019_v43 = vmul.f32 1.442695, %v1015_v51 }
 0x102   : > { %v4286_v36 = vmul.f32 %v4089_v1, %v916_v54  ;;  %v4289_v19 = vmul.f32 %v4092_v28, %v916_v54  ;;  %v1184_v32 = vsub.f32 %v6212_v3, %v1183_v30  ;;  %v1186_v2 = vsub.f32 %v6213_v7, %v1185_v37 }
 0x103   : > { %v2669_v63 = vpop.eup %2668  ;;  %v4295_v52 = vmul.f32 %v4084_v21, %v4278_v22  ;;  %v4298_v34 = vadd.f32 %v925_v39, %v4140_v59  ;;  %v1021_v5 = vmul.f32 1.442695, %v1016_v58  ;;  %v1187_v47 = vsub.f32 %v6214_v8, %v1185_v37 }
 0x104   : > { %v2671_v50 = vpop.eup %2670  ;;  %v4301_v49 = vmax.f32 %v1009_v15, 0.0  ;;  %v1087_v4 = vmul.f32 %v2667_v27, %v4185_v35  ;;  %vm1088_vm8 = vcmp.eq.f32.partialorder %v4185_v35, inf  ;;  %vm1090_vm9 = vcmp.eq.f32.partialorder %v4185_v35, 0.0 }
 0x105   : > { %v1017_v40 = vmul.f32 %v4201_v61, %v4283_v53  ;;  %2674 = vpow2.f32 %v1019_v43  ;;  %v1188_v21 = vsub.f32 %v6215_v9, %v1185_v37  ;;  %v1189_v59 = vsub.f32 %v2929_v10, %v1185_v37 }
 0x106   : > { %v1091_v44 = vand.u32 2147483648, %v4185_v35  ;;  %v1094_v33 = vmul.f32 %v2669_v63, %v4195_v17  ;;  %v1190_v54 = vmul.f32 %v1184_v32, %v1184_v32  ;;  %v1191_v48 = vmul.f32 %v1186_v2, %v1186_v2 }
 0x107   : > { %v2673_v51 = vpop.eup %2672  ;;  %2676 = vpow2.f32 %v1021_v5  ;;  %vm1095_vm10 = vcmp.eq.f32.partialorder %v4195_v17, inf  ;;  %v1101_v24 = vmul.f32 %v2671_v50, %v4203_v45  ;;  %v1192_v39 = vmul.f32 %v1187_v47, %v1187_v47 }
 0x108   : > { %v1089_v58 = vsel %vm1088_vm8, %v4185_v35, %v1087_v4  ;;  %vm1097_vm11 = vcmp.eq.f32.partialorder %v4195_v17, 0.0  ;;  %v1098_v30 = vand.u32 2147483648, %v4195_v17  ;;  %vm1102_vm12 = vcmp.eq.f32.partialorder %v4203_v45, inf }
 0x109   : > { %v1018_v37 = vmul.f32 %v4201_v61, %v4301_v49  ;;  %vm1104_vm13 = vcmp.eq.f32.partialorder %v4203_v45, 0.0  ;;  %v1193_v15 = vmul.f32 %v1188_v21, %v1188_v21  ;;  %v1194_v27 = vmul.f32 %v1189_v59, %v1189_v59 }
 0x10a   : > { %v1096_v43 = vsel %vm1095_vm10, %v4195_v17, %v1094_v33  ;;  %v1105_v32 = vand.u32 2147483648, %v4203_v45  ;;  %v1108_v2 = vmul.f32 %v2673_v51, %v4224_v11  ;;  %v4330_v63 = vadd.f32 %v1191_v48, %v1190_v54 }
 0x10b   : > { %v1092_v61 = vsel %vm1090_vm9, %v1091_v44, %v1089_v58  ;;  %v1103_v5 = vsel %vm1102_vm12, %v4203_v45, %v1101_v24  ;;  %vm1109_vm14 = vcmp.eq.f32.partialorder %v4224_v11, inf  ;;  %v4340_v47 = vadd.f32 %v1192_v39, %v1190_v54 }
 0x10c   : > { %v935_v50 = vmul.f32 %v4089_v1, %v4278_v22  ;;  %v944_v4 = vmul.f32 %v4092_v28, %v4278_v22  ;;  %v1023_v21 = vmul.f32 1.442695, %v1017_v40  ;;  %vm1111_vm15 = vcmp.eq.f32.partialorder %v4224_v11, 0.0 }
 0x10d   : > { %v1099_v35 = vsel %vm1097_vm11, %v1098_v30, %v1096_v43  ;;  %v1112_v59 = vand.u32 2147483648, %v4224_v11  ;;  %v4356_v44 = vadd.f32 %v1193_v15, %v1190_v54  ;;  %v4358_v1 = vadd.f32 %v1194_v27, %v1190_v54 }
 0x10e   : > { %v1106_v28 = vsel %vm1104_vm13, %v1105_v32, %v1103_v5  ;;  %v1110_v40 = vsel %vm1109_vm14, %v4224_v11, %v1108_v2  ;;  %v1115_v17 = vmul.f32 %v4237_v23, %v1092_v61  ;;  %2678 = vrsqrt.f32 %v4330_v63 }
 0x10f   : > { %v2675_v33 = vpop.eup %2674  ;;  %v4371_v54 = vadd.f32 %v4286_v36, %v4149_v42  ;;  %v4375_v45 = vadd.f32 %v4289_v19, %v4158_v62  ;;  %v1025_v48 = vmul.f32 1.442695, %v1018_v37  ;;  %2680 = vrsqrt.f32 %v4340_v47 }
 0x110   : > { %v4380_v51 = vadd.f32 %v4278_v22, %v4126_v26  ;;  %v4384_v24 = vadd.f32 %v4295_v52, %v4174_v12  ;;  %2682 = vpow2.f32 %v1023_v21  ;;  %v1116_v42 = vmul.f32 %v4237_v23, %v1099_v35 }
 0x111   : > { %v2677_v62 = vpop.eup %2676  ;;  %v4390_v36 = vadd.f32 %v935_v50, %v4190_v31  ;;  %v1113_v19 = vsel %vm1111_vm15, %v1112_v59, %v1110_v40  ;;  %v1117_v26 = vmul.f32 %v4237_v23, %v1106_v28  ;;  %2684 = vrsqrt.f32 %v4356_v44 }
 0x112   : > { %v4397_v12 = vadd.f32 %v944_v4, %v4198_v55  ;;  %v1119_v22 = vsub.f32 1.0, %v1115_v17  ;;  %v4400_v52 = vstv %s4323_s11  ;;  %2686 = vrsqrt.f32 %v4358_v1  ;;  %s4875_s11 = sld [smem:[#allocation2 + $0x70]] }
 0x113   : > { %2688 = vpow2.f32 %v1025_v48  ;;  %v1027_v31 = vmul.f32 %v2675_v33, %v4222_v29  ;;  %v4405_v11 = vstv %s4332_s15  ;;  %v4408_v39 = vstv %s4334_s16  ;;  %s4892_s15 = sld [smem:[#allocation2 + $0x6b]]  ;;  %s1629_s16 = ssub.f32 %s4849_s6, %s2939_s14 }
 0x114   : > { %6226 = vst [vmem:[#allocation12_spill] sm:$0xff] %v4408_v39  ;;  %v1118_v58 = vmul.f32 %v4237_v23, %v1113_v19  ;;  %v1120_v30 = vsub.f32 1.0, %v1116_v42  ;;  %v1296_v55 = vstv %s4347_s17  ;;  %v4412_v37 = vstv %s1290_s22  ;;  %s5038_s17 = sld [smem:[#allocation2 + $0x6c]]  ;;  %s5060_s22 = sld [smem:[#allocation2 + $0x73]] }
 0x115   : > { %v4415_v15 = vmul.f32 %v2677_v62, %v4234_v6  ;;  %v1121_v27 = vsub.f32 1.0, %v1117_v26  ;;  %v4418_v43 = vstv %s4328_s12  ;;  %v4421_v32 = vstv %s4352_s18  ;;  %s4877_s12 = sld [smem:[#allocation2 + $0x66]]  ;;  %s5040_s18 = sld [smem:[#allocation2 + $0x6d]] }
 0x116   : > { %v4423_v2 = vmax.f32 %v1119_v22, 0.0  ;;  %v4426_v29 = vstv %s4354_s19  ;;  %v4429_v61 = vstv %s4364_s20  ;;  %v4432_v5 = vstv %s4366_s21  ;;  %s5045_s19 = sld [smem:[#allocation2 + $0x6e]]  ;;  %s5049_s20 = sld [smem:[#allocation2 + $0x79]] }
 0x117   : > { %6227 = vst [vmem:[#allocation13_spill] sm:$0xff] %v4426_v29  ;;  %6228 = vst [vmem:[#allocation14_spill] sm:$0xff] %v4429_v61  ;;  %v4435_v23 = vadd.f32 %v1027_v31, %v4232_v18  ;;  %v1036_v50 = vmul.f32 %v4207_v41, %v1027_v31  ;;  %v1297_v6 = vsub.f32 %v6212_v3, %v1296_v55  ;;  %v1122_v28 = vsub.f32 1.0, %v1118_v58  ;;  %s5055_s21 = sld [smem:[#allocation2 + $0x72]]  ;;  %s5415_s6 = sld [smem:[#allocation2 + $0x7d]] }
 0x118   : > { %6229 = vst [vmem:[#allocation15_spill] sm:$0xff] %v4432_v5  ;;  %v1299_v4 = vsub.f32 %v6213_v7, %v4412_v37  ;;  %v2679_v21 = vpop.eup %2678  ;;  %v4442_v35 = vmul.f32 %v4216_v38, %v1027_v31  ;;  %v4445_v59 = vmul.f32 %v4219_v46, %v1027_v31  ;;  %v4447_v40 = vmax.f32 %v1120_v30, 0.0 }
 0x119   : > { %v2681_v17 = vpop.eup %2680  ;;  %v4451_v18 = vadd.f32 %v4415_v15, %v4253_v57  ;;  %v4455_v33 = vmul.f32 %v4207_v41, %v4415_v15  ;;  %v4457_v48 = vmax.f32 %v1121_v27, 0.0  ;;  %v1300_v42 = vsub.f32 %v6214_v8, %v4412_v37 }
 0x11a   : > { %v2683_v62 = vpop.eup %2682  ;;  %v1128_v19 = vmul.f32 %v4240_v14, %v4423_v2  ;;  %vm1201_vm0 = vcmp.eq.f32.partialorder %v4330_v63, inf  ;;  %vm1203_vm1 = vcmp.eq.f32.partialorder %v4330_v63, 0.0  ;;  %v1204_v57 = vand.u32 2147483648, %v4330_v63 }
 0x11b   : > { %6230 = vst [vmem:[#allocation16_spill] sm:$0xff] %v4451_v18  ;;  %v2685_v26 = vpop.eup %2684  ;;  %v1200_v22 = vmul.f32 %v2679_v21, %v4330_v63  ;;  %v1301_v31 = vsub.f32 %v6215_v9, %v4412_v37  ;;  %v4469_v58 = vmul.f32 %v1297_v6, %v1297_v6  ;;  %v1304_v30 = vmul.f32 %v1299_v4, %v1299_v4 }
 0x11c   : > { %v2687_v55 = vpop.eup %2686  ;;  %v4471_v27 = vmax.f32 %v1122_v28, 0.0  ;;  %v1129_v5 = vmul.f32 %v4240_v14, %v4447_v40  ;;  %v1207_v61 = vmul.f32 %v2681_v17, %v4340_v47  ;;  %vm1208_vm2 = vcmp.eq.f32.partialorder %v4340_v47, inf }
 0x11d   : > { %v2689_v29 = vpop.eup %2688  ;;  %v1130_v21 = vmul.f32 %v4240_v14, %v4457_v48  ;;  %vm1210_vm3 = vcmp.eq.f32.partialorder %v4340_v47, 0.0  ;;  %v1211_v6 = vand.u32 2147483648, %v4340_v47  ;;  %v1305_v39 = vmul.f32 %v1300_v42, %v1300_v42 }
 0x11e   : > { %v1132_v4 = vmul.f32 1.442695, %v1128_v19  ;;  %v1214_v28 = vmul.f32 %v2685_v26, %v4356_v44  ;;  %vm1215_vm4 = vcmp.eq.f32.partialorder %v4356_v44, inf  ;;  %vm1217_vm5 = vcmp.eq.f32.partialorder %v4356_v44, 0.0 }
 0x11f   : > { %v1202_v17 = vsel %vm1201_vm0, %v4330_v63, %v1200_v22  ;;  %v1221_v9 = vmul.f32 %v2687_v55, %v4358_v1  ;;  %v1306_v8 = vmul.f32 %v1301_v31, %v1301_v31  ;;  %v4489_v7 = vadd.f32 %v1304_v30, %v4469_v58 }
 0x120   : > { %v1131_v42 = vmul.f32 %v4240_v14, %v4471_v27  ;;  %v1134_v19 = vmul.f32 1.442695, %v1129_v5  ;;  %v1209_v26 = vsel %vm1208_vm2, %v4340_v47, %v1207_v61  ;;  %vm1222_vm6 = vcmp.eq.f32.partialorder %v4358_v1, inf }
 0x121   : > { %v1136_v3 = vmul.f32 1.442695, %v1130_v21  ;;  %v1218_v18 = vand.u32 2147483648, %v4356_v44  ;;  %vm1224_vm7 = vcmp.eq.f32.partialorder %v4358_v1, 0.0  ;;  %v4500_v22 = vadd.f32 %v1305_v39, %v4469_v58 }
 0x122   : > { %2690 = vpow2.f32 %v1132_v4  ;;  %v1205_v31 = vsel %vm1203_vm1, %v1204_v57, %v1202_v17  ;;  %v1216_v14 = vsel %vm1215_vm4, %v4356_v44, %v1214_v28  ;;  %v1225_v61 = vand.u32 2147483648, %v4358_v1 }
 0x123   : > { %v1212_v5 = vsel %vm1210_vm3, %v1211_v6, %v1209_v26  ;;  %v1223_v30 = vsel %vm1222_vm6, %v4358_v1, %v1221_v9  ;;  %v4512_v55 = vadd.f32 %v1306_v8, %v4469_v58  ;;  %2692 = vrsqrt.f32 %v4489_v7 }
 0x124   : > { %v1046_v63 = vmul.f32 %v4216_v38, %v4415_v15  ;;  %v1055_v39 = vmul.f32 %v4219_v46, %v4415_v15  ;;  %2694 = vpow2.f32 %v1134_v19  ;;  %v1138_v57 = vmul.f32 1.442695, %v1131_v42 }
 0x125   : > { %v1029_v21 = vmul.f32 %v2683_v62, %v4283_v53  ;;  %v4521_v47 = vadd.f32 %v1036_v50, %v4256_v56  ;;  %v1219_v9 = vsel %vm1217_vm5, %v1218_v18, %v1216_v14  ;;  %2696 = vrsqrt.f32 %v4500_v22 }
 0x126   : > { %2698 = vpow2.f32 %v1136_v3  ;;  %v1226_v8 = vsel %vm1224_vm7, %v1225_v61, %v1223_v30  ;;  %v1228_v6 = vmul.f32 %v4418_v43, %v1205_v31  ;;  %v1229_v15 = vmul.f32 %v4418_v43, %v1212_v5 }
 0x127   : > { %v1030_v4 = vmul.f32 %v2689_v29, %v4301_v49  ;;  %v4533_v53 = vadd.f32 %v4442_v35, %v4259_v20  ;;  %v1302_v3 = vsub.f32 %v2929_v10, %v4412_v37  ;;  %2700 = vrsqrt.f32 %v4512_v55 }
 0x128   : > { %v1038_v56 = vmul.f32 %v4207_v41, %v1029_v21  ;;  %v4545_v44 = vadd.f32 %v4445_v59, %v4262_v16  ;;  %2702 = vpow2.f32 %v1138_v57  ;;  %v1230_v49 = vmul.f32 %v4418_v43, %v1219_v9 }
 0x129   : > { %v1039_v20 = vmul.f32 %v4207_v41, %v1030_v4  ;;  %v1047_v1 = vmul.f32 %v4216_v38, %v1029_v21  ;;  %v1056_v29 = vmul.f32 %v4219_v46, %v1029_v21  ;;  %v1231_v50 = vmul.f32 %v4418_v43, %v1226_v8 }
 0x12a   : > { %v1048_v37 = vmul.f32 %v4216_v38, %v1030_v4  ;;  %v1057_v35 = vmul.f32 %v4219_v46, %v1030_v4  ;;  %v1232_v18 = vsub.f32 1.0, %v1228_v6  ;;  %v1233_v62 = vsub.f32 1.0, %v1229_v15 }
 0x12b   : > { %v4556_v16 = vadd.f32 %v4455_v33, %v4269_v0  ;;  %v4559_v59 = vadd.f32 %v1046_v63, %v4272_v60  ;;  %v4562_v41 = vadd.f32 %v1055_v39, %v4275_v25  ;;  %v1307_v28 = vmul.f32 %v1302_v3, %v1302_v3 }
 0x12c   : > { %v2691_v43 = vpop.eup %2690  ;;  %v1033_v38 = vadd.f32 %v1029_v21, %v4281_v13  ;;  %v4568_v46 = vadd.f32 %v1030_v4, %v4380_v51  ;;  %v4571_v17 = vadd.f32 %v1038_v56, %v4298_v34  ;;  %v1234_v0 = vsub.f32 1.0, %v1230_v49  ;;  %v6231_v49 = vld [vmem:[#allocation16_spill] sm:$0xff] }
 0x12d   : > { %v2693_v60 = vpop.eup %2692  ;;  %v4574_v33 = vadd.f32 %v1039_v20, %v4384_v24  ;;  %v4577_v25 = vadd.f32 %v1047_v1, %v4371_v54  ;;  %v4580_v42 = vadd.f32 %v1056_v29, %v4375_v45  ;;  %v1235_v13 = vsub.f32 1.0, %v1231_v50 }
 0x12e   : > { %v2695_v19 = vpop.eup %2694  ;;  %v4583_v51 = vadd.f32 %v1048_v37, %v4390_v36  ;;  %v4586_v34 = vadd.f32 %v1057_v35, %v4397_v12  ;;  %v4588_v26 = vmax.f32 %v1232_v18, 0.0  ;;  %v4590_v31 = vmax.f32 %v1233_v62, 0.0 }
 0x12f   : > { %v2697_v24 = vpop.eup %2696  ;;  %v4593_v14 = vmul.f32 %v2691_v43, %v4423_v2  ;;  %v4596_v54 = vadd.f32 %v1307_v28, %v4469_v58  ;;  %v4599_v45 = vstv %s4535_s23  ;;  %v4602_v61 = vstv %s4537_s24  ;;  %s5062_s23 = sld [smem:[#allocation2 + $0x74]]  ;;  %s5072_s24 = sld [smem:[#allocation2 + $0x75]] }
 0x130   : > { %v2699_v36 = vpop.eup %2698  ;;  %v4606_v12 = vmax.f32 %v1234_v0, 0.0  ;;  %v1313_v5 = vmul.f32 %v2693_v60, %v4489_v7  ;;  %vm1314_vm8 = vcmp.eq.f32.partialorder %v4489_v7, inf  ;;  %vm1316_vm9 = vcmp.eq.f32.partialorder %v4489_v7, 0.0 }
 0x131   : > { %v2701_v2 = vpop.eup %2700  ;;  %v4612_v58 = vmul.f32 %v2695_v19, %v4447_v40  ;;  %v4614_v30 = vmax.f32 %v1235_v13, 0.0  ;;  %v1317_v63 = vand.u32 2147483648, %v4489_v7  ;;  %vm1321_vm10 = vcmp.eq.f32.partialorder %v4500_v22, inf }
 0x132   : > { %v2703_v39 = vpop.eup %2702  ;;  %v1241_v57 = vmul.f32 %v4421_v32, %v4588_v26  ;;  %v1242_v21 = vmul.f32 %v4421_v32, %v4590_v31  ;;  %v1320_v9 = vmul.f32 %v2697_v24, %v4500_v22  ;;  %vm1323_vm11 = vcmp.eq.f32.partialorder %v4500_v22, 0.0  ;;  %v6232_v24 = vld [vmem:[#allocation8_spill] sm:$0xff] }
 0x133   : > { %v1142_v40 = vmul.f32 %v2699_v36, %v4457_v48  ;;  %v4627_v8 = vadd.f32 %v4593_v14, %v4435_v23  ;;  %v1149_v6 = vmul.f32 %v4400_v52, %v4593_v14  ;;  %v1324_v15 = vand.u32 2147483648, %v4500_v22 }
 0x134   : > { %v1158_v4 = vmul.f32 %v4405_v11, %v4593_v14  ;;  %v1243_v3 = vmul.f32 %v4421_v32, %v4606_v12  ;;  %v1315_v48 = vsel %vm1314_vm8, %v4489_v7, %v1313_v5  ;;  %v1327_v23 = vmul.f32 %v2701_v2, %v4512_v55  ;;  %v6233_v5 = vld [vmem:[#allocation9_spill] sm:$0xff] }
 0x135   : > { %v1143_v56 = vmul.f32 %v2703_v39, %v4471_v27  ;;  %v4645_v20 = vadd.f32 %v4612_v58, %v6231_v49  ;;  %v1244_v1 = vmul.f32 %v4421_v32, %v4614_v30  ;;  %vm1328_vm12 = vcmp.eq.f32.partialorder %v4512_v55, inf }
 0x136   : > { %v1150_v29 = vmul.f32 %v4400_v52, %v4612_v58  ;;  %v1245_v50 = vmul.f32 1.442695, %v1241_v57  ;;  %v1247_v37 = vmul.f32 1.442695, %v1242_v21  ;;  %v1322_v35 = vsel %vm1321_vm10, %v4500_v22, %v1320_v9 }
 0x137   : > { %v1318_v27 = vsel %vm1316_vm9, %v1317_v63, %v1315_v48  ;;  %v1331_v18 = vand.u32 2147483648, %v4512_v55  ;;  %v1409_v62 = vstv %s4604_s26  ;;  %v1411_v28 = vstv %s1403_s27  ;;  %s5095_s26 = sld [smem:[#allocation2 + $0x76]]  ;;  %s1742_s27 = ssub.f32 %s5049_s20, %s2939_s14 }
 0x138   : > { %v1159_v32 = vmul.f32 %v4405_v11, %v4612_v58  ;;  %v1249_v43 = vmul.f32 1.442695, %v1243_v3  ;;  %v1329_v0 = vsel %vm1328_vm12, %v4512_v55, %v1327_v23  ;;  %vm1330_vm13 = vcmp.eq.f32.partialorder %v4512_v55, 0.0  ;;  %v6234_v55 = vld [vmem:[#allocation10_spill] sm:$0xff]  ;;  %v6235_v3 = vld [vmem:[#allocation11_spill] sm:$0xff] }
 0x139   : > { %v4663_v60 = vadd.f32 %v1142_v40, %v1033_v38  ;;  %v1251_v13 = vmul.f32 1.442695, %v1244_v1  ;;  %v1325_v19 = vsel %vm1323_vm11, %v1324_v15, %v1322_v35  ;;  %2704 = vrsqrt.f32 %v4596_v54 }
 0x13a   : > { %2706 = vpow2.f32 %v1245_v50  ;;  %v1341_v7 = vmul.f32 %v4599_v45, %v1318_v27  ;;  %v1410_v36 = vsub.f32 %v6232_v24, %v1409_v62  ;;  %v1412_v2 = vsub.f32 %v6233_v5, %v1411_v28 }
 0x13b   : > { %v1151_v63 = vmul.f32 %v4400_v52, %v1142_v40  ;;  %2708 = vpow2.f32 %v1247_v37  ;;  %v1332_v39 = vsel %vm1330_vm13, %v1331_v18, %v1329_v0  ;;  %v1413_v38 = vsub.f32 %v6234_v55, %v1411_v28 }
 0x13c   : > { %v4674_v57 = vadd.f32 %v1149_v6, %v4521_v47  ;;  %v1160_v22 = vmul.f32 %v4405_v11, %v1142_v40  ;;  %2710 = vpow2.f32 %v1249_v43  ;;  %v1342_v21 = vmul.f32 %v4599_v45, %v1325_v19 }
 0x13d   : > { %v4679_v9 = vadd.f32 %v1143_v56, %v4568_v46  ;;  %v1152_v15 = vmul.f32 %v4400_v52, %v1143_v56  ;;  %2712 = vpow2.f32 %v1251_v13  ;;  %v1414_v48 = vsub.f32 %v6235_v3, %v1411_v28  ;;  %v6236_v52 = vld [vmem:[#allocation12_spill] sm:$0xff] }
 0x13e   : > { %v1343_v23 = vmul.f32 %v4599_v45, %v1332_v39  ;;  %v1345_v49 = vsub.f32 1.0, %v1341_v7  ;;  %v1416_v1 = vmul.f32 %v1410_v36, %v1410_v36  ;;  %v1417_v50 = vmul.f32 %v1412_v2, %v1412_v2 }
 0x13f   : > { %v4685_v47 = vadd.f32 %v1150_v29, %v4556_v16  ;;  %v1161_v6 = vmul.f32 %v4405_v11, %v1143_v56  ;;  %v1415_v37 = vsub.f32 %v2929_v10, %v1411_v28  ;;  %v1418_v35 = vmul.f32 %v1413_v38, %v1413_v38 }
 0x140   : > { %v4690_v46 = vadd.f32 %v1151_v63, %v4571_v17  ;;  %v1167_v27 = vmul.f32 %v6236_v52, %v4593_v14  ;;  %v1168_v18 = vmul.f32 %v6236_v52, %v4612_v58  ;;  %v1346_v16 = vsub.f32 1.0, %v1342_v21 }
 0x141   : > { %v4701_v29 = vadd.f32 %v1158_v4, %v4533_v53  ;;  %v1169_v11 = vmul.f32 %v6236_v52, %v1142_v40  ;;  %v1170_v62 = vmul.f32 %v6236_v52, %v1143_v56  ;;  %v1419_v17 = vmul.f32 %v1414_v48, %v1414_v48 }
 0x142   : > { %v4710_v14 = vadd.f32 %v1159_v32, %v4559_v59  ;;  %v1347_v58 = vsub.f32 1.0, %v1343_v23  ;;  %v4712_v28 = vmax.f32 %v1345_v49, 0.0  ;;  %v4714_v43 = vadd.f32 %v1417_v50, %v1416_v1 }
 0x143   : > { %v2705_v53 = vpop.eup %2704  ;;  %v4719_v40 = vadd.f32 %v1152_v15, %v4574_v33  ;;  %v4722_v4 = vadd.f32 %v1160_v22, %v4577_v25  ;;  %v1420_v56 = vmul.f32 %v1415_v37, %v1415_v37  ;;  %v4724_v0 = vadd.f32 %v1418_v35, %v1416_v1  ;;  %v6237_v37 = vld [vmem:[#allocation13_spill] sm:$0xff] }
 0x144   : > { %v2707_v13 = vpop.eup %2706  ;;  %v4727_v59 = vadd.f32 %v1161_v6, %v4583_v51  ;;  %v4730_v32 = vadd.f32 %v1167_v27, %v4545_v44  ;;  %v4733_v19 = vadd.f32 %v1168_v18, %v4562_v41  ;;  %v4735_v7 = vmax.f32 %v1346_v16, 0.0  ;;  %v6238_v18 = vld [vmem:[#allocation14_spill] sm:$0xff] }
 0x145   : > { %v2709_v33 = vpop.eup %2708  ;;  %v4738_v36 = vadd.f32 %v1169_v11, %v4580_v42  ;;  %v4741_v25 = vadd.f32 %v1170_v62, %v4586_v34  ;;  %vm1335_vm14 = vcmp.eq.f32.partialorder %v4596_v54, inf  ;;  %v4744_v51 = vadd.f32 %v1419_v17, %v1416_v1 }
 0x146   : > { %v2711_v44 = vpop.eup %2710  ;;  %v1334_v41 = vmul.f32 %v2705_v53, %v4596_v54  ;;  %v4747_v2 = vmax.f32 %v1347_v58, 0.0  ;;  %v1354_v42 = vmul.f32 %v4602_v61, %v4712_v28  ;;  %2714 = vrsqrt.f32 %v4714_v43 }
 0x147   : > { %v2713_v34 = vpop.eup %2712  ;;  %vm1337_vm15 = vcmp.eq.f32.partialorder %v4596_v54, 0.0  ;;  %v1338_v63 = vand.u32 2147483648, %v4596_v54  ;;  %v4756_v39 = vadd.f32 %v1420_v56, %v1416_v1  ;;  %2716 = vrsqrt.f32 %v4724_v0 }
 0x148   : > { %v1253_v38 = vmul.f32 %v2707_v13, %v4588_v26  ;;  %v1355_v22 = vmul.f32 %v4602_v61, %v4735_v7  ;;  %v4763_v21 = vstv %s4696_s28  ;;  %v4766_v15 = vstv %s4698_s29  ;;  %s5262_s28 = sld [smem:[#allocation2 + $0x7a]]  ;;  %s5264_s29 = sld [smem:[#allocation2 + $0x81]] }
 0x149   : > { %v1254_v48 = vmul.f32 %v2709_v33, %v4590_v31  ;;  %v4770_v23 = vstv %s4705_s30  ;;  %2718 = vrsqrt.f32 %v4744_v51  ;;  %v4774_v49 = vstv %s4707_s2  ;;  %s5292_s30 = sld [smem:[#allocation2 + $0x80]] }
 0x14a   : > { %v1255_v1 = vmul.f32 %v2711_v44, %v4606_v12  ;;  %v1336_v26 = vsel %vm1335_vm14, %v4596_v54, %v1334_v41  ;;  %v1356_v50 = vmul.f32 %v4602_v61, %v4747_v2  ;;  %v1358_v6 = vmul.f32 1.442695, %v1354_v42 }
 0x14b   : > { %v1256_v31 = vmul.f32 %v2713_v34, %v4614_v30  ;;  %v1262_v35 = vmul.f32 %v6237_v37, %v1253_v38  ;;  %v1263_v52 = vmul.f32 %v6237_v37, %v1254_v48  ;;  %2720 = vrsqrt.f32 %v4756_v39 }
 0x14c   : > { %v4789_v12 = vadd.f32 %v1253_v38, %v4627_v8  ;;  %v1264_v27 = vmul.f32 %v6237_v37, %v1255_v1  ;;  %v1271_v16 = vmul.f32 %v6238_v18, %v1253_v38  ;;  %v1360_v11 = vmul.f32 1.442695, %v1355_v22 }
 0x14d   : > { %v4794_v62 = vadd.f32 %v1254_v48, %v4645_v20  ;;  %v1272_v17 = vmul.f32 %v6238_v18, %v1254_v48  ;;  %v1273_v30 = vmul.f32 %v6238_v18, %v1255_v1  ;;  %v1339_v58 = vsel %vm1337_vm15, %v1338_v63, %v1336_v26  ;;  %v6239_v63 = vld [vmem:[#allocation15_spill] sm:$0xff] }
 0x14e   : > { %v1265_v53 = vmul.f32 %v6237_v37, %v1256_v31  ;;  %v1274_v8 = vmul.f32 %v6238_v18, %v1256_v31  ;;  %v1522_v56 = vstv %s4752_s4  ;;  %v4803_v13 = vstv %s1516_s5  ;;  %s1855_s2 = ssub.f32 %s5264_s29, %s2939_s14  ;;  %s5409_s4 = sld [smem:[#allocation2 + $0x7c]] }
 0x14f   : > { %v4806_v33 = vadd.f32 %v1255_v1, %v4663_v60  ;;  %v4809_v20 = vadd.f32 %v1256_v31, %v4679_v9  ;;  %v4812_v44 = vadd.f32 %v1262_v35, %v4674_v57  ;;  %v4815_v41 = vadd.f32 %v1263_v52, %v4685_v47  ;;  %s5413_s5 = sld [smem:[#allocation2 + $0x89]]  ;;  %s5787_s29 = sld [smem:[#allocation2 + $0x94]] }
 0x150   : > { %v2715_v54 = vpop.eup %2714  ;;  %v4818_v42 = vadd.f32 %v1264_v27, %v4690_v46  ;;  %v4821_v34 = vadd.f32 %v1271_v16, %v4701_v29  ;;  %v1280_v22 = vmul.f32 %v6239_v63, %v1253_v38  ;;  %v1344_v60 = vmul.f32 %v4599_v45, %v1339_v58 }
 0x151   : > { %v2717_v26 = vpop.eup %2716  ;;  %v4826_v9 = vadd.f32 %v1272_v17, %v4710_v14  ;;  %v4829_v57 = vadd.f32 %v1273_v30, %v4722_v4  ;;  %v1523_v47 = vsub.f32 %v6232_v24, %v1522_v56  ;;  %v1525_v46 = vsub.f32 %v6233_v5, %v4803_v13 }
 0x152   : > { %v4835_v37 = vadd.f32 %v1265_v53, %v4719_v40  ;;  %v4838_v29 = vadd.f32 %v1274_v8, %v4727_v59  ;;  %v1281_v45 = vmul.f32 %v6239_v63, %v1254_v48  ;;  %v1362_v38 = vmul.f32 1.442695, %v1356_v50 }
 0x153   : > { %v2719_v35 = vpop.eup %2718  ;;  %v1282_v14 = vmul.f32 %v6239_v63, %v1255_v1  ;;  %v1283_v4 = vmul.f32 %v6239_v63, %v1256_v31  ;;  %2722 = vpow2.f32 %v1358_v6  ;;  %v1426_v52 = vmul.f32 %v2715_v54, %v4714_v43 }
 0x154   : > { %v4845_v27 = vadd.f32 %v1280_v22, %v4730_v32  ;;  %v1348_v18 = vsub.f32 1.0, %v1344_v60  ;;  %vm1427_vm0 = vcmp.eq.f32.partialorder %v4714_v43, inf  ;;  %v1433_v40 = vmul.f32 %v2717_v26, %v4724_v0 }
 0x155   : > { %v2721_v59 = vpop.eup %2720  ;;  %2724 = vpow2.f32 %v1360_v11  ;;  %vm1434_vm1 = vcmp.eq.f32.partialorder %v4724_v0, inf  ;;  %v4852_v48 = vmul.f32 %v1523_v47, %v1523_v47  ;;  %v1530_v1 = vmul.f32 %v1525_v46, %v1525_v46 }
 0x156   : > { %2726 = vpow2.f32 %v1362_v38  ;;  %v1430_v32 = vand.u32 2147483648, %v4714_v43  ;;  %v1440_v50 = vmul.f32 %v2719_v35, %v4744_v51  ;;  %v1526_v6 = vsub.f32 %v6234_v55, %v4803_v13 }
 0x157   : > { %v1428_v31 = vsel %vm1427_vm0, %v4714_v43, %v1426_v52  ;;  %vm1429_vm2 = vcmp.eq.f32.partialorder %v4714_v43, 0.0  ;;  %v1437_v16 = vand.u32 2147483648, %v4724_v0  ;;  %vm1441_vm3 = vcmp.eq.f32.partialorder %v4744_v51, inf }
 0x158   : > { %v4868_v11 = vmax.f32 %v1348_v18, 0.0  ;;  %v1435_v17 = vsel %vm1434_vm1, %v4724_v0, %v1433_v40  ;;  %vm1436_vm4 = vcmp.eq.f32.partialorder %v4724_v0, 0.0  ;;  %v1447_v30 = vmul.f32 %v2721_v59, %v4756_v39 }
 0x159   : > { %vm1443_vm5 = vcmp.eq.f32.partialorder %v4744_v51, 0.0  ;;  %v1444_v43 = vand.u32 2147483648, %v4744_v51  ;;  %vm1448_vm6 = vcmp.eq.f32.partialorder %v4756_v39, inf  ;;  %v4883_v58 = vadd.f32 %v1530_v1, %v4852_v48 }
 0x15a   : > { %v1431_v0 = vsel %vm1429_vm2, %v1430_v32, %v1428_v31  ;;  %v1442_v53 = vsel %vm1441_vm3, %v4744_v51, %v1440_v50  ;;  %v1527_v8 = vsub.f32 %v6235_v3, %v4803_v13  ;;  %v1531_v56 = vmul.f32 %v1526_v6, %v1526_v6 }
 0x15b   : > { %v4889_v54 = vadd.f32 %v1281_v45, %v4733_v19  ;;  %v1438_v63 = vsel %vm1436_vm4, %v1437_v16, %v1435_v17  ;;  %v1451_v22 = vand.u32 2147483648, %v4756_v39  ;;  %v1528_v60 = vsub.f32 %v2929_v10, %v4803_v13 }
 0x15c   : > { %v4897_v26 = vadd.f32 %v1282_v14, %v4738_v36  ;;  %v1357_v47 = vmul.f32 %v4602_v61, %v4868_v11  ;;  %v1449_v19 = vsel %vm1448_vm6, %v4756_v39, %v1447_v30  ;;  %vm1450_vm7 = vcmp.eq.f32.partialorder %v4756_v39, 0.0 }
 0x15d   : > { %v2723_v46 = vpop.eup %2722  ;;  %v4906_v45 = vadd.f32 %v1283_v4, %v4741_v25  ;;  %v1445_v13 = vsel %vm1443_vm5, %v1444_v43, %v1442_v53  ;;  %v1454_v36 = vmul.f32 %v4774_v49, %v1431_v0  ;;  %2728 = vrsqrt.f32 %v4883_v58 }
 0x15e   : > { %v1455_v61 = vmul.f32 %v4774_v49, %v1438_v63  ;;  %v4914_v38 = vstv %s4854_s7  ;;  %v1532_v39 = vmul.f32 %v1527_v8, %v1527_v8  ;;  %v4917_v35 = vadd.f32 %v1531_v56, %v4852_v48  ;;  %s5417_s7 = sld [smem:[#allocation2 + $0x7e]] }
 0x15f   : > { %v2725_v25 = vpop.eup %2724  ;;  %v1452_v14 = vsel %vm1450_vm7, %v1451_v22, %v1449_v19  ;;  %v4920_v4 = vstv %s4856_s8  ;;  %v4923_v51 = vstv %s4862_s9  ;;  %v1533_v52 = vmul.f32 %v1528_v60, %v1528_v60  ;;  %s5428_s8 = sld [smem:[#allocation2 + $0x82]]  ;;  %s5430_s9 = sld [smem:[#allocation2 + $0x83]] }
 0x160   : > { %v2727_v18 = vpop.eup %2726  ;;  %v1364_v40 = vmul.f32 1.442695, %v1357_v47  ;;  %v1456_v59 = vmul.f32 %v4774_v49, %v1445_v13  ;;  %v1635_v1 = vstv %s4875_s11  ;;  %v4927_v32 = vstv %s1629_s16  ;;  %s5444_s11 = sld [smem:[#allocation2 + $0x85]]  ;;  %s5543_s16 = sld [smem:[#allocation2 + $0x91]] }
 0x161   : > { %v1366_v50 = vmul.f32 %v2723_v46, %v4712_v28  ;;  %v1458_v6 = vsub.f32 1.0, %v1454_v36  ;;  %v4931_v31 = vstv %s4877_s12  ;;  %v4934_v16 = vstv %s4873_s10  ;;  %s5442_s10 = sld [smem:[#allocation2 + $0x84]]  ;;  %s5479_s12 = sld [smem:[#allocation2 + $0x88]] }
 0x162   : > { %v1457_v17 = vmul.f32 %v4774_v49, %v1452_v14  ;;  %v1459_v30 = vsub.f32 1.0, %v1455_v61  ;;  %v4938_v43 = vadd.f32 %v1532_v39, %v4852_v48  ;;  %2730 = vrsqrt.f32 %v4917_v35 }
 0x163   : > { %v4942_v0 = vadd.f32 %v1533_v52, %v4852_v48  ;;  %v4945_v53 = vstv %s4892_s15  ;;  %v1636_v28 = vsub.f32 %v6232_v24, %v1635_v1  ;;  %v1638_v8 = vsub.f32 %v6233_v5, %v4927_v32  ;;  %s1968_s15 = ssub.f32 %s5413_s5, %s2939_s14  ;;  %s6049_s5 = sld [smem:[#allocation2 + $0x9c]] }
 0x164   : > { %2732 = vpow2.f32 %v1364_v40  ;;  %v1367_v56 = vmul.f32 %v2725_v25, %v4735_v7  ;;  %v1375_v49 = vmul.f32 %v4763_v21, %v1366_v50  ;;  %v1460_v63 = vsub.f32 1.0, %v1456_v59 }
 0x165   : > { %v1368_v22 = vmul.f32 %v2727_v18, %v4747_v2  ;;  %v4954_v60 = vadd.f32 %v1366_v50, %v4789_v12  ;;  %v1384_v48 = vmul.f32 %v4766_v15, %v1366_v50  ;;  %v4957_v47 = vmax.f32 %v1458_v6, 0.0 }
 0x166   : > { %v1393_v19 = vmul.f32 %v4770_v23, %v1366_v50  ;;  %v1461_v46 = vsub.f32 1.0, %v1457_v17  ;;  %v4960_v13 = vmax.f32 %v1459_v30, 0.0  ;;  %2734 = vrsqrt.f32 %v4938_v43  ;;  %s2081_s20 = ssub.f32 %s5543_s16, %s2939_s14 }
 0x167   : > { %v2729_v7 = vpop.eup %2728  ;;  %v1376_v36 = vmul.f32 %v4763_v21, %v1367_v56  ;;  %2736 = vrsqrt.f32 %v4942_v0  ;;  %v4965_v2 = vmul.f32 %v1636_v28, %v1636_v28  ;;  %v1643_v12 = vmul.f32 %v1638_v8, %v1638_v8 }
 0x168   : > { %v4968_v61 = vadd.f32 %v1367_v56, %v4794_v62  ;;  %v4971_v39 = vadd.f32 %v1375_v49, %v4812_v44  ;;  %v1385_v25 = vmul.f32 %v4766_v15, %v1367_v56  ;;  %v4974_v14 = vmax.f32 %v1460_v63, 0.0 }
 0x169   : > { %v4977_v52 = vadd.f32 %v1368_v22, %v4806_v33  ;;  %v4980_v18 = vadd.f32 %v1384_v48, %v4821_v34  ;;  %v1394_v40 = vmul.f32 %v4770_v23, %v1367_v56  ;;  %v1467_v59 = vmul.f32 %v4914_v38, %v4957_v47 }
 0x16a   : > { %v1377_v62 = vmul.f32 %v4763_v21, %v1368_v22  ;;  %v4986_v1 = vmax.f32 %v1461_v46, 0.0  ;;  %v1468_v44 = vmul.f32 %v4914_v38, %v4960_v13  ;;  %v1539_v50 = vmul.f32 %v2729_v7, %v4883_v58 }
 0x16b   : > { %v4992_v33 = vadd.f32 %v1376_v36, %v4815_v41  ;;  %v1386_v34 = vmul.f32 %v4766_v15, %v1368_v22  ;;  %vm1540_vm8 = vcmp.eq.f32.partialorder %v4883_v58, inf  ;;  %v4997_v6 = vadd.f32 %v1643_v12, %v4965_v2 }
 0x16c   : > { %v2731_v17 = vpop.eup %2730  ;;  %v5000_v30 = vadd.f32 %v1385_v25, %v4826_v9  ;;  %v5003_v28 = vmul.f32 %v4770_v23, %v1368_v22  ;;  %v5006_v8 = vadd.f32 %v1393_v19, %v4845_v27  ;;  %v1469_v41 = vmul.f32 %v4914_v38, %v4974_v14 }
 0x16d   : > { %v5011_v56 = vadd.f32 %v1394_v40, %v4889_v54  ;;  %v1471_v49 = vmul.f32 1.442695, %v1467_v59  ;;  %vm1542_vm9 = vcmp.eq.f32.partialorder %v4883_v58, 0.0  ;;  %v1543_v63 = vand.u32 2147483648, %v4883_v58 }
 0x16e   : > { %v2733_v48 = vpop.eup %2732  ;;  %v1470_v9 = vmul.f32 %v4914_v38, %v4986_v1  ;;  %v1473_v22 = vmul.f32 1.442695, %v1468_v44  ;;  %v1541_v46 = vsel %vm1540_vm8, %v4883_v58, %v1539_v50  ;;  %v1639_v27 = vsub.f32 %v6234_v55, %v4927_v32 }
 0x16f   : > { %v5021_v19 = vadd.f32 %v1377_v62, %v4818_v42  ;;  %v1546_v54 = vmul.f32 %v2731_v17, %v4917_v35  ;;  %v1640_v7 = vsub.f32 %v6235_v3, %v4927_v32  ;;  %2738 = vrsqrt.f32 %v4997_v6 }
 0x170   : > { %v2735_v36 = vpop.eup %2734  ;;  %v5028_v12 = vadd.f32 %v1386_v34, %v4829_v57  ;;  %v1475_v38 = vmul.f32 1.442695, %v1469_v41  ;;  %vm1547_vm10 = vcmp.eq.f32.partialorder %v4917_v35, inf  ;;  %v1641_v25 = vsub.f32 %v2929_v10, %v4927_v32 }
 0x171   : > { %v2737_v40 = vpop.eup %2736  ;;  %v1369_v42 = vmul.f32 %v2733_v48, %v4868_v11  ;;  %2740 = vpow2.f32 %v1471_v49  ;;  %v1544_v59 = vsel %vm1542_vm9, %v1543_v63, %v1541_v46  ;;  %vm1549_vm11 = vcmp.eq.f32.partialorder %v4917_v35, 0.0 }
 0x172   : > { %2742 = vpow2.f32 %v1473_v22  ;;  %v1477_v62 = vmul.f32 1.442695, %v1470_v9  ;;  %v1550_v57 = vand.u32 2147483648, %v4917_v35  ;;  %v1644_v44 = vmul.f32 %v1639_v27, %v1639_v27 }
 0x173   : > { %v1548_v32 = vsel %vm1547_vm10, %v4917_v35, %v1546_v54  ;;  %v1553_v50 = vmul.f32 %v2735_v36, %v4938_v43  ;;  %vm1554_vm12 = vcmp.eq.f32.partialorder %v4938_v43, inf  ;;  %v1645_v11 = vmul.f32 %v1640_v7, %v1640_v7 }
 0x174   : > { %2744 = vpow2.f32 %v1475_v38  ;;  %v1560_v58 = vmul.f32 %v2737_v40, %v4942_v0  ;;  %v1567_v34 = vmul.f32 %v4934_v16, %v1544_v59  ;;  %v1646_v17 = vmul.f32 %v1641_v25, %v1641_v25 }
 0x175   : > { %v1378_v41 = vmul.f32 %v4763_v21, %v1369_v42  ;;  %v1387_v49 = vmul.f32 %v4766_v15, %v1369_v42  ;;  %v1396_v63 = vmul.f32 %v4770_v23, %v1369_v42  ;;  %vm1561_vm13 = vcmp.eq.f32.partialorder %v4942_v0, inf }
 0x176   : > { %2746 = vpow2.f32 %v1477_v62  ;;  %v1551_v48 = vsel %vm1549_vm11, %v1550_v57, %v1548_v32  ;;  %v1557_v9 = vand.u32 2147483648, %v4938_v43  ;;  %v5065_v21 = vadd.f32 %v1644_v44, %v4965_v2 }
 0x177   : > { %v1555_v15 = vsel %vm1554_vm12, %v4938_v43, %v1553_v50  ;;  %vm1556_vm14 = vcmp.eq.f32.partialorder %v4938_v43, 0.0  ;;  %v1564_v23 = vand.u32 2147483648, %v4942_v0  ;;  %v5075_v35 = vadd.f32 %v1645_v11, %v4965_v2 }
 0x178   : > { %v1562_v22 = vsel %vm1561_vm13, %v4942_v0, %v1560_v58  ;;  %vm1563_vm15 = vcmp.eq.f32.partialorder %v4942_v0, 0.0  ;;  %v1571_v46 = vsub.f32 1.0, %v1567_v34  ;;  %v5080_v27 = vadd.f32 %v1646_v17, %v4965_v2 }
 0x179   : > { %v2739_v54 = vpop.eup %2738  ;;  %v5085_v7 = vadd.f32 %v1369_v42, %v4809_v20  ;;  %v5088_v36 = vadd.f32 %v1378_v41, %v4835_v37  ;;  %v5092_v38 = vadd.f32 %v5003_v28, %v4897_v26  ;;  %v1568_v0 = vmul.f32 %v4934_v16, %v1551_v48 }
 0x17a   : > { %v5098_v2 = vadd.f32 %v1387_v49, %v4838_v29  ;;  %v5101_v20 = vadd.f32 %v1396_v63, %v4906_v45  ;;  %v1558_v37 = vsel %vm1556_vm14, %v1557_v9, %v1555_v15  ;;  %2748 = vrsqrt.f32 %v5065_v21 }
 0x17b   : > { %v2741_v26 = vpop.eup %2740  ;;  %v1565_v28 = vsel %vm1563_vm15, %v1564_v23, %v1562_v22  ;;  %v5107_v25 = vstv %s5038_s17  ;;  %v5110_v40 = vstv %s5040_s18  ;;  %2750 = vrsqrt.f32 %v5075_v35  ;;  %s5571_s17 = sld [smem:[#allocation2 + $0x90]]  ;;  %s5580_s18 = sld [smem:[#allocation2 + $0x8a]] }
 0x17c   : > { %v2743_v29 = vpop.eup %2742  ;;  %v5113_v42 = vmax.f32 %v1571_v46, 0.0  ;;  %v5116_v45 = vstv %s5045_s19  ;;  %v1652_v43 = vmul.f32 %v2739_v54, %v4997_v6  ;;  %2752 = vrsqrt.f32 %v5080_v27  ;;  %s5584_s19 = sld [smem:[#allocation2 + $0x86]] }
 0x17d   : > { %v1569_v59 = vmul.f32 %v4934_v16, %v1558_v37  ;;  %v1572_v62 = vsub.f32 1.0, %v1568_v0  ;;  %vm1653_vm0 = vcmp.eq.f32.partialorder %v4997_v6, inf  ;;  %v5125_v57 = vstv %s5055_s21  ;;  %s5695_s21 = sld [smem:[#allocation2 + $0x99]] }
 0x17e   : > { %v2745_v44 = vpop.eup %2744  ;;  %v5128_v32 = vmul.f32 %v2741_v26, %v4957_v47  ;;  %v1570_v50 = vmul.f32 %v4934_v16, %v1565_v28  ;;  %v5132_v11 = vstv %s5060_s22  ;;  %v5135_v58 = vstv %s5062_s23  ;;  %s5719_s22 = sld [smem:[#allocation2 + $0x98]] }
 0x17f   : > { %6240 = vst [vmem:[#allocation16_spill] sm:$0xff] %v5135_v58  ;;  %v5138_v34 = vmul.f32 %v2743_v29, %v4960_v13  ;;  %vm1655_vm1 = vcmp.eq.f32.partialorder %v4997_v6, 0.0  ;;  %v1656_v17 = vand.u32 2147483648, %v4997_v6  ;;  %v5143_v41 = vstv %s5072_s24  ;;  %s5764_s24 = sld [smem:[#allocation2 + $0x8b]] }
 0x180   : > { %6241 = vst [vmem:[#allocation12_spill] sm:$0xff] %v5143_v41  ;;  %v2747_v49 = vpop.eup %2746  ;;  %v1580_v47 = vmul.f32 %v4945_v53, %v5113_v42  ;;  %v1654_v63 = vsel %vm1653_vm0, %v4997_v6, %v1652_v43  ;;  %v1748_v16 = vstv %s5082_s25  ;;  %v5149_v48 = vstv %s1742_s27  ;;  %s5769_s25 = sld [smem:[#allocation2 + $0x8c]]  ;;  %s5779_s27 = sld [smem:[#allocation2 + $0x8e]] }
 0x181   : > { %v5152_v9 = vmul.f32 %v2745_v44, %v4974_v14  ;;  %v1573_v13 = vsub.f32 1.0, %v1569_v59  ;;  %v5154_v15 = vmax.f32 %v1572_v62, 0.0  ;;  %v5157_v23 = vstv %s5095_s26  ;;  %s5777_s26 = sld [smem:[#allocation2 + $0x8d]] }
 0x182   : > { %6242 = vst [vmem:[#allocation13_spill] sm:$0xff] %v5157_v23  ;;  %v5161_v22 = vadd.f32 %v5128_v32, %v4954_v60  ;;  %v1488_v46 = vmul.f32 %v4920_v4, %v5128_v32  ;;  %v5167_v54 = vmul.f32 %v4923_v51, %v5128_v32  ;;  %v1574_v0 = vsub.f32 1.0, %v1570_v50 }
 0x183   : > { %v5170_v14 = vmul.f32 %v2747_v49, %v4986_v1  ;;  %v1657_v37 = vsel %vm1655_vm1, %v1656_v17, %v1654_v63  ;;  %v1749_v26 = vsub.f32 %v6232_v24, %v1748_v16  ;;  %v1751_v60 = vsub.f32 %v6233_v5, %v5149_v48  ;;  %s2194_s23 = ssub.f32 %s5695_s21, %s2939_s14  ;;  %s5762_s14 = sld [smem:[#allocation2 + $0x92]] }
 0x184   : > { %v2749_v28 = vpop.eup %2748  ;;  %v5179_v29 = vadd.f32 %v5138_v34, %v4968_v61  ;;  %v1489_v43 = vmul.f32 %v4920_v4, %v5138_v34  ;;  %v5185_v1 = vmul.f32 %v4923_v51, %v5138_v34  ;;  %v1584_v59 = vmul.f32 1.442695, %v1580_v47 }
 0x185   : > { %v2751_v6 = vpop.eup %2750  ;;  %v5189_v62 = vadd.f32 %v5152_v9, %v4977_v52  ;;  %v1490_v44 = vmul.f32 %v4920_v4, %v5152_v9  ;;  %v5193_v50 = vmax.f32 %v1573_v13, 0.0  ;;  %v1581_v61 = vmul.f32 %v4945_v53, %v5154_v15 }
 0x186   : > { %v2753_v17 = vpop.eup %2752  ;;  %v5198_v49 = vadd.f32 %v1488_v46, %v4971_v39  ;;  %v1499_v47 = vmul.f32 %v4923_v51, %v5152_v9  ;;  %v5202_v63 = vmax.f32 %v1574_v0, 0.0  ;;  %v1680_v52 = vmul.f32 %v5125_v57, %v1657_v37 }
 0x187   : > { %6243 = vst [vmem:[#allocation14_spill] sm:$0xff] %v5189_v62  ;;  %v1659_v16 = vmul.f32 %v2749_v28, %v5065_v21  ;;  %vm1660_vm2 = vcmp.eq.f32.partialorder %v5065_v21, inf  ;;  %v5207_v13 = vmul.f32 %v1749_v26, %v1749_v26  ;;  %v1756_v23 = vmul.f32 %v1751_v60, %v1751_v60 }
 0x188   : > { %2754 = vpow2.f32 %v1584_v59  ;;  %vm1662_vm3 = vcmp.eq.f32.partialorder %v5065_v21, 0.0  ;;  %v1666_v39 = vmul.f32 %v2751_v6, %v5075_v35  ;;  %v1752_v46 = vsub.f32 %v6234_v55, %v5149_v48 }
 0x189   : > { %v1582_v0 = vmul.f32 %v4945_v53, %v5193_v50  ;;  %v1586_v41 = vmul.f32 1.442695, %v1581_v61  ;;  %vm1667_vm4 = vcmp.eq.f32.partialorder %v5075_v35, inf  ;;  %v1673_v37 = vmul.f32 %v2753_v17, %v5080_v27 }
 0x18a   : > { %v1583_v26 = vmul.f32 %v4945_v53, %v5202_v63  ;;  %v1663_v60 = vand.u32 2147483648, %v5065_v21  ;;  %vm1674_vm5 = vcmp.eq.f32.partialorder %v5080_v27, inf  ;;  %v1684_v28 = vsub.f32 1.0, %v1680_v52 }
 0x18b   : > { %v1661_v59 = vsel %vm1660_vm2, %v5065_v21, %v1659_v16  ;;  %vm1669_vm6 = vcmp.eq.f32.partialorder %v5075_v35, 0.0  ;;  %v1670_v6 = vand.u32 2147483648, %v5075_v35  ;;  %v5225_v61 = vadd.f32 %v1756_v23, %v5207_v13 }
 0x18c   : > { %v1668_v58 = vsel %vm1667_vm4, %v5075_v35, %v1666_v39  ;;  %vm1676_vm7 = vcmp.eq.f32.partialorder %v5080_v27, 0.0  ;;  %v1677_v53 = vand.u32 2147483648, %v5080_v27  ;;  %v1757_v17 = vmul.f32 %v1752_v46, %v1752_v46 }
 0x18d   : > { %2756 = vpow2.f32 %v1586_v41  ;;  %v1588_v55 = vmul.f32 1.442695, %v1582_v0  ;;  %v1675_v52 = vsel %vm1674_vm5, %v5080_v27, %v1673_v37  ;;  %v1753_v16 = vsub.f32 %v6235_v3, %v5149_v48 }
 0x18e   : > { %v5235_v62 = vadd.f32 %v5170_v14, %v5085_v7  ;;  %v1590_v23 = vmul.f32 1.442695, %v1583_v26  ;;  %v1664_v39 = vsel %vm1662_vm3, %v1663_v60, %v1661_v59  ;;  %v5239_v5 = vmax.f32 %v1684_v28, 0.0 }
 0x18f   : > { %v1491_v46 = vmul.f32 %v4920_v4, %v5170_v14  ;;  %v1671_v41 = vsel %vm1669_vm6, %v1670_v6, %v1668_v58  ;;  %v1754_v0 = vsub.f32 %v2929_v10, %v5149_v48  ;;  %2758 = vrsqrt.f32 %v5225_v61 }
 0x190   : > { %v5249_v7 = vadd.f32 %v1489_v43, %v4992_v33  ;;  %v1500_v21 = vmul.f32 %v4923_v51, %v5170_v14  ;;  %v1678_v37 = vsel %vm1676_vm7, %v1677_v53, %v1675_v52  ;;  %v5256_v26 = vadd.f32 %v1757_v17, %v5207_v13 }
 0x191   : > { %v5259_v4 = vadd.f32 %v1490_v44, %v5021_v19  ;;  %2760 = vpow2.f32 %v1588_v55  ;;  %v1681_v35 = vmul.f32 %v5125_v57, %v1664_v39  ;;  %v1758_v58 = vmul.f32 %v1753_v16, %v1753_v16 }
 0x192   : > { %v2755_v33 = vpop.eup %2754  ;;  %v1501_v51 = vadd.f32 %v5167_v54, %v4980_v18  ;;  %2762 = vpow2.f32 %v1590_v23  ;;  %v1682_v27 = vmul.f32 %v5125_v57, %v1671_v41  ;;  %v1693_v48 = vmul.f32 %v5132_v11, %v5239_v5 }
 0x193   : > { %v5273_v55 = vadd.f32 %v5185_v1, %v5000_v30  ;;  %v1506_v19 = vmul.f32 %v4931_v31, %v5128_v32  ;;  %v1683_v43 = vmul.f32 %v5125_v57, %v1678_v37  ;;  %v1759_v44 = vmul.f32 %v1754_v0, %v1754_v0 }
 0x194   : > { %v1507_v60 = vmul.f32 %v4931_v31, %v5138_v34  ;;  %v1508_v18 = vmul.f32 %v4931_v31, %v5152_v9  ;;  %v1509_v54 = vmul.f32 %v4931_v31, %v5170_v14  ;;  %2764 = vrsqrt.f32 %v5256_v26 }
 0x195   : > { %v5286_v30 = vadd.f32 %v1499_v47, %v5028_v12  ;;  %v1592_v1 = vmul.f32 %v2755_v33, %v5113_v42  ;;  %v1685_v32 = vsub.f32 1.0, %v1681_v35  ;;  %v5290_v57 = vadd.f32 %v1758_v58, %v5207_v13 }
 0x196   : > { %v5295_v34 = vadd.f32 %v1491_v46, %v5088_v36  ;;  %v5298_v9 = vadd.f32 %v1500_v21, %v5098_v2  ;;  %v1686_v31 = vsub.f32 1.0, %v1682_v27  ;;  %v1697_v12 = vmul.f32 1.442695, %v1693_v48 }
 0x197   : > { %v2757_v14 = vpop.eup %2756  ;;  %v1601_v42 = vmul.f32 %v5107_v25, %v1592_v1  ;;  %v1610_v47 = vmul.f32 %v5110_v40, %v1592_v1  ;;  %v1687_v28 = vsub.f32 1.0, %v1683_v43  ;;  %v5303_v59 = vadd.f32 %v1759_v44, %v5207_v13 }
 0x198   : > { %v1510_v36 = vadd.f32 %v1506_v19, %v5006_v8  ;;  %v1511_v6 = vadd.f32 %v1507_v60, %v5011_v56  ;;  %v5308_v2 = vadd.f32 %v1508_v18, %v5092_v38  ;;  %v5311_v53 = vadd.f32 %v1509_v54, %v5101_v20  ;;  %v6244_v54 = vld [vmem:[#allocation9_spill] sm:$0xff] }
 0x199   : > { %v2759_v17 = vpop.eup %2758  ;;  %v5314_v52 = vadd.f32 %v1592_v1, %v5161_v22  ;;  %v5316_v16 = vmax.f32 %v1685_v32, 0.0  ;;  %2766 = vrsqrt.f32 %v5290_v57  ;;  %v5320_v13 = vstv %s5262_s28  ;;  %s5785_s28 = sld [smem:[#allocation2 + $0x93]] }
 0x19a   : > { %v1593_v8 = vmul.f32 %v2757_v14, %v5154_v15  ;;  %v1619_v56 = vmul.f32 %v5116_v45, %v1592_v1  ;;  %v5326_v38 = vmax.f32 %v1686_v31, 0.0  ;;  %2768 = vpow2.f32 %v1697_v12 }
 0x19b   : > { %v2761_v20 = vpop.eup %2760  ;;  %v5329_v23 = vadd.f32 %v1601_v42, %v5198_v49  ;;  %v5331_v22 = vadd.f32 %v1610_v47, %v1501_v51  ;;  %v5333_v39 = vmax.f32 %v1687_v28, 0.0  ;;  %2770 = vrsqrt.f32 %v5303_v59 }
 0x19c   : > { %v2763_v46 = vpop.eup %2762  ;;  %v1602_v41 = vmul.f32 %v5107_v25, %v1593_v8  ;;  %v1611_v15 = vmul.f32 %v5110_v40, %v1593_v8  ;;  %v1765_v0 = vmul.f32 %v2759_v17, %v5225_v61  ;;  %vm1766_vm8 = vcmp.eq.f32.partialorder %v5225_v61, inf }
 0x19d   : > { %v1620_v21 = vmul.f32 %v5116_v45, %v1593_v8  ;;  %v1694_v49 = vmul.f32 %v5132_v11, %v5316_v16  ;;  %v1861_v37 = vstv %s5292_s30  ;;  %v1863_v35 = vstv %s1855_s2  ;;  %s5888_s30 = sld [smem:[#allocation2 + $0x9a]]  ;;  %s5917_s2 = sld [smem:[#allocation2 + $0x9b]] }
 0x19e   : > { %v2765_v58 = vpop.eup %2764  ;;  %v1594_v33 = vmul.f32 %v2761_v20, %v5193_v50  ;;  %v5345_v51 = vadd.f32 %v1619_v56, %v1510_v36  ;;  %v1695_v27 = vmul.f32 %v5132_v11, %v5326_v38  ;;  %vm1768_vm9 = vcmp.eq.f32.partialorder %v5225_v61, 0.0 }
 0x19f   : > { %v1595_v48 = vmul.f32 %v2763_v46, %v5202_v63  ;;  %v5352_v19 = vadd.f32 %v1593_v8, %v5179_v29  ;;  %v1696_v43 = vmul.f32 %v5132_v11, %v5333_v39  ;;  %v1769_v44 = vand.u32 2147483648, %v5225_v61  ;;  %v6245_v11 = vld [vmem:[#allocation14_spill] sm:$0xff] }
 0x1a0   : > { %v5358_v60 = vadd.f32 %v1602_v41, %v5249_v7  ;;  %v1767_v50 = vsel %vm1766_vm8, %v5225_v61, %v1765_v0  ;;  %v1862_v18 = vsub.f32 %v6232_v24, %v1861_v37  ;;  %v1864_v1 = vsub.f32 %v6244_v54, %v1863_v35  ;;  %v6246_v8 = vld [vmem:[#allocation10_spill] sm:$0xff] }
 0x1a1   : > { %v5364_v32 = vadd.f32 %v1611_v15, %v5273_v55  ;;  %v5366_v63 = vadd.f32 %v1620_v21, %v1511_v6  ;;  %v1699_v29 = vmul.f32 1.442695, %v1694_v49  ;;  %v1772_v31 = vmul.f32 %v2765_v58, %v5256_v26 }
 0x1a2   : > { %v5370_v12 = vadd.f32 %v1594_v33, %v6245_v11  ;;  %v1603_v7 = vmul.f32 %v5107_v25, %v1594_v33  ;;  %v1701_v14 = vmul.f32 1.442695, %v1695_v27  ;;  %vm1773_vm10 = vcmp.eq.f32.partialorder %v5256_v26, inf }
 0x1a3   : > { %v2767_v42 = vpop.eup %2766  ;;  %v1612_v47 = vmul.f32 %v5110_v40, %v1594_v33  ;;  %v1621_v28 = vmul.f32 %v5116_v45, %v1594_v33  ;;  %v1703_v55 = vmul.f32 1.442695, %v1696_v43  ;;  %v1770_v36 = vsel %vm1768_vm9, %v1769_v44, %v1767_v50 }
 0x1a4   : > { %v2769_v6 = vpop.eup %2768  ;;  %v1776_v17 = vand.u32 2147483648, %v5256_v26  ;;  %v1865_v56 = vsub.f32 %v6246_v8, %v1863_v35  ;;  %v5380_v20 = vmul.f32 %v1862_v18, %v1862_v18  ;;  %v1869_v46 = vmul.f32 %v1864_v1, %v1864_v1 }
 0x1a5   : > { %v2771_v41 = vpop.eup %2770  ;;  %2772 = vpow2.f32 %v1699_v29  ;;  %v1774_v15 = vsel %vm1773_vm10, %v5256_v26, %v1772_v31  ;;  %vm1775_vm11 = vcmp.eq.f32.partialorder %v5256_v26, 0.0  ;;  %v1866_v0 = vsub.f32 %v6235_v3, %v1863_v35 }
 0x1a6   : > { %v5386_v21 = vadd.f32 %v1595_v48, %v5235_v62  ;;  %2774 = vpow2.f32 %v1701_v14  ;;  %v1779_v61 = vmul.f32 %v2767_v42, %v5290_v57  ;;  %v1793_v49 = vmul.f32 %v5320_v13, %v1770_v36  ;;  %v6247_v14 = vld [vmem:[#allocation16_spill] sm:$0xff] }
 0x1a7   : > { %v1604_v37 = vmul.f32 %v5107_v25, %v1595_v48  ;;  %v1613_v58 = vmul.f32 %v5110_v40, %v1595_v48  ;;  %2776 = vpow2.f32 %v1703_v55  ;;  %vm1780_vm12 = vcmp.eq.f32.partialorder %v5290_v57, inf  ;;  %v6248_v55 = vld [vmem:[#allocation12_spill] sm:$0xff] }
 0x1a8   : > { %v1777_v26 = vsel %vm1775_vm11, %v1776_v17, %v1774_v15  ;;  %v1786_v33 = vmul.f32 %v2771_v41, %v5303_v59  ;;  %v1870_v27 = vmul.f32 %v1865_v56, %v1865_v56  ;;  %v5397_v62 = vadd.f32 %v1869_v46, %v5380_v20 }
 0x1a9   : > { %v1783_v43 = vand.u32 2147483648, %v5290_v57  ;;  %vm1787_vm13 = vcmp.eq.f32.partialorder %v5303_v59, inf  ;;  %v1867_v25 = vsub.f32 %v2929_v10, %v1863_v35  ;;  %v1871_v44 = vmul.f32 %v1866_v0, %v1866_v0 }
 0x1aa   : > { %v1622_v40 = vmul.f32 %v5116_v45, %v1595_v48  ;;  %v1781_v50 = vsel %vm1780_vm12, %v5290_v57, %v1779_v61  ;;  %vm1782_vm14 = vcmp.eq.f32.partialorder %v5290_v57, 0.0  ;;  %v1797_v18 = vsub.f32 1.0, %v1793_v49 }
 0x1ab   : > { %v5406_v1 = vadd.f32 %v1603_v7, %v5259_v4  ;;  %v1705_v29 = vmul.f32 %v2769_v6, %v5239_v5  ;;  %v1790_v31 = vand.u32 2147483648, %v5303_v59  ;;  %v1794_v11 = vmul.f32 %v5320_v13, %v1777_v26 }
 0x1ac   : > { %v1788_v45 = vsel %vm1787_vm13, %v5303_v59, %v1786_v33  ;;  %vm1789_vm15 = vcmp.eq.f32.partialorder %v5303_v59, 0.0  ;;  %v5422_v4 = vadd.f32 %v1870_v27, %v5380_v20  ;;  %2778 = vrsqrt.f32 %v5397_v62 }
 0x1ad   : > { %v5426_v5 = vadd.f32 %v1612_v47, %v5286_v30  ;;  %v1784_v57 = vsel %vm1782_vm14, %v1783_v43, %v1781_v50  ;;  %v1872_v35 = vmul.f32 %v1867_v25, %v1867_v25  ;;  %v5433_v48 = vadd.f32 %v1871_v44, %v5380_v20  ;;  %v6249_v47 = vld [vmem:[#allocation13_spill] sm:$0xff] }
 0x1ae   : > { %v5436_v7 = vadd.f32 %v1621_v28, %v5308_v2  ;;  %v1714_v42 = vmul.f32 %v6247_v14, %v1705_v29  ;;  %v1723_v36 = vmul.f32 %v6248_v55, %v1705_v29  ;;  %v5440_v6 = vmax.f32 %v1797_v18, 0.0 }
 0x1af   : > { %v2773_v30 = vpop.eup %2772  ;;  %v1732_v17 = vmul.f32 %v6249_v47, %v1705_v29  ;;  %v1791_v56 = vsel %vm1789_vm15, %v1790_v31, %v1788_v45  ;;  %v1798_v46 = vsub.f32 1.0, %v1794_v11  ;;  %v5450_v41 = vstv %s5392_s3  ;;  %s6023_s3 = sld [smem:[#allocation2 + $0x95]] }
 0x1b0   : > { %v2775_v2 = vpop.eup %2774  ;;  %v5453_v28 = vadd.f32 %v1604_v37, %v5295_v34  ;;  %v5456_v15 = vadd.f32 %v1613_v58, %v5298_v9  ;;  %v1795_v0 = vmul.f32 %v5320_v13, %v1784_v57  ;;  %2780 = vrsqrt.f32 %v5422_v4 }
 0x1b1   : > { %v2777_v61 = vpop.eup %2776  ;;  %v5461_v59 = vadd.f32 %v1622_v40, %v5311_v53  ;;  %v5464_v49 = vadd.f32 %v1705_v29, %v5314_v52  ;;  %v5467_v34 = vadd.f32 %v1872_v35, %v5380_v20  ;;  %2782 = vrsqrt.f32 %v5433_v48 }
 0x1b2   : > { %v5471_v9 = vadd.f32 %v1714_v42, %v5329_v23  ;;  %v5474_v37 = vadd.f32 %v1723_v36, %v5331_v22  ;;  %v1796_v53 = vmul.f32 %v5320_v13, %v1791_v56  ;;  %v1806_v58 = vmul.f32 %v5450_v41, %v5440_v6 }
 0x1b3   : > { %v1706_v52 = vmul.f32 %v2773_v30, %v5316_v16  ;;  %v5483_v20 = vadd.f32 %v1732_v17, %v5345_v51  ;;  %v5485_v23 = vmax.f32 %v1798_v46, 0.0  ;;  %v5488_v22 = vstv %s5409_s4  ;;  %s6034_s4 = sld [smem:[#allocation2 + $0x96]] }
 0x1b4   : > { %v1707_v13 = vmul.f32 %v2775_v2, %v5326_v38  ;;  %v1799_v26 = vsub.f32 1.0, %v1795_v0  ;;  %v5492_v33 = vstv %s5415_s6  ;;  %v5495_v27 = vstv %s5417_s7  ;;  %s6056_s6 = sld [smem:[#allocation2 + $0x9d]]  ;;  %s6058_s7 = sld [smem:[#allocation2 + $0x9e]] }
 0x1b5   : > { %v5498_v43 = vmul.f32 %v2777_v61, %v5333_v39  ;;  %2784 = vrsqrt.f32 %v5467_v34  ;;  %v5502_v16 = vstv %s5428_s8  ;;  %v5505_v51 = vstv %s5430_s9  ;;  %s6139_s8 = scalar_lea.vmem [#allocation5], %s2368_s13  ;;  %s2905_s13 = smov (%p38_p5), [#allocation5]  }
 0x1b6   : > { %v2779_v25 = vpop.eup %2778  ;;  %v1800_v44 = vsub.f32 1.0, %v1796_v53  ;;  %v1810_v40 = vmul.f32 1.442695, %v1806_v58  ;;  %v5508_v50 = vstv %s5442_s10  ;;  %v5511_v38 = vstv %s5444_s11  ;;  %s2343_s9 = sshll.u32 (%p38_p5), %s2905_s13, 4  ;;  %s2344_s9 = int_to_ptr.vmem [resolvable:$true] %s2343_s9 }
 0x1b7   : > { %v5516_v18 = vadd.f32 %v1706_v52, %v5352_v19  ;;  %v1715_v39 = vmul.f32 %v6247_v14, %v1706_v52  ;;  %v1724_v29 = vmul.f32 %v6248_v55, %v1706_v52  ;;  %v1807_v31 = vmul.f32 %v5450_v41, %v5485_v23  ;;  %s2870_s10 = scalar_lea.vmem (%p38_p5), %s2344_s9, 6144  ;;  %p2875_p7 = scmp.lt.s32.totalorder (%p38_p5), %s2344_s9, %s2344_s9 }
 0x1b8   : > { %v5523_v11 = vadd.f32 %v1707_v13, %v5370_v12  ;;  %v1716_v45 = vmul.f32 %v6247_v14, %v1707_v13  ;;  %v1725_v57 = vmul.f32 %v6248_v55, %v1707_v13  ;;  %v5527_v35 = vmax.f32 %v1799_v26, 0.0  ;;  %p2871_p6 = scmp.ne.s32.totalorder (%p38_p5), %s2344_s9, %s2870_s10  ;;  %p2876_p8 = scmp.lt.s32.totalorder (%p38_p5), %s2870_s10, %s2870_s10 }
 0x1b9   : > { %v5531_v19 = vadd.f32 %v5498_v43, %v5386_v21  ;;  %v1717_v42 = vmul.f32 %v6247_v14, %v5498_v43  ;;  %v1733_v36 = vmul.f32 %v6249_v47, %v1706_v52  ;;  %v1878_v30 = vmul.f32 %v2779_v25, %v5397_v62 }
 0x1ba   : > { %v2781_v17 = vpop.eup %2780  ;;  %v5537_v12 = vmax.f32 %v1800_v44, 0.0  ;;  %vm1879_vm0 = vcmp.eq.f32.partialorder %v5397_v62, inf  ;;  %v1974_v56 = vstv %s5479_s12  ;;  %v5541_v46 = vstv %s1968_s15  ;;  %p2877_p9 = por (%p38_p5), %p2876_p8, %p2875_p7 }
 0x1bb   : > { %v2783_v2 = vpop.eup %2782  ;;  %v5546_v21 = vadd.f32 %v1715_v39, %v5358_v60  ;;  %v1726_v14 = vmul.f32 %v6248_v55, %v5498_v43  ;;  %2786 = vpow2.f32 %v1810_v40  ;;  %v1812_v0 = vmul.f32 1.442695, %v1807_v31 }
 0x1bc   : > { %v5551_v61 = vadd.f32 %v1716_v45, %v5406_v1  ;;  %v5554_v53 = vadd.f32 %v1724_v29, %v5364_v32  ;;  %v1808_v58 = vmul.f32 %v5450_v41, %v5527_v35  ;;  %v1882_v52 = vand.u32 2147483648, %v5397_v62  ;;  %p2878_p10 = pnand (%p38_p5), %p2877_p9, %p2871_p6 }
 0x1bd   : > { %v1880_v26 = vsel %vm1879_vm0, %v5397_v62, %v1878_v30  ;;  %vm1881_vm1 = vcmp.eq.f32.partialorder %v5397_v62, 0.0  ;;  %v1975_v60 = vsub.f32 %v6232_v24, %v1974_v56  ;;  %v1977_v55 = vsub.f32 %v6244_v54, %v5541_v46 }
 0x1be   : > { %v5565_v1 = vadd.f32 %v1725_v57, %v5426_v5  ;;  %v1809_v32 = vmul.f32 %v5450_v41, %v5537_v12  ;;  %v1885_v25 = vmul.f32 %v2781_v17, %v5422_v4  ;;  %v1892_v44 = vmul.f32 %v2783_v2, %v5433_v48 }
 0x1bf   : > { %v2785_v40 = vpop.eup %2784  ;;  %v1734_v62 = vmul.f32 %v6249_v47, %v1707_v13  ;;  %2788 = vpow2.f32 %v1812_v0  ;;  %vm1886_vm2 = vcmp.eq.f32.partialorder %v5422_v4, inf  ;;  %vm1893_vm3 = vcmp.eq.f32.partialorder %v5433_v48, inf }
 0x1c0   : > { %v1814_v5 = vmul.f32 1.442695, %v1808_v58  ;;  %v1883_v39 = vsel %vm1881_vm1, %v1882_v52, %v1880_v26  ;;  %vm1888_vm4 = vcmp.eq.f32.partialorder %v5422_v4, 0.0  ;;  %v1889_v41 = vand.u32 2147483648, %v5422_v4 }
 0x1c1   : > { %vm1895_vm5 = vcmp.eq.f32.partialorder %v5433_v48, 0.0  ;;  %v1896_v29 = vand.u32 2147483648, %v5433_v48  ;;  %v5582_v13 = vmul.f32 %v1975_v60, %v1975_v60  ;;  %v1982_v31 = vmul.f32 %v1977_v55, %v1977_v55 }
 0x1c2   : > { %v1816_v45 = vmul.f32 1.442695, %v1809_v32  ;;  %v1887_v57 = vsel %vm1886_vm2, %v5422_v4, %v1885_v25  ;;  %v1894_v30 = vsel %vm1893_vm3, %v5433_v48, %v1892_v44  ;;  %v1899_v17 = vmul.f32 %v2785_v40, %v5467_v34 }
 0x1c3   : > { %v5592_v56 = vadd.f32 %v1717_v42, %v5453_v28  ;;  %v1735_v2 = vmul.f32 %v6249_v47, %v5498_v43  ;;  %vm1900_vm6 = vcmp.eq.f32.partialorder %v5467_v34, inf  ;;  %v1906_v0 = vmul.f32 %v5502_v16, %v1883_v39 }
 0x1c4   : > { %v5599_v58 = vadd.f32 %v1726_v14, %v5456_v15  ;;  %v1737_v52 = vadd.f32 %v1733_v36, %v5366_v63  ;;  %2790 = vpow2.f32 %v1814_v5  ;;  %vm1902_vm7 = vcmp.eq.f32.partialorder %v5467_v34, 0.0 }
 0x1c5   : > { %v2787_v26 = vpop.eup %2786  ;;  %v1890_v28 = vsel %vm1888_vm4, %v1889_v41, %v1887_v57  ;;  %v1897_v42 = vsel %vm1895_vm5, %v1896_v29, %v1894_v30  ;;  %v1903_v47 = vand.u32 2147483648, %v5467_v34  ;;  %v5609_v43 = vadd.f32 %v1982_v31, %v5582_v13 }
 0x1c6   : > { %2792 = vpow2.f32 %v1816_v45  ;;  %v1901_v15 = vsel %vm1900_vm6, %v5467_v34, %v1899_v17  ;;  %v2087_v14 = vstv %s5571_s17  ;;  %v5613_v63 = vstv %s2081_s20 }
 0x1c7   : > { %v5616_v36 = vadd.f32 %v1734_v62, %v5436_v7  ;;  %v5619_v4 = vadd.f32 %v1735_v2, %v5461_v59  ;;  %v1910_v48 = vsub.f32 1.0, %v1906_v0  ;;  %v1978_v60 = vsub.f32 %v6246_v8, %v5541_v46 }
 0x1c8   : > { %v1818_v55 = vmul.f32 %v2787_v26, %v5440_v6  ;;  %v1907_v32 = vmul.f32 %v5502_v16, %v1890_v28  ;;  %v1908_v25 = vmul.f32 %v5502_v16, %v1897_v42  ;;  %v1979_v44 = vsub.f32 %v6235_v3, %v5541_v46 }
 0x1c9   : > { %v2789_v40 = vpop.eup %2788  ;;  %v1904_v7 = vsel %vm1902_vm7, %v1903_v47, %v1901_v15  ;;  %2794 = vrsqrt.f32 %v5609_v43  ;;  %v2088_v59 = vsub.f32 %v6232_v24, %v2087_v14  ;;  %v2090_v62 = vsub.f32 %v6244_v54, %v5613_v63 }
 0x1ca   : > { %v1827_v6 = vmul.f32 %v5488_v22, %v1818_v55  ;;  %v5636_v5 = vstv %s5584_s19  ;;  %v1980_v39 = vsub.f32 %v2929_v10, %v5541_v46  ;;  %v5641_v41 = vstv %s5580_s18 }
 0x1cb   : > { %v1836_v29 = vmul.f32 %v5492_v33, %v1818_v55  ;;  %v1845_v34 = vmul.f32 %v5495_v27, %v1818_v55  ;;  %v5645_v31 = vmax.f32 %v1910_v48, 0.0  ;;  %v1983_v45 = vmul.f32 %v1978_v60, %v1978_v60 }
 0x1cc   : > { %v1819_v57 = vmul.f32 %v2789_v40, %v5485_v23  ;;  %v1909_v30 = vmul.f32 %v5502_v16, %v1904_v7  ;;  %v1911_v17 = vsub.f32 1.0, %v1907_v32  ;;  %v1912_v2 = vsub.f32 1.0, %v1908_v25 }
 0x1cd   : > { %v5650_v0 = vadd.f32 %v1818_v55, %v5464_v49  ;;  %v1984_v26 = vmul.f32 %v1979_v44, %v1979_v44  ;;  %v5652_v46 = vmul.f32 %v2088_v59, %v2088_v59  ;;  %v2095_v28 = vmul.f32 %v2090_v62, %v2090_v62 }
 0x1ce   : > { %v2791_v42 = vpop.eup %2790  ;;  %v1828_v47 = vmul.f32 %v5488_v22, %v1819_v57  ;;  %v5656_v15 = vadd.f32 %v1827_v6, %v5471_v9  ;;  %v1837_v14 = vmul.f32 %v5492_v33, %v1819_v57  ;;  %v1846_v23 = vmul.f32 %v5495_v27, %v1819_v57 }
 0x1cf   : > { %v5661_v16 = vadd.f32 %v1836_v29, %v5474_v37  ;;  %v5664_v49 = vadd.f32 %v1845_v34, %v5483_v20  ;;  %v1919_v48 = vmul.f32 %v5505_v51, %v5645_v31  ;;  %v1985_v60 = vmul.f32 %v1980_v39, %v1980_v39 }
 0x1d0   : > { %v2793_v55 = vpop.eup %2792  ;;  %v1913_v32 = vsub.f32 1.0, %v1909_v30  ;;  %v5668_v25 = vmax.f32 %v1911_v17, 0.0  ;;  %v5670_v9 = vmax.f32 %v1912_v2, 0.0  ;;  %v5673_v44 = vadd.f32 %v1983_v45, %v5582_v13 }
 0x1d1   : > { %v1820_v40 = vmul.f32 %v2791_v42, %v5527_v35  ;;  %v5677_v37 = vadd.f32 %v1819_v57, %v5516_v18  ;;  %v5680_v20 = vadd.f32 %v1984_v26, %v5582_v13  ;;  %v5683_v7 = vadd.f32 %v2095_v28, %v5652_v46 }
 0x1d2   : > { %v5686_v59 = vadd.f32 %v1828_v47, %v5546_v21  ;;  %v5689_v62 = vadd.f32 %v1837_v14, %v5554_v53  ;;  %v5691_v6 = vadd.f32 %v1846_v23, %v1737_v52  ;;  %v2091_v35 = vsub.f32 %v6246_v8, %v5613_v63 }
 0x1d3   : > { %v2795_v18 = vpop.eup %2794  ;;  %v1821_v39 = vmul.f32 %v2793_v55, %v5537_v12  ;;  %v1923_v29 = vmul.f32 1.442695, %v1919_v48  ;;  %v5699_v34 = vadd.f32 %v1985_v60, %v5582_v13  ;;  %vm1992_vm8 = vcmp.eq.f32.partialorder %v5609_v43, inf }
 0x1d4   : > { %v5702_v21 = vmax.f32 %v1913_v32, 0.0  ;;  %v1920_v53 = vmul.f32 %v5505_v51, %v5668_v25  ;;  %v1921_v52 = vmul.f32 %v5505_v51, %v5670_v9  ;;  %2796 = vrsqrt.f32 %v5673_v44 }
 0x1d5   : > { %v5710_v45 = vadd.f32 %v1820_v40, %v5523_v11  ;;  %v1829_v12 = vmul.f32 %v5488_v22, %v1820_v40  ;;  %v2092_v13 = vsub.f32 %v6235_v3, %v5613_v63  ;;  %2798 = vrsqrt.f32 %v5683_v7 }
 0x1d6   : > { %v1838_v57 = vmul.f32 %v5492_v33, %v1820_v40  ;;  %v1847_v30 = vmul.f32 %v5495_v27, %v1820_v40  ;;  %v1991_v17 = vmul.f32 %v2795_v18, %v5609_v43  ;;  %v2096_v2 = vmul.f32 %v2091_v35, %v2091_v35 }
 0x1d7   : > { %v5722_v26 = vadd.f32 %v1821_v39, %v5531_v19  ;;  %v1830_v11 = vmul.f32 %v5488_v22, %v1821_v39  ;;  %v1839_v28 = vmul.f32 %v5492_v33, %v1821_v39  ;;  %2800 = vpow2.f32 %v1923_v29 }
 0x1d8   : > { %v1848_v42 = vmul.f32 %v5495_v27, %v1821_v39  ;;  %v1922_v47 = vmul.f32 %v5505_v51, %v5702_v21  ;;  %v1925_v14 = vmul.f32 1.442695, %v1920_v53  ;;  %2802 = vrsqrt.f32 %v5680_v20 }
 0x1d9   : > { %v1995_v23 = vand.u32 2147483648, %v5609_v43  ;;  %2804 = vrsqrt.f32 %v5699_v34  ;;  %v2093_v19 = vsub.f32 %v2929_v10, %v5613_v63  ;;  %v2097_v48 = vmul.f32 %v2092_v13, %v2092_v13 }
 0x1da   : > { %v5735_v22 = vadd.f32 %v1829_v12, %v5551_v61  ;;  %v1993_v33 = vsel %vm1992_vm8, %v5609_v43, %v1991_v17  ;;  %vm1994_vm9 = vcmp.eq.f32.partialorder %v5609_v43, 0.0  ;;  %v5742_v27 = vadd.f32 %v2096_v2, %v5652_v46 }
 0x1db   : > { %v5747_v51 = vadd.f32 %v1830_v11, %v5592_v56  ;;  %v5750_v60 = vadd.f32 %v1838_v57, %v5565_v1  ;;  %v5753_v63 = vadd.f32 %v1847_v30, %v5616_v36  ;;  %v1927_v61 = vmul.f32 1.442695, %v1921_v52 }
 0x1dc   : > { %v5756_v55 = vadd.f32 %v1839_v28, %v5599_v58  ;;  %v5759_v43 = vadd.f32 %v1848_v42, %v5619_v4  ;;  %2806 = vpow2.f32 %v1925_v14  ;;  %vm1999_vm10 = vcmp.eq.f32.partialorder %v5673_v44, inf }
 0x1dd   : > { %v1929_v56 = vmul.f32 1.442695, %v1922_v47  ;;  %v1996_v1 = vsel %vm1994_vm9, %v1995_v23, %v1993_v33  ;;  %v2098_v32 = vmul.f32 %v2093_v19, %v2093_v19  ;;  %v5767_v36 = vadd.f32 %v2097_v48, %v5652_v46 }
 0x1de   : > { %v2797_v40 = vpop.eup %2796  ;;  %vm2001_vm11 = vcmp.eq.f32.partialorder %v5673_v44, 0.0  ;;  %v2002_v58 = vand.u32 2147483648, %v5673_v44  ;;  %2808 = vrsqrt.f32 %v5742_v27  ;;  %v2200_v4 = vstv %s5719_s22 }
 0x1df   : > { %v5775_v35 = vstv %s2194_s23  ;;  %v2799_v18 = vpop.eup %2798  ;;  %2810 = vpow2.f32 %v1927_v61  ;;  %vm2006_vm12 = vcmp.eq.f32.partialorder %v5680_v20, inf  ;;  %vm2105_vm13 = vcmp.eq.f32.partialorder %v5683_v7, inf }
 0x1e0   : > { %v2201_v39 = vsub.f32 %v6232_v24, %v2200_v4  ;;  %v2019_v29 = vmul.f32 %v5641_v41, %v1996_v1  ;;  %v2104_v53 = vmul.f32 %v2799_v18, %v5683_v7  ;;  %v2108_v52 = vand.u32 2147483648, %v5683_v7 }
 0x1e1   : > { %v2203_v12 = vsub.f32 %v6244_v54, %v5775_v35  ;;  %v2801_v13 = vpop.eup %2800  ;;  %v5794_v57 = vadd.f32 %v2098_v32, %v5652_v46  ;;  %vm2107_vm14 = vcmp.eq.f32.partialorder %v5683_v7, 0.0  ;;  %2812 = vrsqrt.f32 %v5767_v36 }
 0x1e2   : > { %v5798_v24 = vmul.f32 %v2201_v39, %v2201_v39  ;;  %v2803_v30 = vpop.eup %2802  ;;  %v1998_v17 = vmul.f32 %v2797_v40, %v5673_v44  ;;  %vm2008_vm15 = vcmp.eq.f32.partialorder %v5680_v20, 0.0  ;;  %v2106_v54 = vsel %vm2105_vm13, %v5683_v7, %v2104_v53 }
 0x1e3   : > { %v2208_v2 = vmul.f32 %v2203_v12, %v2203_v12  ;;  %v2805_v46 = vpop.eup %2804  ;;  %2814 = vpow2.f32 %v1929_v56  ;;  %v2009_v11 = vand.u32 2147483648, %v5680_v20  ;;  %vm2013_vm0 = vcmp.eq.f32.partialorder %v5699_v34, inf }
 0x1e4   : > { %vm2015_vm1 = vcmp.eq.f32.partialorder %v5699_v34, 0.0  ;;  %v1931_v28 = vmul.f32 %v2801_v13, %v5645_v31  ;;  %v2023_v42 = vsub.f32 1.0, %v2019_v29  ;;  %v2109_v47 = vsel %vm2107_vm14, %v2108_v52, %v2106_v54 }
 0x1e5   : > { %v5810_v14 = vstv %s5762_s14  ;;  %v2016_v7 = vand.u32 2147483648, %v5699_v34  ;;  %v5814_v23 = vstv %s5764_s24  ;;  %2816 = vrsqrt.f32 %v5794_v57 }
 0x1e6   : > { %v5818_v19 = vadd.f32 %v2208_v2, %v5798_v24  ;;  %v2807_v48 = vpop.eup %2806  ;;  %v2000_v31 = vsel %vm1999_vm10, %v5673_v44, %v1998_v17  ;;  %v2005_v33 = vmul.f32 %v2803_v30, %v5680_v20  ;;  %v2012_v61 = vmul.f32 %v2805_v46, %v5699_v34 }
 0x1e7   : > { %v5826_v56 = vstv %s5769_s25  ;;  %v5829_v1 = vstv %s5777_s26  ;;  %v5832_v32 = vstv %s5779_s27  ;;  %v2132_v40 = vmul.f32 %v5810_v14, %v2109_v47 }
 0x1e8   : > { %v2204_v4 = vsub.f32 %v6246_v8, %v5775_v35  ;;  %v2809_v18 = vpop.eup %2808  ;;  %v5838_v39 = vadd.f32 %v1931_v28, %v5650_v0  ;;  %v5840_v29 = vmax.f32 %v2023_v42, 0.0  ;;  %v5843_v53 = vstv %s5785_s28 }
 0x1e9   : > { %v5846_v52 = vstv %s5787_s29  ;;  %v2811_v12 = vpop.eup %2810  ;;  %v1940_v13 = vmul.f32 %v5508_v50, %v1931_v28  ;;  %v1949_v30 = vmul.f32 %v5511_v38, %v1931_v28  ;;  %v2003_v17 = vsel %vm2001_vm11, %v2002_v58, %v2000_v31 }
 0x1ea   : > { %2818 = vrsqrt.f32 %v5818_v19  ;;  %v5854_v8 = vmul.f32 %v5636_v5, %v1931_v28  ;;  %v2007_v0 = vsel %vm2006_vm12, %v5680_v20, %v2005_v33  ;;  %v2014_v54 = vsel %vm2013_vm0, %v5699_v34, %v2012_v61 }
 0x1eb   : > { %v2205_v2 = vsub.f32 %v6235_v3, %v5775_v35  ;;  %v2813_v46 = vpop.eup %2812  ;;  %v5865_v44 = vmul.f32 %v2807_v48, %v5668_v25  ;;  %v2111_v58 = vmul.f32 %v2809_v18, %v5742_v27  ;;  %v2136_v42 = vsub.f32 1.0, %v2132_v40 }
 0x1ec   : > { %v2209_v28 = vmul.f32 %v2204_v4, %v2204_v4  ;;  %v5869_v47 = vmul.f32 %v2811_v12, %v5670_v9  ;;  %v2020_v31 = vmul.f32 %v5641_v41, %v2003_v17  ;;  %v2032_v33 = vmul.f32 %v5814_v23, %v5840_v29 }
 0x1ed   : > { %vm2112_vm2 = vcmp.eq.f32.partialorder %v5742_v27, inf  ;;  %v2815_v61 = vpop.eup %2814  ;;  %v5876_v3 = vadd.f32 %v1940_v13, %v5656_v15  ;;  %v5879_v25 = vadd.f32 %v1949_v30, %v5661_v16  ;;  %v2010_v48 = vsel %vm2008_vm15, %v2009_v11, %v2007_v0 }
 0x1ee   : > { %v2017_v9 = vsel %vm2015_vm1, %v2016_v7, %v2014_v54  ;;  %vm2114_vm3 = vcmp.eq.f32.partialorder %v5742_v27, 0.0  ;;  %v2115_v40 = vand.u32 2147483648, %v5742_v27  ;;  %v2118_v4 = vmul.f32 %v2813_v46, %v5767_v36 }
 0x1ef   : > { %v2210_v18 = vmul.f32 %v2205_v2, %v2205_v2  ;;  %v2817_v15 = vpop.eup %2816  ;;  %v2113_v12 = vsel %vm2112_vm2, %v5742_v27, %v2111_v58  ;;  %vm2119_vm4 = vcmp.eq.f32.partialorder %v5767_v36, inf  ;;  %v5892_v16 = vmax.f32 %v2136_v42, 0.0 }
 0x1f0   : > { %v5895_v20 = vadd.f32 %v2209_v28, %v5798_v24  ;;  %v2021_v34 = vmul.f32 %v5641_v41, %v2010_v48  ;;  %v2022_v11 = vmul.f32 %v5641_v41, %v2017_v9  ;;  %v2024_v7 = vsub.f32 1.0, %v2020_v31 }
 0x1f1   : > { %v2036_v13 = vmul.f32 1.442695, %v2032_v33  ;;  %vm2121_vm5 = vcmp.eq.f32.partialorder %v5767_v36, 0.0  ;;  %v2122_v30 = vand.u32 2147483648, %v5767_v36  ;;  %vm2126_vm6 = vcmp.eq.f32.partialorder %v5794_v57, inf }
 0x1f2   : > { %v2206_v17 = vsub.f32 %v2929_v10, %v5775_v35  ;;  %v2116_v0 = vsel %vm2114_vm3, %v2115_v40, %v2113_v12  ;;  %v2120_v54 = vsel %vm2119_vm4, %v5767_v36, %v2118_v4  ;;  %v2125_v2 = vmul.f32 %v2817_v15, %v5794_v57 }
 0x1f3   : > { %v5909_v41 = vadd.f32 %v2210_v18, %v5798_v24  ;;  %v2145_v58 = vmul.f32 %v5843_v53, %v5892_v16  ;;  %vm2218_vm7 = vcmp.eq.f32.partialorder %v5818_v19, inf  ;;  %v2221_v42 = vand.u32 2147483648, %v5818_v19 }
 0x1f4   : > { %v2819_v46 = vpop.eup %2818  ;;  %2820 = vrsqrt.f32 %v5895_v20  ;;  %vm2128_vm8 = vcmp.eq.f32.partialorder %v5794_v57, 0.0  ;;  %vm2220_vm9 = vcmp.eq.f32.partialorder %v5818_v19, 0.0  ;;  %v2123_v35 = vsel %vm2121_vm5, %v2122_v30, %v2120_v54 }
 0x1f5   : > { %2822 = vpow2.f32 %v2036_v13  ;;  %v2217_v27 = vmul.f32 %v2819_v46, %v5818_v19  ;;  %v2129_v28 = vand.u32 2147483648, %v5794_v57  ;;  %v2133_v31 = vmul.f32 %v5810_v14, %v2116_v0 }
 0x1f6   : > { %v2211_v33 = vmul.f32 %v2206_v17, %v2206_v17  ;;  %v2127_v48 = vsel %vm2126_vm6, %v5794_v57, %v2125_v2  ;;  %2824 = vrsqrt.f32 %v5909_v41  ;;  %v5931_v40 = vstv %s5888_s30 }
 0x1f7   : > { %v2219_v9 = vsel %vm2218_vm7, %v5818_v19, %v2217_v27  ;;  %v2025_v4 = vsub.f32 1.0, %v2021_v34  ;;  %v2026_v18 = vsub.f32 1.0, %v2022_v11  ;;  %v2149_v15 = vmul.f32 1.442695, %v2145_v58 }
 0x1f8   : > { %v2222_v36 = vsel %vm2220_vm9, %v2221_v42, %v2219_v9  ;;  %v5934_v12 = vmul.f32 %v2815_v61, %v5702_v21  ;;  %v5938_v13 = vadd.f32 %v5854_v8, %v5664_v49  ;;  %v5940_v30 = vmax.f32 %v2024_v7, 0.0 }
 0x1f9   : > { %v2134_v17 = vmul.f32 %v5810_v14, %v2123_v35  ;;  %v2130_v19 = vsel %vm2128_vm8, %v2129_v28, %v2127_v48  ;;  %v2137_v0 = vsub.f32 1.0, %v2133_v31  ;;  %v5946_v34 = vadd.f32 %v2211_v33, %v5798_v24 }
 0x1fa   : > { %v2245_v11 = vmul.f32 %v5931_v40, %v2222_v36  ;;  %v5951_v21 = vadd.f32 %v5865_v44, %v5677_v37  ;;  %v5955_v49 = vadd.f32 %v5869_v47, %v5710_v45  ;;  %v1941_v8 = vmul.f32 %v5508_v50, %v5865_v44 }
 0x1fb   : > { %v1950_v57 = vmul.f32 %v5511_v38, %v5865_v44  ;;  %v5961_v61 = vmax.f32 %v2025_v4, 0.0  ;;  %v5963_v24 = vmax.f32 %v2026_v18, 0.0  ;;  %2826 = vpow2.f32 %v2149_v15 }
 0x1fc   : > { %v2249_v7 = vsub.f32 1.0, %v2245_v11  ;;  %v2033_v37 = vmul.f32 %v5814_v23, %v5940_v30  ;;  %v2135_v54 = vmul.f32 %v5810_v14, %v2130_v19  ;;  %v2138_v2 = vsub.f32 1.0, %v2134_v17 }
 0x1fd   : > { %v5969_v45 = vstv %s5917_s2  ;;  %v5971_v58 = vmax.f32 %v2137_v0, 0.0  ;;  %vm2225_vm10 = vcmp.eq.f32.partialorder %v5895_v20, inf  ;;  %2828 = vrsqrt.f32 %v5946_v34 }
 0x1fe   : > { %v2821_v46 = vpop.eup %2820  ;;  %v5975_v42 = vmax.f32 %v2249_v7, 0.0  ;;  %v1942_v35 = vmul.f32 %v5508_v50, %v5869_v47  ;;  %v1951_v28 = vmul.f32 %v5511_v38, %v5869_v47  ;;  %v5983_v14 = vmul.f32 %v5636_v5, %v5865_v44 }
 0x1ff   : > { %v2823_v27 = vpop.eup %2822  ;;  %v2224_v31 = vmul.f32 %v2821_v46, %v5895_v20  ;;  %v5988_v33 = vadd.f32 %v5934_v12, %v5722_v26  ;;  %v2034_v48 = vmul.f32 %v5814_v23, %v5961_v61  ;;  %v2228_v9 = vand.u32 2147483648, %v5895_v20 }
 0x200   : > { %v2258_v4 = vmul.f32 %v5969_v45, %v5975_v42  ;;  %v2825_v18 = vpop.eup %2824  ;;  %v2035_v15 = vmul.f32 %v5814_v23, %v5963_v24  ;;  %v2139_v44 = vsub.f32 1.0, %v2135_v54  ;;  %vm2227_vm11 = vcmp.eq.f32.partialorder %v5895_v20, 0.0 }
 0x201   : > { %v2226_v36 = vsel %vm2225_vm10, %v5895_v20, %v2224_v31  ;;  %v2038_v17 = vmul.f32 1.442695, %v2033_v37  ;;  %v5999_v26 = vmax.f32 %v2138_v2, 0.0  ;;  %v2146_v19 = vmul.f32 %v5843_v53, %v5971_v58 }
 0x202   : > { %v2262_v0 = vmul.f32 1.442695, %v2258_v4  ;;  %v1943_v11 = vmul.f32 %v5508_v50, %v5934_v12  ;;  %v6006_v7 = vadd.f32 %v1941_v8, %v5686_v59  ;;  %v6009_v23 = vadd.f32 %v1942_v35, %v5735_v22 }
 0x203   : > { %v6013_v54 = vmul.f32 %v5511_v38, %v5934_v12  ;;  %v2040_v20 = vmul.f32 1.442695, %v2034_v48  ;;  %v2229_v37 = vsel %vm2227_vm11, %v2228_v9, %v2226_v36  ;;  %v2231_v2 = vmul.f32 %v2825_v18, %v5909_v41 }
 0x204   : > { %2830 = vpow2.f32 %v2262_v0  ;;  %v2042_v46 = vmul.f32 1.442695, %v2035_v15  ;;  %v2044_v31 = vmul.f32 %v2823_v27, %v5840_v29  ;;  %v6017_v4 = vmax.f32 %v2139_v44, 0.0 }
 0x205   : > { %vm2232_vm12 = vcmp.eq.f32.partialorder %v5909_v41, inf  ;;  %v2827_v50 = vpop.eup %2826  ;;  %v6021_v59 = vadd.f32 %v1950_v57, %v5689_v62  ;;  %2832 = vpow2.f32 %v2038_v17  ;;  %v2147_v38 = vmul.f32 %v5843_v53, %v5999_v26 }
 0x206   : > { %v2151_v22 = vmul.f32 1.442695, %v2146_v19  ;;  %v6028_v8 = vadd.f32 %v1951_v28, %v5750_v60  ;;  %v6032_v29 = vmul.f32 %v5636_v5, %v5869_v47  ;;  %v2235_v27 = vand.u32 2147483648, %v5909_v41 }
 0x207   : > { %v2246_v62 = vmul.f32 %v5931_v40, %v2229_v37  ;;  %v2829_v57 = vpop.eup %2828  ;;  %v6039_v35 = vadd.f32 %v1943_v11, %v5747_v51  ;;  %2834 = vpow2.f32 %v2040_v20  ;;  %v2233_v48 = vsel %vm2232_vm12, %v5909_v41, %v2231_v2 }
 0x208   : > { %vm2234_vm13 = vcmp.eq.f32.partialorder %v5909_v41, 0.0  ;;  %2836 = vpow2.f32 %v2042_v46  ;;  %v2048_v60 = vadd.f32 %v2044_v31, %v5838_v39  ;;  %v2148_v47 = vmul.f32 %v5843_v53, %v6017_v4 }
 0x209   : > { %v2157_v28 = vmul.f32 %v2827_v50, %v5892_v16  ;;  %2838 = vpow2.f32 %v2151_v22  ;;  %v2153_v9 = vmul.f32 1.442695, %v2147_v38  ;;  %vm2239_vm14 = vcmp.eq.f32.partialorder %v5946_v34, inf }
 0x20a   : > { %v2242_v51 = vand.u32 2147483648, %v5946_v34  ;;  %v2236_v18 = vsel %vm2234_vm13, %v2235_v27, %v2233_v48  ;;  %v2238_v41 = vmul.f32 %v2829_v57, %v5946_v34  ;;  %vm2241_vm15 = vcmp.eq.f32.partialorder %v5946_v34, 0.0 }
 0x20b   : > { %v2250_v39 = vsub.f32 1.0, %v2246_v62  ;;  %v2053_v53 = vmul.f32 %v5826_v56, %v2044_v31  ;;  %v2062_v16 = vmul.f32 %v5829_v1, %v2044_v31  ;;  %v2071_v15 = vmul.f32 %v5832_v32, %v2044_v31 }
 0x20c   : > { %v2247_v44 = vmul.f32 %v5931_v40, %v2236_v18  ;;  %v2155_v36 = vmul.f32 1.442695, %v2148_v47  ;;  %v2161_v17 = vadd.f32 %v2157_v28, %v2048_v60  ;;  %v2240_v19 = vsel %vm2239_vm14, %v5946_v34, %v2238_v41 }
 0x20d   : > { %v6062_v0 = vmax.f32 %v2250_v39, 0.0  ;;  %2840 = vpow2.f32 %v2153_v9  ;;  %v6065_v20 = vstv %s6023_s3  ;;  %v2243_v37 = vsel %vm2241_vm15, %v2242_v51, %v2240_v19 }
 0x20e   : > { %v2831_v11 = vpop.eup %2830  ;;  %v2251_v2 = vsub.f32 1.0, %v2247_v44  ;;  %v6068_v46 = vstv %s6034_s4  ;;  %v2248_v31 = vmul.f32 %v5931_v40, %v2243_v37  ;;  %v2057_v34 = vadd.f32 %v2053_v53, %v5876_v3 }
 0x20f   : > { %v2259_v50 = vmul.f32 %v5969_v45, %v6062_v0  ;;  %v2270_v38 = vmul.f32 %v2831_v11, %v5975_v42  ;;  %v2833_v22 = vpop.eup %2832  ;;  %v2066_v27 = vadd.f32 %v2062_v16, %v5879_v25  ;;  %v2075_v62 = vadd.f32 %v2071_v15, %v5938_v13 }
 0x210   : > { %v6077_v57 = vmax.f32 %v2251_v2, 0.0  ;;  %2842 = vpow2.f32 %v2155_v36  ;;  %v2252_v48 = vsub.f32 1.0, %v2248_v31  ;;  %v2166_v9 = vmul.f32 %v5846_v52, %v2157_v28 }
 0x211   : > { %v2264_v40 = vmul.f32 1.442695, %v2259_v50  ;;  %v2274_v60 = vadd.f32 %v2270_v38, %v2161_v17  ;;  %v2835_v47 = vpop.eup %2834  ;;  %v2175_v42 = vmul.f32 %v6065_v20, %v2157_v28  ;;  %v2184_v3 = vmul.f32 %v6068_v46, %v2157_v28 }
 0x212   : > { %v2260_v25 = vmul.f32 %v5969_v45, %v6077_v57  ;;  %v2837_v51 = vpop.eup %2836  ;;  %v2045_v13 = vmul.f32 %v2833_v22, %v5940_v30  ;;  %v6085_v18 = vmax.f32 %v2252_v48, 0.0  ;;  %v6088_v41 = vstv %s6049_s5 }
 0x213   : > { %2844 = vpow2.f32 %v2264_v40  ;;  %v2839_v39 = vpop.eup %2838  ;;  %v6091_v16 = vstv %s6056_s6  ;;  %v6094_v15 = vstv %s6058_s7  ;;  %v1956_v28 = vadd.f32 %v6013_v54, %v5756_v55 }
 0x214   : > { %v2266_v53 = vmul.f32 1.442695, %v2260_v25  ;;  %2846 = vrcp.f32 %v2274_v60  ;;  %v1961_v44 = vmul.f32 %v5636_v5, %v5934_v12  ;;  %v2046_v30 = vmul.f32 %v2835_v47, %v5961_v61 }
 0x215   : > { %v2261_v36 = vmul.f32 %v5969_v45, %v6085_v18  ;;  %v2170_v17 = vadd.f32 %v2166_v9, %v2057_v34  ;;  %v2179_v19 = vadd.f32 %v2175_v42, %v2066_v27  ;;  %v2188_v11 = vadd.f32 %v2184_v3, %v2075_v62 }
 0x216   : > { %2848 = vpow2.f32 %v2266_v53  ;;  %v2279_v2 = vmul.f32 %v6088_v41, %v2270_v38  ;;  %v2288_v31 = vmul.f32 %v6091_v16, %v2270_v38  ;;  %v2297_v50 = vmul.f32 %v6094_v15, %v2270_v38 }
 0x217   : > { %v2268_v37 = vmul.f32 1.442695, %v2261_v36  ;;  %v2841_v55 = vpop.eup %2840  ;;  %v2047_v54 = vmul.f32 %v2837_v51, %v5963_v24  ;;  %v2049_v5 = vadd.f32 %v2045_v13, %v5951_v21  ;;  %v2054_v12 = vmul.f32 %v5826_v56, %v2045_v13 }
 0x218   : > { %v2158_v61 = vmul.f32 %v2839_v39, %v5971_v58  ;;  %v1963_v45 = vadd.f32 %v5983_v14, %v5691_v6  ;;  %v2055_v22 = vmul.f32 %v5826_v56, %v2046_v30  ;;  %v2063_v34 = vmul.f32 %v5829_v1, %v2045_v13 }
 0x219   : > { %2850 = vpow2.f32 %v2268_v37  ;;  %v1964_v38 = vadd.f32 %v6032_v29, %v5753_v63  ;;  %v1965_v27 = vadd.f32 %v1961_v44, %v5759_v43  ;;  %v2050_v24 = vadd.f32 %v2046_v30, %v5955_v49 }
 0x21a   : > { %v2072_v21 = vmul.f32 %v5832_v32, %v2045_v13  ;;  %v2843_v62 = vpop.eup %2842  ;;  %v2159_v58 = vmul.f32 %v2841_v55, %v5999_v26  ;;  %v2283_v48 = vadd.f32 %v2279_v2, %v2170_v17  ;;  %v2292_v40 = vadd.f32 %v2288_v31, %v2179_v19 }
 0x21b   : > { %v2301_v6 = vadd.f32 %v2297_v50, %v2188_v11  ;;  %v2051_v14 = vadd.f32 %v2047_v54, %v5988_v33  ;;  %v2058_v60 = vadd.f32 %v2054_v12, %v6006_v7  ;;  %v2064_v47 = vmul.f32 %v5829_v1, %v2046_v30 }
 0x21c   : > { %v2162_v9 = vadd.f32 %v2158_v61, %v2049_v5  ;;  %v2056_v43 = vmul.f32 %v5826_v56, %v2047_v54  ;;  %v2059_v49 = vadd.f32 %v2055_v22, %v6009_v23  ;;  %v2065_v29 = vmul.f32 %v5829_v1, %v2047_v54 }
 0x21d   : > { %v2845_v63 = vpop.eup %2844  ;;  %v2067_v42 = vadd.f32 %v2063_v34, %v6021_v59  ;;  %v2073_v3 = vmul.f32 %v5832_v32, %v2046_v30  ;;  %v2076_v25 = vadd.f32 %v2072_v21, %v1963_v45  ;;  %v2160_v33 = vmul.f32 %v2843_v62, %v6017_v4 }
 0x21e   : > { %v2847_v26 = vpop.eup %2846  ;;  %v2271_v7 = vmul.f32 %v2845_v63, %v6062_v0  ;;  %v2163_v51 = vadd.f32 %v2159_v58, %v2050_v24  ;;  %v2167_v23 = vmul.f32 %v5846_v52, %v2158_v61  ;;  %v2176_v1 = vmul.f32 %v6065_v20, %v2158_v61 }
 0x21f   : > { %v2309_v13 = vmul.f32 %v2847_v26, %v2283_v48  ;;  %v2318_v39 = vmul.f32 %v2847_v26, %v2292_v40  ;;  %v2328_v53 = vmul.f32 %v2847_v26, %v2301_v6  ;;  %v2185_v59 = vmul.f32 %v6068_v46, %v2158_v61 }
 0x220   : > { %v2849_v56 = vpop.eup %2848  ;;  %v2275_v44 = vadd.f32 %v2271_v7, %v2162_v9  ;;  %v2060_v30 = vadd.f32 %v2056_v43, %v6039_v35  ;;  %v2068_v36 = vadd.f32 %v2064_v47, %v6028_v8  ;;  %v2074_v4 = vmul.f32 %v5832_v32, %v2047_v54 }
 0x221   : > { %v2272_v0 = vmul.f32 %v2849_v56, %v6077_v57  ;;  %2314 = vst [vmem:[%s6139_s8] sm:$0xff] %v2309_v13  ;;  %2509 = vst [vmem:[%s6139_s8 + $0x80] sm:$0xff] %v2318_v39  ;;  %v2069_v17 = vadd.f32 %v2065_v29, %v1956_v28  ;;  %v2077_v19 = vadd.f32 %v2073_v3, %v1964_v38 }
 0x222   : > { %2514 = vst [vmem:[%s6139_s8 + $0x100] sm:$0xff] %v2328_v53  ;;  %v2164_v11 = vadd.f32 %v2160_v33, %v2051_v14  ;;  %2852 = vrcp.f32 %v2275_v44  ;;  %v2168_v8 = vmul.f32 %v5846_v52, %v2159_v58  ;;  %v2177_v32 = vmul.f32 %v6065_v20, %v2159_v58 }
 0x223   : > { %v2851_v35 = vpop.eup %2850  ;;  %v2186_v57 = vmul.f32 %v6068_v46, %v2159_v58  ;;  %v2276_v37 = vadd.f32 %v2272_v0, %v2163_v51  ;;  %v2171_v2 = vadd.f32 %v2167_v23, %v2058_v60  ;;  %v2180_v31 = vadd.f32 %v2176_v1, %v2067_v42 }
 0x224   : > { %v2189_v50 = vadd.f32 %v2185_v59, %v2076_v25  ;;  %v2273_v55 = vmul.f32 %v2851_v35, %v6085_v18  ;;  %v2280_v54 = vmul.f32 %v6088_v41, %v2271_v7  ;;  %v2289_v28 = vmul.f32 %v6091_v16, %v2271_v7 }
 0x225   : > { %v2298_v5 = vmul.f32 %v6094_v15, %v2271_v7  ;;  %2854 = vrcp.f32 %v2276_v37  ;;  %v2078_v12 = vadd.f32 %v2074_v4, %v1965_v27  ;;  %v2169_v61 = vmul.f32 %v5846_v52, %v2160_v33 }
 0x226   : > { %v2178_v45 = vmul.f32 %v6065_v20, %v2160_v33  ;;  %v2277_v22 = vadd.f32 %v2273_v55, %v2164_v11  ;;  %v2172_v34 = vadd.f32 %v2168_v8, %v2059_v49  ;;  %v2181_v38 = vadd.f32 %v2177_v32, %v2068_v36 }
 0x227   : > { %v2187_v24 = vmul.f32 %v6068_v46, %v2160_v33  ;;  %v2190_v21 = vadd.f32 %v2186_v57, %v2077_v19  ;;  %v2281_v18 = vmul.f32 %v6088_v41, %v2272_v0  ;;  %v2290_v62 = vmul.f32 %v6091_v16, %v2272_v0 }
 0x228   : > { %v2299_v58 = vmul.f32 %v6094_v15, %v2272_v0  ;;  %2856 = vrcp.f32 %v2277_v22  ;;  %v2284_v48 = vadd.f32 %v2280_v54, %v2171_v2  ;;  %v2293_v40 = vadd.f32 %v2289_v28, %v2180_v31 }
 0x229   : > { %v2302_v27 = vadd.f32 %v2298_v5, %v2189_v50  ;;  %v2173_v6 = vadd.f32 %v2169_v61, %v2060_v30  ;;  %v2182_v52 = vadd.f32 %v2178_v45, %v2069_v17  ;;  %v2191_v20 = vadd.f32 %v2187_v24, %v2078_v12 }
 0x22a   : > { %v2282_v14 = vmul.f32 %v6088_v41, %v2273_v55  ;;  %v2291_v46 = vmul.f32 %v6091_v16, %v2273_v55  ;;  %v2300_v60 = vmul.f32 %v6094_v15, %v2273_v55  ;;  %v2285_v9 = vadd.f32 %v2281_v18, %v2172_v34 }
 0x22b   : > { %v2294_v63 = vadd.f32 %v2290_v62, %v2181_v38  ;;  %v2303_v43 = vadd.f32 %v2299_v58, %v2190_v21 }
 0x22c   : > { %v2853_v47 = vpop.eup %2852  ;;  %v2286_v3 = vadd.f32 %v2282_v14, %v2173_v6  ;;  %v2295_v25 = vadd.f32 %v2291_v46, %v2182_v52  ;;  %v2304_v41 = vadd.f32 %v2300_v60, %v2191_v20 }
 0x22d   : > { %v2310_v49 = vmul.f32 %v2853_v47, %v2284_v48  ;;  %v2319_v29 = vmul.f32 %v2853_v47, %v2293_v40  ;;  %v2329_v42 = vmul.f32 %v2853_v47, %v2302_v27 }
 0x22f   : > { %v2855_v26 = vpop.eup %2854  ;;  %2315 = vst [vmem:[%s6139_s8 + $0x8] sm:$0xff] %v2310_v49  ;;  %2510 = vst [vmem:[%s6139_s8 + $0x88] sm:$0xff] %v2319_v29 }
 0x230   : > { %2515 = vst [vmem:[%s6139_s8 + $0x108] sm:$0xff] %v2329_v42  ;;  %v2311_v16 = vmul.f32 %v2855_v26, %v2285_v9  ;;  %v2320_v15 = vmul.f32 %v2855_v26, %v2294_v63  ;;  %v2330_v33 = vmul.f32 %v2855_v26, %v2303_v43  ;;  %40 = sbr.rel (!%p38_p5) target bundleno = 24 (0x18), region = 38 }
 0x232   : > { %v2857_v7 = vpop.eup %2856  ;;  %2316 = vst [vmem:[%s6139_s8 + $0x10] sm:$0xff] %v2311_v16  ;;  %2511 = vst [vmem:[%s6139_s8 + $0x90] sm:$0xff] %v2320_v15 }
 0x233   : > { %2516 = vst [vmem:[%s6139_s8 + $0x110] sm:$0xff] %v2330_v33  ;;  %v2312_v51 = vmul.f32 %v2857_v7, %v2286_v3  ;;  %v2321_v13 = vmul.f32 %v2857_v7, %v2295_v25  ;;  %v2331_v39 = vmul.f32 %v2857_v7, %v2304_v41 }
 0x235   : > { %2317 = vst [vmem:[%s6139_s8 + $0x18] sm:$0xff] %v2312_v51  ;;  %2512 = vst [vmem:[%s6139_s8 + $0x98] sm:$0xff] %v2321_v13 }
 0x236   : > { %2517 = vst [vmem:[%s6139_s8 + $0x118] sm:$0xff] %v2331_v39 }
 0x237   :  { %2881 = shalt.err (!%p2878_p10)
}
 0x238   :  { %s2882_s15 = scalar_lea.hbm %s6185_s1, 6144 }
 0x239   :  { %p2883_p11 = scmp.ne.s32.totalorder %s6185_s1, %s2882_s15  ;;  %p2886_p12 = scmp.lt.u32.totalorder %s2882_s15, %s6185_s1 }
 0x23b   :  { %p2888_p13 = pnand %p2886_p12, %p2883_p11 }
 0x23d   :  { %2891 = shalt.err (!%p2888_p13)
}
 0x23e   :  { %s2906_s19 = smov 128   ;;  %s2907_s20 = smov 8  }
 0x23f   :  { %2349 = dma.vmem_to_hbm [thread:$0]  %s2344_s9, 6144, %s6185_s1, [#allocation3], %s2906_s19, %s2906_s19, %s2907_s20  }
 0x240   :  { %2898 = dma.done.wait [#allocation3], 6144  }
 0x241   :  { %2899 = vsyncadd [#allocation3], 4294961152 }
 0x242   :  { %2353 = vsyncpa [#allocation3], 1 }
 0x243   :  { %2354 = vsyncpa [#allocation4], 1 }

</bundles_post_ra>
